<compile_context>
chip_gen: v6e
topology: v6e:2x2x1
jax: 0.10.0
libtpu: 0.0.40
codegen_flags: <defaults>
</compile_context>

<pallas_src>
import math

import numpy as np
import jax
import jax.numpy as jnp
from jax import lax
from jax.experimental import pallas as pl
from jax.experimental.pallas import tpu as pltpu


# ----------------------------------------------------------------------------
# Synthetic SSDV3 configuration (static Python -- never traced)
# ----------------------------------------------------------------------------
N_CLASSES = 3
N_ANCHORS = 4
BASE_SPECS = [(3, 8, 1), (8, 16, 1), (16, 16, 2), (16, 16, 1)]   # (cin, cout, stride)
SOURCE_LAYER_INDEXES = [2, 4]
EXTRAS_SPECS = [(16, 16, 2)]
HEAD_IN_CHANNELS = [16, 16, 16]

HEAD_CONF_C = N_ANCHORS * N_CLASSES        # 12
HEAD_LOC_C = N_ANCHORS * 4                 # 16
HEAD_C = HEAD_CONF_C + HEAD_LOC_C          # 28
SRC_HW = [16, 8, 4]                        # spatial size of the 3 source maps
TOTAL_ROWS = sum(h * h for h in SRC_HW)    # 336


# ----------------------------------------------------------------------------
# Fused Pallas kernel: whole SSDV3 forward for one batch element
# ----------------------------------------------------------------------------
def _ssdv3_fused_kernel(
    x_ref, m0_ref,
    w0_ref, b0_ref, w1_ref, b1_ref, w2_ref, b2_ref, w3_ref, b3_ref,
    we_ref, be_ref,
    wh0_ref, bh0_ref, wh1_ref, bh1_ref, wh2_ref, bh2_ref,
    sel2_ref, sele_ref,
    o0_ref, o1_ref, o2_ref,
    f0, f1, f2, f3, f4,
):
    # ---- halo-only zeroing: just the top/bottom halo rows of every padded map.
    # Left/right halo columns are produced exactly 0 by the banded weights plus
    # the zero-padded bias rows, so they never need explicit zeroing.
    for buf in (f0, f1, f2, f3, f4):
        hp, wc = buf.shape
        zrow = jnp.zeros((1, wc), jnp.float32)
        buf[0:1, :] = zrow
        buf[hp - 1:hp, :] = zrow

    def conv3(lhs_rows, w_ref, b_ref):
        """3 banded matmuls (one per kh) + padded bias row; returns (H_out, Wcols*cout)."""
        acc = jnp.dot(lhs_rows(0), w_ref[0], preferred_element_type=jnp.float32)
        acc = acc + jnp.dot(lhs_rows(1), w_ref[1], preferred_element_type=jnp.float32)
        acc = acc + jnp.dot(lhs_rows(2), w_ref[2], preferred_element_type=jnp.float32)
        return acc + b_ref[...]

    # ---- preprocess (x*2/255 - 1) fused with the padded layout via interior mask
    p0 = x_ref[0] * jnp.float32(2.0 / 255.0) - m0_ref[...]          # (18, 54)

    # base[0]: 3 -> 8, stride 1, ReLU
    f0[1:17, :] = jnp.maximum(conv3(lambda k: p0[k:k + 16, :], w0_ref, b0_ref), 0.0)

    # base[1]: 8 -> 16, stride 1, ReLU            (source feature map #0)
    f0v = f0[...]
    f1[1:17, :] = jnp.maximum(conv3(lambda k: f0v[k:k + 16, :], w1_ref, b1_ref), 0.0)

    f1v = f1[...]                                                    # (18, 288)
    # fused conf|loc head on source 0 -> (16, 448), no ReLU, lane-dense store
    o0_ref[0] = conv3(lambda k: f1v[k:k + 16, :], wh0_ref, bh0_ref)

    # base[2]: 16 -> 16, stride 2 -> 8x8, ReLU.  Row selection via a tiny (8,18)
    # matmul; column stride + zero-padding folded into the banded weights.
    f2[1:9, :] = jnp.maximum(
        conv3(lambda k: jnp.dot(sel2_ref[k], f1v, preferred_element_type=jnp.float32),
              w2_ref, b2_ref), 0.0)

    # base[3]: 16 -> 16, stride 1, ReLU           (source feature map #1)
    f2v = f2[...]
    f3[1:9, :] = jnp.maximum(conv3(lambda k: f2v[k:k + 8, :], w3_ref, b3_ref), 0.0)

    f3v = f3[...]                                                    # (10, 160)
    # fused head on source 1 -> (8, 224)
    o1_ref[0] = conv3(lambda k: f3v[k:k + 8, :], wh1_ref, bh1_ref)

    # extras[0]: 16 -> 16, stride 2 -> 4x4, ReLU  (source feature map #2)
    f4[1:5, :] = jnp.maximum(
        conv3(lambda k: jnp.dot(sele_ref[k], f3v, preferred_element_type=jnp.float32),
              we_ref, be_ref), 0.0)

    f4v = f4[...]                                                    # (6, 96)
    # fused head on source 2 -> (4, 112): 3 matmuls over the padded buffer
    o2_ref[0] = conv3(lambda k: f4v[k:k + 4, :], wh2_ref, bh2_ref)


# ----------------------------------------------------------------------------
# Host-side weight packing (banded conv-as-matmul matrices)
# ----------------------------------------------------------------------------
def _band_placement(wp_in, w_out, stride, pad_out):
    """0/1 placement P[kw, w_in_padded, w_out_col] for the width dimension."""
    wcols = w_out + 2 if pad_out else w_out
    off = 1 if pad_out else 0
    p = np.zeros((3, wp_in, wcols), np.float32)
    for kw in range(3):
        for ow in range(w_out):
            p[kw, stride * ow + kw, ow + off] = 1.0
    return p


def _banded_conv(w, b, *, wp_in, w_out, stride, pad_out):
    """3x3 HWIO conv -> per-kh banded matmul weights + padded bias row.

    Returns wband (3, wp_in*cin, wcols*cout) and bias row (1, wcols*cout).  When
    pad_out, the left/right output-halo columns are exactly zero in both, so the
    conv result can be stored straight into the next padded buffer.
    """
    _, _, cin, cout = w.shape
    p = jnp.asarray(_band_placement(wp_in, w_out, stride, pad_out))
    wcols = p.shape[-1]
    wband = jnp.einsum("kpq,hkio->hpiqo", p, w.astype(jnp.float32))
    wband = wband.reshape(3, wp_in * cin, wcols * cout)
    off = 1 if pad_out else 0
    brow = jnp.zeros((wcols, cout), jnp.float32)
    brow = brow.at[off:off + w_out, :].set(
        jnp.broadcast_to(b.astype(jnp.float32), (w_out, cout)))
    return wband, brow.reshape(1, wcols * cout)


def _row_select(h_out, hp_in, stride):
    """Sel[kh, oh, r] = 1 iff r == stride*oh + kh (stride-2 row gather as matmul)."""
    s = np.zeros((3, h_out, hp_in), np.float32)
    for kh in range(3):
        for oh in range(h_out):
            s[kh, oh, stride * oh + kh] = 1.0
    return jnp.asarray(s)


# ----------------------------------------------------------------------------
# Wrapper
# ----------------------------------------------------------------------------
def ssdv3_forward(x_nchw, params, is_train=True):
    # The fused kernel is specialized to the synthetic SSDV3 config above.
    assert BASE_SPECS == [(3, 8, 1), (8, 16, 1), (16, 16, 2), (16, 16, 1)]
    assert EXTRAS_SPECS == [(16, 16, 2)] and SOURCE_LAYER_INDEXES == [2, 4]

    x = jnp.transpose(x_nchw, (0, 2, 3, 1)).astype(jnp.float32)      # NCHW -> NHWC
    B = x.shape[0]
    # padded raw input in (Hp, Wp*C) layout; affine preprocess is done in-kernel
    xp = jnp.pad(x, ((0, 0), (1, 1), (1, 1), (0, 0))).reshape(B, 18, 54)
    m0 = jnp.pad(jnp.ones((16, 16, 3), jnp.float32),
                 ((1, 1), (1, 1), (0, 0))).reshape(18, 54)            # interior mask

    (w_b0, b_b0), (w_b1, b_b1), (w_b2, b_b2), (w_b3, b_b3) = params["base"]
    ((w_e, b_e),) = params["extras"]
    head_w, head_b = [], []
    for (cw, cb), (lw, lb) in zip(params["conf"], params["loc"]):    # fuse conf|loc
        head_w.append(jnp.concatenate([cw, lw], axis=-1))
        head_b.append(jnp.concatenate([cb, lb], axis=-1))

    wb0, br0 = _banded_conv(w_b0, b_b0, wp_in=18, w_out=16, stride=1, pad_out=True)
    wb1, br1 = _banded_conv(w_b1, b_b1, wp_in=18, w_out=16, stride=1, pad_out=True)
    wb2, br2 = _banded_conv(w_b2, b_b2, wp_in=18, w_out=8, stride=2, pad_out=True)
    wb3, br3 = _banded_conv(w_b3, b_b3, wp_in=10, w_out=8, stride=1, pad_out=True)
    wbe, bre = _banded_conv(w_e, b_e, wp_in=10, w_out=4, stride=2, pad_out=True)
    wh0, bh0 = _banded_conv(head_w[0], head_b[0], wp_in=18, w_out=16, stride=1, pad_out=False)
    wh1, bh1 = _banded_conv(head_w[1], head_b[1], wp_in=10, w_out=8, stride=1, pad_out=False)
    wh2, bh2 = _banded_conv(head_w[2], head_b[2], wp_in=6, w_out=4, stride=1, pad_out=False)

    sel2 = _row_select(8, 18, 2)
    sele = _row_select(4, 10, 2)

    consts = [m0, wb0, br0, wb1, br1, wb2, br2, wb3, br3, wbe, bre,
              wh0, bh0, wh1, bh1, wh2, bh2, sel2, sele]

    def const_spec(a):
        return pl.BlockSpec(a.shape, lambda b, _n=a.ndim: (0,) * _n)

    in_specs = [pl.BlockSpec((1, 18, 54), lambda b: (b, 0, 0))]
    in_specs += [const_spec(a) for a in consts]

    out_shape = (
        jax.ShapeDtypeStruct((B, 16, 16 * HEAD_C), jnp.float32),
        jax.ShapeDtypeStruct((B, 8, 8 * HEAD_C), jnp.float32),
        jax.ShapeDtypeStruct((B, 4, 4 * HEAD_C), jnp.float32),
    )
    out_specs = (
        pl.BlockSpec((1, 16, 16 * HEAD_C), lambda b: (b, 0, 0)),
        pl.BlockSpec((1, 8, 8 * HEAD_C), lambda b: (b, 0, 0)),
        pl.BlockSpec((1, 4, 4 * HEAD_C), lambda b: (b, 0, 0)),
    )

    o0, o1, o2 = pl.pallas_call(
        _ssdv3_fused_kernel,
        out_shape=out_shape,
        grid=(B,),
        in_specs=in_specs,
        out_specs=out_specs,
        scratch_shapes=[
            pltpu.VMEM((18, 18 * 8), jnp.float32),    # base[0] output, padded
            pltpu.VMEM((18, 18 * 16), jnp.float32),   # base[1] output (source 0)
            pltpu.VMEM((10, 10 * 16), jnp.float32),   # base[2] output
            pltpu.VMEM((10, 10 * 16), jnp.float32),   # base[3] output (source 1)
            pltpu.VMEM((6, 6 * 16), jnp.float32),     # extras output  (source 2)
        ],
        compiler_params=pltpu.CompilerParams(dimension_semantics=("parallel",)),
    )(xp, *consts)

    # Wrapper-side layout plumbing: split fused [conf|loc] channels and reshape
    # exactly like permute(0,2,3,1).view(B,-1,nc) + cat over sources.
    def split(o, hw):
        r = o.reshape(B, hw, hw, HEAD_C)
        conf = r[..., :HEAD_CONF_C].reshape(B, hw * hw * N_ANCHORS, N_CLASSES)
        loc = r[..., HEAD_CONF_C:].reshape(B, hw * hw * N_ANCHORS, 4)
        return conf, loc

    confs, locs = [], []
    for o, hw in zip((o0, o1, o2), SRC_HW):
        c, l = split(o, hw)
        confs.append(c)
        locs.append(l)
    loc = jnp.concatenate(locs, axis=1)
    conf = jnp.concatenate(confs, axis=1)
    if is_train:
        return loc, conf
    # inference branch (sigmoid + per-row max / argmax), plain-JAX glue
    flat = jax.nn.sigmoid(conf.reshape(-1, N_CLASSES))
    return loc, jnp.max(flat, axis=1), jnp.argmax(flat, axis=1)


# ----------------------------------------------------------------------------
# Parameters (weights in HWIO; strides live in the static specs, NOT in params)
# ----------------------------------------------------------------------------
def _xavier_uniform(key, kh, kw, cin, cout):
    fan_in = cin * kh * kw
    fan_out = cout * kh * kw
    a = math.sqrt(6.0 / (fan_in + fan_out))
    return jax.random.uniform(key, (kh, kw, cin, cout), jnp.float32, -a, a)


def make_params(key):
    params = {"base": [], "extras": [], "conf": [], "loc": []}
    for (cin, cout, _stride) in BASE_SPECS:
        key, kw_, kb_ = jax.random.split(key, 3)
        params["base"].append((_xavier_uniform(kw_, 3, 3, cin, cout),
                               0.01 * jax.random.normal(kb_, (cout,), jnp.float32)))
    for (cin, cout, _stride) in EXTRAS_SPECS:
        key, kw_, kb_ = jax.random.split(key, 3)
        params["extras"].append((_xavier_uniform(kw_, 3, 3, cin, cout),
                                 0.01 * jax.random.normal(kb_, (cout,), jnp.float32)))
    for cin in HEAD_IN_CHANNELS:
        key, kcw, kcb, klw, klb = jax.random.split(key, 5)
        params["conf"].append((_xavier_uniform(kcw, 3, 3, cin, HEAD_CONF_C),
                               0.01 * jax.random.normal(kcb, (HEAD_CONF_C,), jnp.float32)))
        params["loc"].append((_xavier_uniform(klw, 3, 3, cin, HEAD_LOC_C),
                              0.01 * jax.random.normal(klb, (HEAD_LOC_C,), jnp.float32)))
    return params


# ----------------------------------------------------------------------------
# Pure-JAX reference (mirrors the PyTorch forward; is_train=True branch)
# ----------------------------------------------------------------------------
def _conv_ref(x, w, b, *, stride, relu):
    y = lax.conv_general_dilated(
        x, w, (stride, stride), ((1, 1), (1, 1)),
        dimension_numbers=("NHWC", "HWIO", "NHWC"))
    y = y + b.reshape(1, 1, 1, -1)
    return jnp.maximum(y, 0.0) if relu else y


def ssdv3_forward_ref(x_nchw, params):
    x = jnp.transpose(x_nchw, (0, 2, 3, 1)).astype(jnp.float32)
    x = x * (2.0 / 255.0) - 1.0
    locs, confs = [], []

    def head(i, y):
        cw, cb = params["conf"][i]
        lw, lb = params["loc"][i]
        conf = _conv_ref(y, cw, cb, stride=1, relu=False)
        loc = _conv_ref(y, lw, lb, stride=1, relu=False)
        return (conf.reshape(conf.shape[0], -1, N_CLASSES),
                loc.reshape(loc.shape[0], -1, 4))

    start, header = 0, 0
    for end in SOURCE_LAYER_INDEXES:
        for li in range(start, end):
            w, b = params["base"][li]
            x = _conv_ref(x, w, b, stride=BASE_SPECS[li][2], relu=True)
        c, l = head(header, x)
        confs.append(c); locs.append(l); header += 1
        start = end
    for li in range(start, len(params["base"])):
        w, b = params["base"][li]
        x = _conv_ref(x, w, b, stride=BASE_SPECS[li][2], relu=True)
    for ei, (w, b) in enumerate(params["extras"]):
        x = _conv_ref(x, w, b, stride=EXTRAS_SPECS[ei][2], relu=True)
        c, l = head(header, x)
        confs.append(c); locs.append(l); header += 1
    return jnp.concatenate(locs, axis=1), jnp.concatenate(confs, axis=1)


# ----------------------------------------------------------------------------
if __name__ == "__main__":
    key = jax.random.PRNGKey(0)
    key, kparams, kx = jax.random.split(key, 3)
    params = make_params(kparams)

    # Input matches the PyTorch NCHW convention: (B=2, C=3, H=16, W=16), 0..255 range.
    x_nchw = jax.random.uniform(kx, (2, 3, 16, 16), jnp.float32, 0.0, 255.0)

    loc, conf = jax.jit(ssdv3_forward)(x_nchw, params)
    loc = jax.block_until_ready(loc)
    conf = jax.block_until_ready(conf)

    loc_ref, conf_ref = ssdv3_forward_ref(x_nchw, params)
    assert loc.shape == (2, TOTAL_ROWS * N_ANCHORS, 4), loc.shape
    assert conf.shape == (2, TOTAL_ROWS * N_ANCHORS, N_CLASSES), conf.shape
    assert jnp.allclose(loc, loc_ref, atol=1e-3, rtol=1e-3)
    assert jnp.allclose(conf, conf_ref, atol=1e-3, rtol=1e-3)

    print("KERNEL_OK")
</pallas_src>

<mosaic_0001>
module attributes {stable_mosaic.version = 11 : i64} {
  func.func @_ssdv3_fused_kernel(%arg0: i32, %arg1: memref<1x18x54xf32, #tpu.memory_space<vmem>>, %arg2: memref<18x54xf32, #tpu.memory_space<vmem>>, %arg3: memref<3x54x144xf32, #tpu.memory_space<vmem>>, %arg4: memref<1x144xf32, #tpu.memory_space<vmem>>, %arg5: memref<3x144x288xf32, #tpu.memory_space<vmem>>, %arg6: memref<1x288xf32, #tpu.memory_space<vmem>>, %arg7: memref<3x288x160xf32, #tpu.memory_space<vmem>>, %arg8: memref<1x160xf32, #tpu.memory_space<vmem>>, %arg9: memref<3x160x160xf32, #tpu.memory_space<vmem>>, %arg10: memref<1x160xf32, #tpu.memory_space<vmem>>, %arg11: memref<3x160x96xf32, #tpu.memory_space<vmem>>, %arg12: memref<1x96xf32, #tpu.memory_space<vmem>>, %arg13: memref<3x288x448xf32, #tpu.memory_space<vmem>>, %arg14: memref<1x448xf32, #tpu.memory_space<vmem>>, %arg15: memref<3x160x224xf32, #tpu.memory_space<vmem>>, %arg16: memref<1x224xf32, #tpu.memory_space<vmem>>, %arg17: memref<3x96x112xf32, #tpu.memory_space<vmem>>, %arg18: memref<1x112xf32, #tpu.memory_space<vmem>>, %arg19: memref<3x8x18xf32, #tpu.memory_space<vmem>>, %arg20: memref<3x4x10xf32, #tpu.memory_space<vmem>>, %arg21: memref<1x16x448xf32, #tpu.memory_space<vmem>>, %arg22: memref<1x8x224xf32, #tpu.memory_space<vmem>>, %arg23: memref<1x4x112xf32, #tpu.memory_space<vmem>>, %arg24: memref<18x144xf32, #tpu.memory_space<vmem>>, %arg25: memref<18x288xf32, #tpu.memory_space<vmem>>, %arg26: memref<10x160xf32, #tpu.memory_space<vmem>>, %arg27: memref<10x160xf32, #tpu.memory_space<vmem>>, %arg28: memref<6x96xf32, #tpu.memory_space<vmem>>) attributes {dimension_semantics = [#tpu.dimension_semantics<parallel>], iteration_bounds = array<i64: 2>, scalar_prefetch = 0 : i64, scratch_operands = 5 : i64, tpu.core_type = #tpu.core_type<tc>, window_params = [{transform_indices = @transform_0, window_bounds = array<i64: 1, 18, 54>}, {pipeline_mode = #tpu.pipeline_mode<synchronous>, transform_indices = @transform_1, window_bounds = array<i64: 18, 54>}, {pipeline_mode = #tpu.pipeline_mode<synchronous>, transform_indices = @transform_2, window_bounds = array<i64: 3, 54, 144>}, {pipeline_mode = #tpu.pipeline_mode<synchronous>, transform_indices = @transform_3, window_bounds = array<i64: 1, 144>}, {pipeline_mode = #tpu.pipeline_mode<synchronous>, transform_indices = @transform_4, window_bounds = array<i64: 3, 144, 288>}, {pipeline_mode = #tpu.pipeline_mode<synchronous>, transform_indices = @transform_5, window_bounds = array<i64: 1, 288>}, {pipeline_mode = #tpu.pipeline_mode<synchronous>, transform_indices = @transform_6, window_bounds = array<i64: 3, 288, 160>}, {pipeline_mode = #tpu.pipeline_mode<synchronous>, transform_indices = @transform_7, window_bounds = array<i64: 1, 160>}, {pipeline_mode = #tpu.pipeline_mode<synchronous>, transform_indices = @transform_8, window_bounds = array<i64: 3, 160, 160>}, {pipeline_mode = #tpu.pipeline_mode<synchronous>, transform_indices = @transform_9, window_bounds = array<i64: 1, 160>}, {pipeline_mode = #tpu.pipeline_mode<synchronous>, transform_indices = @transform_10, window_bounds = array<i64: 3, 160, 96>}, {pipeline_mode = #tpu.pipeline_mode<synchronous>, transform_indices = @transform_11, window_bounds = array<i64: 1, 96>}, {pipeline_mode = #tpu.pipeline_mode<synchronous>, transform_indices = @transform_12, window_bounds = array<i64: 3, 288, 448>}, {pipeline_mode = #tpu.pipeline_mode<synchronous>, transform_indices = @transform_13, window_bounds = array<i64: 1, 448>}, {pipeline_mode = #tpu.pipeline_mode<synchronous>, transform_indices = @transform_14, window_bounds = array<i64: 3, 160, 224>}, {pipeline_mode = #tpu.pipeline_mode<synchronous>, transform_indices = @transform_15, window_bounds = array<i64: 1, 224>}, {pipeline_mode = #tpu.pipeline_mode<synchronous>, transform_indices = @transform_16, window_bounds = array<i64: 3, 96, 112>}, {pipeline_mode = #tpu.pipeline_mode<synchronous>, transform_indices = @transform_17, window_bounds = array<i64: 1, 112>}, {pipeline_mode = #tpu.pipeline_mode<synchronous>, transform_indices = @transform_18, window_bounds = array<i64: 3, 8, 18>}, {pipeline_mode = #tpu.pipeline_mode<synchronous>, transform_indices = @transform_19, window_bounds = array<i64: 3, 4, 10>}, {transform_indices = @transform_20, window_bounds = array<i64: 1, 16, 448>}, {transform_indices = @transform_21, window_bounds = array<i64: 1, 8, 224>}, {transform_indices = @transform_22, window_bounds = array<i64: 1, 4, 112>}]} {
    %cst = arith.constant 0.000000e+00 : f32
    %0 = vector.broadcast %cst : f32 to vector<1x144xf32>
    %c0 = arith.constant 0 : index
    %c0_0 = arith.constant 0 : index
    %1 = vector.load %arg24[%c0, %c0_0] : memref<18x144xf32, #tpu.memory_space<vmem>>, vector<1x144xf32>
    tpu.vector_store %arg24[%c0, %c0_0], %0 {strides = array<i32>} : memref<18x144xf32, #tpu.memory_space<vmem>>, vector<1x144xf32>,
    %c17 = arith.constant 17 : index
    %c0_1 = arith.constant 0 : index
    %2 = vector.load %arg24[%c17, %c0_1] : memref<18x144xf32, #tpu.memory_space<vmem>>, vector<1x144xf32>
    tpu.vector_store %arg24[%c17, %c0_1], %0 {strides = array<i32>} : memref<18x144xf32, #tpu.memory_space<vmem>>, vector<1x144xf32>,
    %cst_2 = arith.constant 0.000000e+00 : f32
    %3 = vector.broadcast %cst_2 : f32 to vector<1x288xf32>
    %c0_3 = arith.constant 0 : index
    %c0_4 = arith.constant 0 : index
    %4 = vector.load %arg25[%c0_3, %c0_4] : memref<18x288xf32, #tpu.memory_space<vmem>>, vector<1x288xf32>
    tpu.vector_store %arg25[%c0_3, %c0_4], %3 {strides = array<i32>} : memref<18x288xf32, #tpu.memory_space<vmem>>, vector<1x288xf32>,
    %c17_5 = arith.constant 17 : index
    %c0_6 = arith.constant 0 : index
    %5 = vector.load %arg25[%c17_5, %c0_6] : memref<18x288xf32, #tpu.memory_space<vmem>>, vector<1x288xf32>
    tpu.vector_store %arg25[%c17_5, %c0_6], %3 {strides = array<i32>} : memref<18x288xf32, #tpu.memory_space<vmem>>, vector<1x288xf32>,
    %cst_7 = arith.constant 0.000000e+00 : f32
    %6 = vector.broadcast %cst_7 : f32 to vector<1x160xf32>
    %c0_8 = arith.constant 0 : index
    %c0_9 = arith.constant 0 : index
    %7 = vector.load %arg26[%c0_8, %c0_9] : memref<10x160xf32, #tpu.memory_space<vmem>>, vector<1x160xf32>
    tpu.vector_store %arg26[%c0_8, %c0_9], %6 {strides = array<i32>} : memref<10x160xf32, #tpu.memory_space<vmem>>, vector<1x160xf32>,
    %c9 = arith.constant 9 : index
    %c0_10 = arith.constant 0 : index
    %8 = vector.load %arg26[%c9, %c0_10] : memref<10x160xf32, #tpu.memory_space<vmem>>, vector<1x160xf32>
    tpu.vector_store %arg26[%c9, %c0_10], %6 {strides = array<i32>} : memref<10x160xf32, #tpu.memory_space<vmem>>, vector<1x160xf32>,
    %cst_11 = arith.constant 0.000000e+00 : f32
    %9 = vector.broadcast %cst_11 : f32 to vector<1x160xf32>
    %c0_12 = arith.constant 0 : index
    %c0_13 = arith.constant 0 : index
    %10 = vector.load %arg27[%c0_12, %c0_13] : memref<10x160xf32, #tpu.memory_space<vmem>>, vector<1x160xf32>
    tpu.vector_store %arg27[%c0_12, %c0_13], %9 {strides = array<i32>} : memref<10x160xf32, #tpu.memory_space<vmem>>, vector<1x160xf32>,
    %c9_14 = arith.constant 9 : index
    %c0_15 = arith.constant 0 : index
    %11 = vector.load %arg27[%c9_14, %c0_15] : memref<10x160xf32, #tpu.memory_space<vmem>>, vector<1x160xf32>
    tpu.vector_store %arg27[%c9_14, %c0_15], %9 {strides = array<i32>} : memref<10x160xf32, #tpu.memory_space<vmem>>, vector<1x160xf32>,
    %cst_16 = arith.constant 0.000000e+00 : f32
    %12 = vector.broadcast %cst_16 : f32 to vector<1x96xf32>
    %c0_17 = arith.constant 0 : index
    %c0_18 = arith.constant 0 : index
    %13 = vector.load %arg28[%c0_17, %c0_18] : memref<6x96xf32, #tpu.memory_space<vmem>>, vector<1x96xf32>
    tpu.vector_store %arg28[%c0_17, %c0_18], %12 {strides = array<i32>} : memref<6x96xf32, #tpu.memory_space<vmem>>, vector<1x96xf32>,
    %c5 = arith.constant 5 : index
    %c0_19 = arith.constant 0 : index
    %14 = vector.load %arg28[%c5, %c0_19] : memref<6x96xf32, #tpu.memory_space<vmem>>, vector<1x96xf32>
    tpu.vector_store %arg28[%c5, %c0_19], %12 {strides = array<i32>} : memref<6x96xf32, #tpu.memory_space<vmem>>, vector<1x96xf32>,
    %c0_20 = arith.constant 0 : index
    %c0_21 = arith.constant 0 : index
    %c0_22 = arith.constant 0 : index
    %15 = vector.load %arg1[%c0_20, %c0_21, %c0_22] : memref<1x18x54xf32, #tpu.memory_space<vmem>>, vector<1x18x54xf32>
    %16 = vector.shape_cast %15 : vector<1x18x54xf32> to vector<18x54xf32>
    %cst_23 = arith.constant 0.00784313772 : f32
    %17 = vector.broadcast %cst_23 : f32 to vector<18x54xf32>
    %18 = arith.mulf %16, %17 : vector<18x54xf32>
    %c0_24 = arith.constant 0 : index
    %c0_25 = arith.constant 0 : index
    %19 = vector.load %arg2[%c0_24, %c0_25] : memref<18x54xf32, #tpu.memory_space<vmem>>, vector<18x54xf32>
    %20 = arith.subf %18, %19 : vector<18x54xf32>
    %21 = vector.extract_strided_slice %20 {offsets = [0, 0], sizes = [16, 54], strides = [1, 1]} : vector<18x54xf32> to vector<16x54xf32>
    %c0_26 = arith.constant 0 : index
    %c0_27 = arith.constant 0 : index
    %c0_28 = arith.constant 0 : index
    %22 = vector.load %arg3[%c0_26, %c0_27, %c0_28] : memref<3x54x144xf32, #tpu.memory_space<vmem>>, vector<1x54x144xf32>
    %23 = vector.shape_cast %22 : vector<1x54x144xf32> to vector<54x144xf32>
    %cst_29 = arith.constant dense<0.000000e+00> : vector<16x144xf32>
    %24 = tpu.matmul %21, %23, %cst_29 {dimension_numbers = #tpu.dot_dimension_numbers<[1], [0], [0], [1], [0, 0, 1, 1], [], []>} : vector<16x54xf32>, vector<54x144xf32>, vector<16x144xf32> -> vector<16x144xf32>
    %25 = vector.extract_strided_slice %20 {offsets = [1, 0], sizes = [16, 54], strides = [1, 1]} : vector<18x54xf32> to vector<16x54xf32>
    %c1 = arith.constant 1 : index
    %c0_30 = arith.constant 0 : index
    %c0_31 = arith.constant 0 : index
    %26 = vector.load %arg3[%c1, %c0_30, %c0_31] : memref<3x54x144xf32, #tpu.memory_space<vmem>>, vector<1x54x144xf32>
    %27 = vector.shape_cast %26 : vector<1x54x144xf32> to vector<54x144xf32>
    %cst_32 = arith.constant dense<0.000000e+00> : vector<16x144xf32>
    %28 = tpu.matmul %25, %27, %cst_32 {dimension_numbers = #tpu.dot_dimension_numbers<[1], [0], [0], [1], [0, 0, 1, 1], [], []>} : vector<16x54xf32>, vector<54x144xf32>, vector<16x144xf32> -> vector<16x144xf32>
    %29 = arith.addf %24, %28 : vector<16x144xf32>
    %30 = vector.extract_strided_slice %20 {offsets = [2, 0], sizes = [16, 54], strides = [1, 1]} : vector<18x54xf32> to vector<16x54xf32>
    %c2 = arith.constant 2 : index
    %c0_33 = arith.constant 0 : index
    %c0_34 = arith.constant 0 : index
    %31 = vector.load %arg3[%c2, %c0_33, %c0_34] : memref<3x54x144xf32, #tpu.memory_space<vmem>>, vector<1x54x144xf32>
    %32 = vector.shape_cast %31 : vector<1x54x144xf32> to vector<54x144xf32>
    %cst_35 = arith.constant dense<0.000000e+00> : vector<16x144xf32>
    %33 = tpu.matmul %30, %32, %cst_35 {dimension_numbers = #tpu.dot_dimension_numbers<[1], [0], [0], [1], [0, 0, 1, 1], [], []>} : vector<16x54xf32>, vector<54x144xf32>, vector<16x144xf32> -> vector<16x144xf32>
    %34 = arith.addf %29, %33 : vector<16x144xf32>
    %c0_36 = arith.constant 0 : index
    %c0_37 = arith.constant 0 : index
    %35 = vector.load %arg4[%c0_36, %c0_37] : memref<1x144xf32, #tpu.memory_space<vmem>>, vector<1x144xf32>
    %36 = vector.broadcast %35 : vector<1x144xf32> to vector<16x144xf32>
    %37 = arith.addf %34, %36 : vector<16x144xf32>
    %cst_38 = arith.constant 0.000000e+00 : f32
    %38 = vector.broadcast %cst_38 : f32 to vector<16x144xf32>
    %39 = arith.maximumf %37, %38 : vector<16x144xf32>
    %c1_39 = arith.constant 1 : index
    %c0_40 = arith.constant 0 : index
    %40 = vector.load %arg24[%c1_39, %c0_40] : memref<18x144xf32, #tpu.memory_space<vmem>>, vector<16x144xf32>
    tpu.vector_store %arg24[%c1_39, %c0_40], %39 {strides = array<i32>} : memref<18x144xf32, #tpu.memory_space<vmem>>, vector<16x144xf32>,
    %c0_41 = arith.constant 0 : index
    %c0_42 = arith.constant 0 : index
    %41 = vector.load %arg24[%c0_41, %c0_42] : memref<18x144xf32, #tpu.memory_space<vmem>>, vector<18x144xf32>
    %42 = vector.extract_strided_slice %41 {offsets = [0, 0], sizes = [16, 144], strides = [1, 1]} : vector<18x144xf32> to vector<16x144xf32>
    %c0_43 = arith.constant 0 : index
    %c0_44 = arith.constant 0 : index
    %c0_45 = arith.constant 0 : index
    %43 = vector.load %arg5[%c0_43, %c0_44, %c0_45] : memref<3x144x288xf32, #tpu.memory_space<vmem>>, vector<1x144x288xf32>
    %44 = vector.shape_cast %43 : vector<1x144x288xf32> to vector<144x288xf32>
    %cst_46 = arith.constant dense<0.000000e+00> : vector<16x288xf32>
    %45 = tpu.matmul %42, %44, %cst_46 {dimension_numbers = #tpu.dot_dimension_numbers<[1], [0], [0], [1], [0, 0, 1, 1], [], []>} : vector<16x144xf32>, vector<144x288xf32>, vector<16x288xf32> -> vector<16x288xf32>
    %46 = vector.extract_strided_slice %41 {offsets = [1, 0], sizes = [16, 144], strides = [1, 1]} : vector<18x144xf32> to vector<16x144xf32>
    %c1_47 = arith.constant 1 : index
    %c0_48 = arith.constant 0 : index
    %c0_49 = arith.constant 0 : index
    %47 = vector.load %arg5[%c1_47, %c0_48, %c0_49] : memref<3x144x288xf32, #tpu.memory_space<vmem>>, vector<1x144x288xf32>
    %48 = vector.shape_cast %47 : vector<1x144x288xf32> to vector<144x288xf32>
    %cst_50 = arith.constant dense<0.000000e+00> : vector<16x288xf32>
    %49 = tpu.matmul %46, %48, %cst_50 {dimension_numbers = #tpu.dot_dimension_numbers<[1], [0], [0], [1], [0, 0, 1, 1], [], []>} : vector<16x144xf32>, vector<144x288xf32>, vector<16x288xf32> -> vector<16x288xf32>
    %50 = arith.addf %45, %49 : vector<16x288xf32>
    %51 = vector.extract_strided_slice %41 {offsets = [2, 0], sizes = [16, 144], strides = [1, 1]} : vector<18x144xf32> to vector<16x144xf32>
    %c2_51 = arith.constant 2 : index
    %c0_52 = arith.constant 0 : index
    %c0_53 = arith.constant 0 : index
    %52 = vector.load %arg5[%c2_51, %c0_52, %c0_53] : memref<3x144x288xf32, #tpu.memory_space<vmem>>, vector<1x144x288xf32>
    %53 = vector.shape_cast %52 : vector<1x144x288xf32> to vector<144x288xf32>
    %cst_54 = arith.constant dense<0.000000e+00> : vector<16x288xf32>
    %54 = tpu.matmul %51, %53, %cst_54 {dimension_numbers = #tpu.dot_dimension_numbers<[1], [0], [0], [1], [0, 0, 1, 1], [], []>} : vector<16x144xf32>, vector<144x288xf32>, vector<16x288xf32> -> vector<16x288xf32>
    %55 = arith.addf %50, %54 : vector<16x288xf32>
    %c0_55 = arith.constant 0 : index
    %c0_56 = arith.constant 0 : index
    %56 = vector.load %arg6[%c0_55, %c0_56] : memref<1x288xf32, #tpu.memory_space<vmem>>, vector<1x288xf32>
    %57 = vector.broadcast %56 : vector<1x288xf32> to vector<16x288xf32>
    %58 = arith.addf %55, %57 : vector<16x288xf32>
    %cst_57 = arith.constant 0.000000e+00 : f32
    %59 = vector.broadcast %cst_57 : f32 to vector<16x288xf32>
    %60 = arith.maximumf %58, %59 : vector<16x288xf32>
    %c1_58 = arith.constant 1 : index
    %c0_59 = arith.constant 0 : index
    %61 = vector.load %arg25[%c1_58, %c0_59] : memref<18x288xf32, #tpu.memory_space<vmem>>, vector<16x288xf32>
    tpu.vector_store %arg25[%c1_58, %c0_59], %60 {strides = array<i32>} : memref<18x288xf32, #tpu.memory_space<vmem>>, vector<16x288xf32>,
    %c0_60 = arith.constant 0 : index
    %c0_61 = arith.constant 0 : index
    %62 = vector.load %arg25[%c0_60, %c0_61] : memref<18x288xf32, #tpu.memory_space<vmem>>, vector<18x288xf32>
    %63 = vector.extract_strided_slice %62 {offsets = [0, 0], sizes = [16, 288], strides = [1, 1]} : vector<18x288xf32> to vector<16x288xf32>
    %c0_62 = arith.constant 0 : index
    %c0_63 = arith.constant 0 : index
    %c0_64 = arith.constant 0 : index
    %64 = vector.load %arg13[%c0_62, %c0_63, %c0_64] : memref<3x288x448xf32, #tpu.memory_space<vmem>>, vector<1x288x448xf32>
    %65 = vector.shape_cast %64 : vector<1x288x448xf32> to vector<288x448xf32>
    %cst_65 = arith.constant dense<0.000000e+00> : vector<16x448xf32>
    %66 = tpu.matmul %63, %65, %cst_65 {dimension_numbers = #tpu.dot_dimension_numbers<[1], [0], [0], [1], [0, 0, 1, 1], [], []>} : vector<16x288xf32>, vector<288x448xf32>, vector<16x448xf32> -> vector<16x448xf32>
    %67 = vector.extract_strided_slice %62 {offsets = [1, 0], sizes = [16, 288], strides = [1, 1]} : vector<18x288xf32> to vector<16x288xf32>
    %c1_66 = arith.constant 1 : index
    %c0_67 = arith.constant 0 : index
    %c0_68 = arith.constant 0 : index
    %68 = vector.load %arg13[%c1_66, %c0_67, %c0_68] : memref<3x288x448xf32, #tpu.memory_space<vmem>>, vector<1x288x448xf32>
    %69 = vector.shape_cast %68 : vector<1x288x448xf32> to vector<288x448xf32>
    %cst_69 = arith.constant dense<0.000000e+00> : vector<16x448xf32>
    %70 = tpu.matmul %67, %69, %cst_69 {dimension_numbers = #tpu.dot_dimension_numbers<[1], [0], [0], [1], [0, 0, 1, 1], [], []>} : vector<16x288xf32>, vector<288x448xf32>, vector<16x448xf32> -> vector<16x448xf32>
    %71 = arith.addf %66, %70 : vector<16x448xf32>
    %72 = vector.extract_strided_slice %62 {offsets = [2, 0], sizes = [16, 288], strides = [1, 1]} : vector<18x288xf32> to vector<16x288xf32>
    %c2_70 = arith.constant 2 : index
    %c0_71 = arith.constant 0 : index
    %c0_72 = arith.constant 0 : index
    %73 = vector.load %arg13[%c2_70, %c0_71, %c0_72] : memref<3x288x448xf32, #tpu.memory_space<vmem>>, vector<1x288x448xf32>
    %74 = vector.shape_cast %73 : vector<1x288x448xf32> to vector<288x448xf32>
    %cst_73 = arith.constant dense<0.000000e+00> : vector<16x448xf32>
    %75 = tpu.matmul %72, %74, %cst_73 {dimension_numbers = #tpu.dot_dimension_numbers<[1], [0], [0], [1], [0, 0, 1, 1], [], []>} : vector<16x288xf32>, vector<288x448xf32>, vector<16x448xf32> -> vector<16x448xf32>
    %76 = arith.addf %71, %75 : vector<16x448xf32>
    %c0_74 = arith.constant 0 : index
    %c0_75 = arith.constant 0 : index
    %77 = vector.load %arg14[%c0_74, %c0_75] : memref<1x448xf32, #tpu.memory_space<vmem>>, vector<1x448xf32>
    %78 = vector.broadcast %77 : vector<1x448xf32> to vector<16x448xf32>
    %79 = arith.addf %76, %78 : vector<16x448xf32>
    %c0_76 = arith.constant 0 : index
    %c0_77 = arith.constant 0 : index
    %c0_78 = arith.constant 0 : index
    %80 = vector.load %arg21[%c0_76, %c0_77, %c0_78] : memref<1x16x448xf32, #tpu.memory_space<vmem>>, vector<1x16x448xf32>
    %81 = vector.shape_cast %80 : vector<1x16x448xf32> to vector<16x448xf32>
    %82 = vector.shape_cast %79 : vector<16x448xf32> to vector<1x16x448xf32>
    tpu.vector_store %arg21[%c0_76, %c0_77, %c0_78], %82 {strides = array<i32>} : memref<1x16x448xf32, #tpu.memory_space<vmem>>, vector<1x16x448xf32>,
    %c0_79 = arith.constant 0 : index
    %c0_80 = arith.constant 0 : index
    %c0_81 = arith.constant 0 : index
    %83 = vector.load %arg19[%c0_79, %c0_80, %c0_81] : memref<3x8x18xf32, #tpu.memory_space<vmem>>, vector<1x8x18xf32>
    %84 = vector.shape_cast %83 : vector<1x8x18xf32> to vector<8x18xf32>
    %cst_82 = arith.constant dense<0.000000e+00> : vector<8x288xf32>
    %85 = tpu.matmul %84, %62, %cst_82 {dimension_numbers = #tpu.dot_dimension_numbers<[1], [0], [0], [1], [0, 0, 1, 1], [], []>} : vector<8x18xf32>, vector<18x288xf32>, vector<8x288xf32> -> vector<8x288xf32>
    %c0_83 = arith.constant 0 : index
    %c0_84 = arith.constant 0 : index
    %c0_85 = arith.constant 0 : index
    %86 = vector.load %arg7[%c0_83, %c0_84, %c0_85] : memref<3x288x160xf32, #tpu.memory_space<vmem>>, vector<1x288x160xf32>
    %87 = vector.shape_cast %86 : vector<1x288x160xf32> to vector<288x160xf32>
    %cst_86 = arith.constant dense<0.000000e+00> : vector<8x160xf32>
    %88 = tpu.matmul %85, %87, %cst_86 {dimension_numbers = #tpu.dot_dimension_numbers<[1], [0], [0], [1], [0, 0, 1, 1], [], []>} : vector<8x288xf32>, vector<288x160xf32>, vector<8x160xf32> -> vector<8x160xf32>
    %c1_87 = arith.constant 1 : index
    %c0_88 = arith.constant 0 : index
    %c0_89 = arith.constant 0 : index
    %89 = vector.load %arg19[%c1_87, %c0_88, %c0_89] : memref<3x8x18xf32, #tpu.memory_space<vmem>>, vector<1x8x18xf32>
    %90 = vector.shape_cast %89 : vector<1x8x18xf32> to vector<8x18xf32>
    %cst_90 = arith.constant dense<0.000000e+00> : vector<8x288xf32>
    %91 = tpu.matmul %90, %62, %cst_90 {dimension_numbers = #tpu.dot_dimension_numbers<[1], [0], [0], [1], [0, 0, 1, 1], [], []>} : vector<8x18xf32>, vector<18x288xf32>, vector<8x288xf32> -> vector<8x288xf32>
    %c1_91 = arith.constant 1 : index
    %c0_92 = arith.constant 0 : index
    %c0_93 = arith.constant 0 : index
    %92 = vector.load %arg7[%c1_91, %c0_92, %c0_93] : memref<3x288x160xf32, #tpu.memory_space<vmem>>, vector<1x288x160xf32>
    %93 = vector.shape_cast %92 : vector<1x288x160xf32> to vector<288x160xf32>
    %cst_94 = arith.constant dense<0.000000e+00> : vector<8x160xf32>
    %94 = tpu.matmul %91, %93, %cst_94 {dimension_numbers = #tpu.dot_dimension_numbers<[1], [0], [0], [1], [0, 0, 1, 1], [], []>} : vector<8x288xf32>, vector<288x160xf32>, vector<8x160xf32> -> vector<8x160xf32>
    %95 = arith.addf %88, %94 : vector<8x160xf32>
    %c2_95 = arith.constant 2 : index
    %c0_96 = arith.constant 0 : index
    %c0_97 = arith.constant 0 : index
    %96 = vector.load %arg19[%c2_95, %c0_96, %c0_97] : memref<3x8x18xf32, #tpu.memory_space<vmem>>, vector<1x8x18xf32>
    %97 = vector.shape_cast %96 : vector<1x8x18xf32> to vector<8x18xf32>
    %cst_98 = arith.constant dense<0.000000e+00> : vector<8x288xf32>
    %98 = tpu.matmul %97, %62, %cst_98 {dimension_numbers = #tpu.dot_dimension_numbers<[1], [0], [0], [1], [0, 0, 1, 1], [], []>} : vector<8x18xf32>, vector<18x288xf32>, vector<8x288xf32> -> vector<8x288xf32>
    %c2_99 = arith.constant 2 : index
    %c0_100 = arith.constant 0 : index
    %c0_101 = arith.constant 0 : index
    %99 = vector.load %arg7[%c2_99, %c0_100, %c0_101] : memref<3x288x160xf32, #tpu.memory_space<vmem>>, vector<1x288x160xf32>
    %100 = vector.shape_cast %99 : vector<1x288x160xf32> to vector<288x160xf32>
    %cst_102 = arith.constant dense<0.000000e+00> : vector<8x160xf32>
    %101 = tpu.matmul %98, %100, %cst_102 {dimension_numbers = #tpu.dot_dimension_numbers<[1], [0], [0], [1], [0, 0, 1, 1], [], []>} : vector<8x288xf32>, vector<288x160xf32>, vector<8x160xf32> -> vector<8x160xf32>
    %102 = arith.addf %95, %101 : vector<8x160xf32>
    %c0_103 = arith.constant 0 : index
    %c0_104 = arith.constant 0 : index
    %103 = vector.load %arg8[%c0_103, %c0_104] : memref<1x160xf32, #tpu.memory_space<vmem>>, vector<1x160xf32>
    %104 = vector.broadcast %103 : vector<1x160xf32> to vector<8x160xf32>
    %105 = arith.addf %102, %104 : vector<8x160xf32>
    %cst_105 = arith.constant 0.000000e+00 : f32
    %106 = vector.broadcast %cst_105 : f32 to vector<8x160xf32>
    %107 = arith.maximumf %105, %106 : vector<8x160xf32>
    %c1_106 = arith.constant 1 : index
    %c0_107 = arith.constant 0 : index
    %108 = vector.load %arg26[%c1_106, %c0_107] : memref<10x160xf32, #tpu.memory_space<vmem>>, vector<8x160xf32>
    tpu.vector_store %arg26[%c1_106, %c0_107], %107 {strides = array<i32>} : memref<10x160xf32, #tpu.memory_space<vmem>>, vector<8x160xf32>,
    %c0_108 = arith.constant 0 : index
    %c0_109 = arith.constant 0 : index
    %109 = vector.load %arg26[%c0_108, %c0_109] : memref<10x160xf32, #tpu.memory_space<vmem>>, vector<10x160xf32>
    %110 = vector.extract_strided_slice %109 {offsets = [0, 0], sizes = [8, 160], strides = [1, 1]} : vector<10x160xf32> to vector<8x160xf32>
    %c0_110 = arith.constant 0 : index
    %c0_111 = arith.constant 0 : index
    %c0_112 = arith.constant 0 : index
    %111 = vector.load %arg9[%c0_110, %c0_111, %c0_112] : memref<3x160x160xf32, #tpu.memory_space<vmem>>, vector<1x160x160xf32>
    %112 = vector.shape_cast %111 : vector<1x160x160xf32> to vector<160x160xf32>
    %cst_113 = arith.constant dense<0.000000e+00> : vector<8x160xf32>
    %113 = tpu.matmul %110, %112, %cst_113 {dimension_numbers = #tpu.dot_dimension_numbers<[1], [0], [0], [1], [0, 0, 1, 1], [], []>} : vector<8x160xf32>, vector<160x160xf32>, vector<8x160xf32> -> vector<8x160xf32>
    %114 = vector.extract_strided_slice %109 {offsets = [1, 0], sizes = [8, 160], strides = [1, 1]} : vector<10x160xf32> to vector<8x160xf32>
    %c1_114 = arith.constant 1 : index
    %c0_115 = arith.constant 0 : index
    %c0_116 = arith.constant 0 : index
    %115 = vector.load %arg9[%c1_114, %c0_115, %c0_116] : memref<3x160x160xf32, #tpu.memory_space<vmem>>, vector<1x160x160xf32>
    %116 = vector.shape_cast %115 : vector<1x160x160xf32> to vector<160x160xf32>
    %cst_117 = arith.constant dense<0.000000e+00> : vector<8x160xf32>
    %117 = tpu.matmul %114, %116, %cst_117 {dimension_numbers = #tpu.dot_dimension_numbers<[1], [0], [0], [1], [0, 0, 1, 1], [], []>} : vector<8x160xf32>, vector<160x160xf32>, vector<8x160xf32> -> vector<8x160xf32>
    %118 = arith.addf %113, %117 : vector<8x160xf32>
    %119 = vector.extract_strided_slice %109 {offsets = [2, 0], sizes = [8, 160], strides = [1, 1]} : vector<10x160xf32> to vector<8x160xf32>
    %c2_118 = arith.constant 2 : index
    %c0_119 = arith.constant 0 : index
    %c0_120 = arith.constant 0 : index
    %120 = vector.load %arg9[%c2_118, %c0_119, %c0_120] : memref<3x160x160xf32, #tpu.memory_space<vmem>>, vector<1x160x160xf32>
    %121 = vector.shape_cast %120 : vector<1x160x160xf32> to vector<160x160xf32>
    %cst_121 = arith.constant dense<0.000000e+00> : vector<8x160xf32>
    %122 = tpu.matmul %119, %121, %cst_121 {dimension_numbers = #tpu.dot_dimension_numbers<[1], [0], [0], [1], [0, 0, 1, 1], [], []>} : vector<8x160xf32>, vector<160x160xf32>, vector<8x160xf32> -> vector<8x160xf32>
    %123 = arith.addf %118, %122 : vector<8x160xf32>
    %c0_122 = arith.constant 0 : index
    %c0_123 = arith.constant 0 : index
    %124 = vector.load %arg10[%c0_122, %c0_123] : memref<1x160xf32, #tpu.memory_space<vmem>>, vector<1x160xf32>
    %125 = vector.broadcast %124 : vector<1x160xf32> to vector<8x160xf32>
    %126 = arith.addf %123, %125 : vector<8x160xf32>
    %cst_124 = arith.constant 0.000000e+00 : f32
    %127 = vector.broadcast %cst_124 : f32 to vector<8x160xf32>
    %128 = arith.maximumf %126, %127 : vector<8x160xf32>
    %c1_125 = arith.constant 1 : index
    %c0_126 = arith.constant 0 : index
    %129 = vector.load %arg27[%c1_125, %c0_126] : memref<10x160xf32, #tpu.memory_space<vmem>>, vector<8x160xf32>
    tpu.vector_store %arg27[%c1_125, %c0_126], %128 {strides = array<i32>} : memref<10x160xf32, #tpu.memory_space<vmem>>, vector<8x160xf32>,
    %c0_127 = arith.constant 0 : index
    %c0_128 = arith.constant 0 : index
    %130 = vector.load %arg27[%c0_127, %c0_128] : memref<10x160xf32, #tpu.memory_space<vmem>>, vector<10x160xf32>
    %131 = vector.extract_strided_slice %130 {offsets = [0, 0], sizes = [8, 160], strides = [1, 1]} : vector<10x160xf32> to vector<8x160xf32>
    %c0_129 = arith.constant 0 : index
    %c0_130 = arith.constant 0 : index
    %c0_131 = arith.constant 0 : index
    %132 = vector.load %arg15[%c0_129, %c0_130, %c0_131] : memref<3x160x224xf32, #tpu.memory_space<vmem>>, vector<1x160x224xf32>
    %133 = vector.shape_cast %132 : vector<1x160x224xf32> to vector<160x224xf32>
    %cst_132 = arith.constant dense<0.000000e+00> : vector<8x224xf32>
    %134 = tpu.matmul %131, %133, %cst_132 {dimension_numbers = #tpu.dot_dimension_numbers<[1], [0], [0], [1], [0, 0, 1, 1], [], []>} : vector<8x160xf32>, vector<160x224xf32>, vector<8x224xf32> -> vector<8x224xf32>
    %135 = vector.extract_strided_slice %130 {offsets = [1, 0], sizes = [8, 160], strides = [1, 1]} : vector<10x160xf32> to vector<8x160xf32>
    %c1_133 = arith.constant 1 : index
    %c0_134 = arith.constant 0 : index
    %c0_135 = arith.constant 0 : index
    %136 = vector.load %arg15[%c1_133, %c0_134, %c0_135] : memref<3x160x224xf32, #tpu.memory_space<vmem>>, vector<1x160x224xf32>
    %137 = vector.shape_cast %136 : vector<1x160x224xf32> to vector<160x224xf32>
    %cst_136 = arith.constant dense<0.000000e+00> : vector<8x224xf32>
    %138 = tpu.matmul %135, %137, %cst_136 {dimension_numbers = #tpu.dot_dimension_numbers<[1], [0], [0], [1], [0, 0, 1, 1], [], []>} : vector<8x160xf32>, vector<160x224xf32>, vector<8x224xf32> -> vector<8x224xf32>
    %139 = arith.addf %134, %138 : vector<8x224xf32>
    %140 = vector.extract_strided_slice %130 {offsets = [2, 0], sizes = [8, 160], strides = [1, 1]} : vector<10x160xf32> to vector<8x160xf32>
    %c2_137 = arith.constant 2 : index
    %c0_138 = arith.constant 0 : index
    %c0_139 = arith.constant 0 : index
    %141 = vector.load %arg15[%c2_137, %c0_138, %c0_139] : memref<3x160x224xf32, #tpu.memory_space<vmem>>, vector<1x160x224xf32>
    %142 = vector.shape_cast %141 : vector<1x160x224xf32> to vector<160x224xf32>
    %cst_140 = arith.constant dense<0.000000e+00> : vector<8x224xf32>
    %143 = tpu.matmul %140, %142, %cst_140 {dimension_numbers = #tpu.dot_dimension_numbers<[1], [0], [0], [1], [0, 0, 1, 1], [], []>} : vector<8x160xf32>, vector<160x224xf32>, vector<8x224xf32> -> vector<8x224xf32>
    %144 = arith.addf %139, %143 : vector<8x224xf32>
    %c0_141 = arith.constant 0 : index
    %c0_142 = arith.constant 0 : index
    %145 = vector.load %arg16[%c0_141, %c0_142] : memref<1x224xf32, #tpu.memory_space<vmem>>, vector<1x224xf32>
    %146 = vector.broadcast %145 : vector<1x224xf32> to vector<8x224xf32>
    %147 = arith.addf %144, %146 : vector<8x224xf32>
    %c0_143 = arith.constant 0 : index
    %c0_144 = arith.constant 0 : index
    %c0_145 = arith.constant 0 : index
    %148 = vector.load %arg22[%c0_143, %c0_144, %c0_145] : memref<1x8x224xf32, #tpu.memory_space<vmem>>, vector<1x8x224xf32>
    %149 = vector.shape_cast %148 : vector<1x8x224xf32> to vector<8x224xf32>
    %150 = vector.shape_cast %147 : vector<8x224xf32> to vector<1x8x224xf32>
    tpu.vector_store %arg22[%c0_143, %c0_144, %c0_145], %150 {strides = array<i32>} : memref<1x8x224xf32, #tpu.memory_space<vmem>>, vector<1x8x224xf32>,
    %c0_146 = arith.constant 0 : index
    %c0_147 = arith.constant 0 : index
    %c0_148 = arith.constant 0 : index
    %151 = vector.load %arg20[%c0_146, %c0_147, %c0_148] : memref<3x4x10xf32, #tpu.memory_space<vmem>>, vector<1x4x10xf32>
    %152 = vector.shape_cast %151 : vector<1x4x10xf32> to vector<4x10xf32>
    %cst_149 = arith.constant dense<0.000000e+00> : vector<4x160xf32>
    %153 = tpu.matmul %152, %130, %cst_149 {dimension_numbers = #tpu.dot_dimension_numbers<[1], [0], [0], [1], [0, 0, 1, 1], [], []>} : vector<4x10xf32>, vector<10x160xf32>, vector<4x160xf32> -> vector<4x160xf32>
    %c0_150 = arith.constant 0 : index
    %c0_151 = arith.constant 0 : index
    %c0_152 = arith.constant 0 : index
    %154 = vector.load %arg11[%c0_150, %c0_151, %c0_152] : memref<3x160x96xf32, #tpu.memory_space<vmem>>, vector<1x160x96xf32>
    %155 = vector.shape_cast %154 : vector<1x160x96xf32> to vector<160x96xf32>
    %cst_153 = arith.constant dense<0.000000e+00> : vector<4x96xf32>
    %156 = tpu.matmul %153, %155, %cst_153 {dimension_numbers = #tpu.dot_dimension_numbers<[1], [0], [0], [1], [0, 0, 1, 1], [], []>} : vector<4x160xf32>, vector<160x96xf32>, vector<4x96xf32> -> vector<4x96xf32>
    %c1_154 = arith.constant 1 : index
    %c0_155 = arith.constant 0 : index
    %c0_156 = arith.constant 0 : index
    %157 = vector.load %arg20[%c1_154, %c0_155, %c0_156] : memref<3x4x10xf32, #tpu.memory_space<vmem>>, vector<1x4x10xf32>
    %158 = vector.shape_cast %157 : vector<1x4x10xf32> to vector<4x10xf32>
    %cst_157 = arith.constant dense<0.000000e+00> : vector<4x160xf32>
    %159 = tpu.matmul %158, %130, %cst_157 {dimension_numbers = #tpu.dot_dimension_numbers<[1], [0], [0], [1], [0, 0, 1, 1], [], []>} : vector<4x10xf32>, vector<10x160xf32>, vector<4x160xf32> -> vector<4x160xf32>
    %c1_158 = arith.constant 1 : index
    %c0_159 = arith.constant 0 : index
    %c0_160 = arith.constant 0 : index
    %160 = vector.load %arg11[%c1_158, %c0_159, %c0_160] : memref<3x160x96xf32, #tpu.memory_space<vmem>>, vector<1x160x96xf32>
    %161 = vector.shape_cast %160 : vector<1x160x96xf32> to vector<160x96xf32>
    %cst_161 = arith.constant dense<0.000000e+00> : vector<4x96xf32>
    %162 = tpu.matmul %159, %161, %cst_161 {dimension_numbers = #tpu.dot_dimension_numbers<[1], [0], [0], [1], [0, 0, 1, 1], [], []>} : vector<4x160xf32>, vector<160x96xf32>, vector<4x96xf32> -> vector<4x96xf32>
    %163 = arith.addf %156, %162 : vector<4x96xf32>
    %c2_162 = arith.constant 2 : index
    %c0_163 = arith.constant 0 : index
    %c0_164 = arith.constant 0 : index
    %164 = vector.load %arg20[%c2_162, %c0_163, %c0_164] : memref<3x4x10xf32, #tpu.memory_space<vmem>>, vector<1x4x10xf32>
    %165 = vector.shape_cast %164 : vector<1x4x10xf32> to vector<4x10xf32>
    %cst_165 = arith.constant dense<0.000000e+00> : vector<4x160xf32>
    %166 = tpu.matmul %165, %130, %cst_165 {dimension_numbers = #tpu.dot_dimension_numbers<[1], [0], [0], [1], [0, 0, 1, 1], [], []>} : vector<4x10xf32>, vector<10x160xf32>, vector<4x160xf32> -> vector<4x160xf32>
    %c2_166 = arith.constant 2 : index
    %c0_167 = arith.constant 0 : index
    %c0_168 = arith.constant 0 : index
    %167 = vector.load %arg11[%c2_166, %c0_167, %c0_168] : memref<3x160x96xf32, #tpu.memory_space<vmem>>, vector<1x160x96xf32>
    %168 = vector.shape_cast %167 : vector<1x160x96xf32> to vector<160x96xf32>
    %cst_169 = arith.constant dense<0.000000e+00> : vector<4x96xf32>
    %169 = tpu.matmul %166, %168, %cst_169 {dimension_numbers = #tpu.dot_dimension_numbers<[1], [0], [0], [1], [0, 0, 1, 1], [], []>} : vector<4x160xf32>, vector<160x96xf32>, vector<4x96xf32> -> vector<4x96xf32>
    %170 = arith.addf %163, %169 : vector<4x96xf32>
    %c0_170 = arith.constant 0 : index
    %c0_171 = arith.constant 0 : index
    %171 = vector.load %arg12[%c0_170, %c0_171] : memref<1x96xf32, #tpu.memory_space<vmem>>, vector<1x96xf32>
    %172 = vector.broadcast %171 : vector<1x96xf32> to vector<4x96xf32>
    %173 = arith.addf %170, %172 : vector<4x96xf32>
    %cst_172 = arith.constant 0.000000e+00 : f32
    %174 = vector.broadcast %cst_172 : f32 to vector<4x96xf32>
    %175 = arith.maximumf %173, %174 : vector<4x96xf32>
    %c1_173 = arith.constant 1 : index
    %c0_174 = arith.constant 0 : index
    %176 = vector.load %arg28[%c1_173, %c0_174] : memref<6x96xf32, #tpu.memory_space<vmem>>, vector<4x96xf32>
    tpu.vector_store %arg28[%c1_173, %c0_174], %175 {strides = array<i32>} : memref<6x96xf32, #tpu.memory_space<vmem>>, vector<4x96xf32>,
    %c0_175 = arith.constant 0 : index
    %c0_176 = arith.constant 0 : index
    %177 = vector.load %arg28[%c0_175, %c0_176] : memref<6x96xf32, #tpu.memory_space<vmem>>, vector<6x96xf32>
    %178 = vector.extract_strided_slice %177 {offsets = [0, 0], sizes = [4, 96], strides = [1, 1]} : vector<6x96xf32> to vector<4x96xf32>
    %c0_177 = arith.constant 0 : index
    %c0_178 = arith.constant 0 : index
    %c0_179 = arith.constant 0 : index
    %179 = vector.load %arg17[%c0_177, %c0_178, %c0_179] : memref<3x96x112xf32, #tpu.memory_space<vmem>>, vector<1x96x112xf32>
    %180 = vector.shape_cast %179 : vector<1x96x112xf32> to vector<96x112xf32>
    %cst_180 = arith.constant dense<0.000000e+00> : vector<4x112xf32>
    %181 = tpu.matmul %178, %180, %cst_180 {dimension_numbers = #tpu.dot_dimension_numbers<[1], [0], [0], [1], [0, 0, 1, 1], [], []>} : vector<4x96xf32>, vector<96x112xf32>, vector<4x112xf32> -> vector<4x112xf32>
    %182 = vector.extract_strided_slice %177 {offsets = [1, 0], sizes = [4, 96], strides = [1, 1]} : vector<6x96xf32> to vector<4x96xf32>
    %c1_181 = arith.constant 1 : index
    %c0_182 = arith.constant 0 : index
    %c0_183 = arith.constant 0 : index
    %183 = vector.load %arg17[%c1_181, %c0_182, %c0_183] : memref<3x96x112xf32, #tpu.memory_space<vmem>>, vector<1x96x112xf32>
    %184 = vector.shape_cast %183 : vector<1x96x112xf32> to vector<96x112xf32>
    %cst_184 = arith.constant dense<0.000000e+00> : vector<4x112xf32>
    %185 = tpu.matmul %182, %184, %cst_184 {dimension_numbers = #tpu.dot_dimension_numbers<[1], [0], [0], [1], [0, 0, 1, 1], [], []>} : vector<4x96xf32>, vector<96x112xf32>, vector<4x112xf32> -> vector<4x112xf32>
    %186 = arith.addf %181, %185 : vector<4x112xf32>
    %187 = vector.extract_strided_slice %177 {offsets = [2, 0], sizes = [4, 96], strides = [1, 1]} : vector<6x96xf32> to vector<4x96xf32>
    %c2_185 = arith.constant 2 : index
    %c0_186 = arith.constant 0 : index
    %c0_187 = arith.constant 0 : index
    %188 = vector.load %arg17[%c2_185, %c0_186, %c0_187] : memref<3x96x112xf32, #tpu.memory_space<vmem>>, vector<1x96x112xf32>
    %189 = vector.shape_cast %188 : vector<1x96x112xf32> to vector<96x112xf32>
    %cst_188 = arith.constant dense<0.000000e+00> : vector<4x112xf32>
    %190 = tpu.matmul %187, %189, %cst_188 {dimension_numbers = #tpu.dot_dimension_numbers<[1], [0], [0], [1], [0, 0, 1, 1], [], []>} : vector<4x96xf32>, vector<96x112xf32>, vector<4x112xf32> -> vector<4x112xf32>
    %191 = arith.addf %186, %190 : vector<4x112xf32>
    %c0_189 = arith.constant 0 : index
    %c0_190 = arith.constant 0 : index
    %192 = vector.load %arg18[%c0_189, %c0_190] : memref<1x112xf32, #tpu.memory_space<vmem>>, vector<1x112xf32>
    %193 = vector.broadcast %192 : vector<1x112xf32> to vector<4x112xf32>
    %194 = arith.addf %191, %193 : vector<4x112xf32>
    %c0_191 = arith.constant 0 : index
    %c0_192 = arith.constant 0 : index
    %c0_193 = arith.constant 0 : index
    %195 = vector.load %arg23[%c0_191, %c0_192, %c0_193] : memref<1x4x112xf32, #tpu.memory_space<vmem>>, vector<1x4x112xf32>
    %196 = vector.shape_cast %195 : vector<1x4x112xf32> to vector<4x112xf32>
    %197 = vector.shape_cast %194 : vector<4x112xf32> to vector<1x4x112xf32>
    tpu.vector_store %arg23[%c0_191, %c0_192, %c0_193], %197 {strides = array<i32>} : memref<1x4x112xf32, #tpu.memory_space<vmem>>, vector<1x4x112xf32>,
    return
  }
  func.func @transform_0(%arg0: i32) -> (i32, i32, i32) {
    %c0_i32 = arith.constant 0 : i32
    %c0_i32_0 = arith.constant 0 : i32
    %c0_i32_1 = arith.constant 0 : i32
    return %arg0, %c0_i32, %c0_i32_0 : i32, i32, i32
  }
  func.func @transform_1(%arg0: i32) -> (i32, i32) {
    %c0_i32 = arith.constant 0 : i32
    %c0_i32_0 = arith.constant 0 : i32
    %c0_i32_1 = arith.constant 0 : i32
    return %c0_i32, %c0_i32_0 : i32, i32
  }
  func.func @transform_2(%arg0: i32) -> (i32, i32, i32) {
    %c0_i32 = arith.constant 0 : i32
    %c0_i32_0 = arith.constant 0 : i32
    %c0_i32_1 = arith.constant 0 : i32
    %c0_i32_2 = arith.constant 0 : i32
    return %c0_i32, %c0_i32_0, %c0_i32_1 : i32, i32, i32
  }
  func.func @transform_3(%arg0: i32) -> (i32, i32) {
    %c0_i32 = arith.constant 0 : i32
    %c0_i32_0 = arith.constant 0 : i32
    %c0_i32_1 = arith.constant 0 : i32
    return %c0_i32, %c0_i32_0 : i32, i32
  }
  func.func @transform_4(%arg0: i32) -> (i32, i32, i32) {
    %c0_i32 = arith.constant 0 : i32
    %c0_i32_0 = arith.constant 0 : i32
    %c0_i32_1 = arith.constant 0 : i32
    %c0_i32_2 = arith.constant 0 : i32
    return %c0_i32, %c0_i32_0, %c0_i32_1 : i32, i32, i32
  }
  func.func @transform_5(%arg0: i32) -> (i32, i32) {
    %c0_i32 = arith.constant 0 : i32
    %c0_i32_0 = arith.constant 0 : i32
    %c0_i32_1 = arith.constant 0 : i32
    return %c0_i32, %c0_i32_0 : i32, i32
  }
  func.func @transform_6(%arg0: i32) -> (i32, i32, i32) {
    %c0_i32 = arith.constant 0 : i32
    %c0_i32_0 = arith.constant 0 : i32
    %c0_i32_1 = arith.constant 0 : i32
    %c0_i32_2 = arith.constant 0 : i32
    return %c0_i32, %c0_i32_0, %c0_i32_1 : i32, i32, i32
  }
  func.func @transform_7(%arg0: i32) -> (i32, i32) {
    %c0_i32 = arith.constant 0 : i32
    %c0_i32_0 = arith.constant 0 : i32
    %c0_i32_1 = arith.constant 0 : i32
    return %c0_i32, %c0_i32_0 : i32, i32
  }
  func.func @transform_8(%arg0: i32) -> (i32, i32, i32) {
    %c0_i32 = arith.constant 0 : i32
    %c0_i32_0 = arith.constant 0 : i32
    %c0_i32_1 = arith.constant 0 : i32
    %c0_i32_2 = arith.constant 0 : i32
    return %c0_i32, %c0_i32_0, %c0_i32_1 : i32, i32, i32
  }
  func.func @transform_9(%arg0: i32) -> (i32, i32) {
    %c0_i32 = arith.constant 0 : i32
    %c0_i32_0 = arith.constant 0 : i32
    %c0_i32_1 = arith.constant 0 : i32
    return %c0_i32, %c0_i32_0 : i32, i32
  }
  func.func @transform_10(%arg0: i32) -> (i32, i32, i32) {
    %c0_i32 = arith.constant 0 : i32
    %c0_i32_0 = arith.constant 0 : i32
    %c0_i32_1 = arith.constant 0 : i32
    %c0_i32_2 = arith.constant 0 : i32
    return %c0_i32, %c0_i32_0, %c0_i32_1 : i32, i32, i32
  }
  func.func @transform_11(%arg0: i32) -> (i32, i32) {
    %c0_i32 = arith.constant 0 : i32
    %c0_i32_0 = arith.constant 0 : i32
    %c0_i32_1 = arith.constant 0 : i32
    return %c0_i32, %c0_i32_0 : i32, i32
  }
  func.func @transform_12(%arg0: i32) -> (i32, i32, i32) {
    %c0_i32 = arith.constant 0 : i32
    %c0_i32_0 = arith.constant 0 : i32
    %c0_i32_1 = arith.constant 0 : i32
    %c0_i32_2 = arith.constant 0 : i32
    return %c0_i32, %c0_i32_0, %c0_i32_1 : i32, i32, i32
  }
  func.func @transform_13(%arg0: i32) -> (i32, i32) {
    %c0_i32 = arith.constant 0 : i32
    %c0_i32_0 = arith.constant 0 : i32
    %c0_i32_1 = arith.constant 0 : i32
    return %c0_i32, %c0_i32_0 : i32, i32
  }
  func.func @transform_14(%arg0: i32) -> (i32, i32, i32) {
    %c0_i32 = arith.constant 0 : i32
    %c0_i32_0 = arith.constant 0 : i32
    %c0_i32_1 = arith.constant 0 : i32
    %c0_i32_2 = arith.constant 0 : i32
    return %c0_i32, %c0_i32_0, %c0_i32_1 : i32, i32, i32
  }
  func.func @transform_15(%arg0: i32) -> (i32, i32) {
    %c0_i32 = arith.constant 0 : i32
    %c0_i32_0 = arith.constant 0 : i32
    %c0_i32_1 = arith.constant 0 : i32
    return %c0_i32, %c0_i32_0 : i32, i32
  }
  func.func @transform_16(%arg0: i32) -> (i32, i32, i32) {
    %c0_i32 = arith.constant 0 : i32
    %c0_i32_0 = arith.constant 0 : i32
    %c0_i32_1 = arith.constant 0 : i32
    %c0_i32_2 = arith.constant 0 : i32
    return %c0_i32, %c0_i32_0, %c0_i32_1 : i32, i32, i32
  }
  func.func @transform_17(%arg0: i32) -> (i32, i32) {
    %c0_i32 = arith.constant 0 : i32
    %c0_i32_0 = arith.constant 0 : i32
    %c0_i32_1 = arith.constant 0 : i32
    return %c0_i32, %c0_i32_0 : i32, i32
  }
  func.func @transform_18(%arg0: i32) -> (i32, i32, i32) {
    %c0_i32 = arith.constant 0 : i32
    %c0_i32_0 = arith.constant 0 : i32
    %c0_i32_1 = arith.constant 0 : i32
    %c0_i32_2 = arith.constant 0 : i32
    return %c0_i32, %c0_i32_0, %c0_i32_1 : i32, i32, i32
  }
  func.func @transform_19(%arg0: i32) -> (i32, i32, i32) {
    %c0_i32 = arith.constant 0 : i32
    %c0_i32_0 = arith.constant 0 : i32
    %c0_i32_1 = arith.constant 0 : i32
    %c0_i32_2 = arith.constant 0 : i32
    return %c0_i32, %c0_i32_0, %c0_i32_1 : i32, i32, i32
  }
  func.func @transform_20(%arg0: i32) -> (i32, i32, i32) {
    %c0_i32 = arith.constant 0 : i32
    %c0_i32_0 = arith.constant 0 : i32
    %c0_i32_1 = arith.constant 0 : i32
    return %arg0, %c0_i32, %c0_i32_0 : i32, i32, i32
  }
  func.func @transform_21(%arg0: i32) -> (i32, i32, i32) {
    %c0_i32 = arith.constant 0 : i32
    %c0_i32_0 = arith.constant 0 : i32
    %c0_i32_1 = arith.constant 0 : i32
    return %arg0, %c0_i32, %c0_i32_0 : i32, i32, i32
  }
  func.func @transform_22(%arg0: i32) -> (i32, i32, i32) {
    %c0_i32 = arith.constant 0 : i32
    %c0_i32_0 = arith.constant 0 : i32
    %c0_i32_1 = arith.constant 0 : i32
    return %arg0, %c0_i32, %c0_i32_0 : i32, i32, i32
  }
}

</mosaic_0001>

<bundles_post_ra>
// kernel: ssdv3_forward.1
= control target key start
LH: loop header
LB: loop body
LE: loop exit
PB: predicated region body
PF: predicated region fallthrough
CT: control target
= control target key end

     0   :  { %s11625_s0 = inlined_call_operand.vmem [shape: f32[2,18,54], index: 0, kind: input, shape index: {}]   ;;  %s11626_s1 = inlined_call_operand.vmem [shape: f32[18,54], index: 1, kind: input, shape index: {}]   ;;  %s11627_s2 = inlined_call_operand.vmem [shape: f32[3,54,144], index: 2, kind: input, shape index: {}]   ;;  %s11628_s3 = inlined_call_operand.vmem [shape: f32[1,144], index: 3, kind: input, shape index: {}]   ;;  %s11629_s4 = inlined_call_operand.vmem [shape: f32[3,144,288], index: 4, kind: input, shape index: {}]   ;;  %s11630_s5 = inlined_call_operand.vmem [shape: f32[1,288], index: 5, kind: input, shape index: {}]   ;;  %s11631_s6 = inlined_call_operand.vmem [shape: f32[3,288,160], index: 6, kind: input, shape index: {}]   ;;  %s11632_s7 = inlined_call_operand.vmem [shape: f32[1,160], index: 7, kind: input, shape index: {}]   ;;  %s11633_s8 = inlined_call_operand.vmem [shape: f32[3,160,160], index: 8, kind: input, shape index: {}]   ;;  %s11634_s9 = inlined_call_operand.vmem [shape: f32[1,160], index: 9, kind: input, shape index: {}]   ;;  %s11635_s10 = inlined_call_operand.vmem [shape: f32[3,160,96], index: 10, kind: input, shape index: {}]   ;;  %s11636_s11 = inlined_call_operand.vmem [shape: f32[1,96], index: 11, kind: input, shape index: {}]   ;;  %s11637_s12 = inlined_call_operand.vmem [shape: f32[3,288,448], index: 12, kind: input, shape index: {}]   ;;  %s11638_s13 = inlined_call_operand.vmem [shape: f32[1,448], index: 13, kind: input, shape index: {}]   ;;  %s11639_s14 = inlined_call_operand.vmem [shape: f32[3,160,224], index: 14, kind: input, shape index: {}]   ;;  %s11640_s15 = inlined_call_operand.vmem [shape: f32[1,224], index: 15, kind: input, shape index: {}]   ;;  %s11641_s16 = inlined_call_operand.vmem [shape: f32[3,96,112], index: 16, kind: input, shape index: {}]   ;;  %s11642_s17 = inlined_call_operand.vmem [shape: f32[1,112], index: 17, kind: input, shape index: {}]   ;;  %s11643_s18 = inlined_call_operand.vmem [shape: f32[3,8,18], index: 18, kind: input, shape index: {}]   ;;  %s11644_s19 = inlined_call_operand.vmem [shape: f32[3,4,10], index: 19, kind: input, shape index: {}]   ;;  %s11645_s20 = inlined_call_operand.vmem [shape: f32[2,16,448], index: 20, kind: output, shape index: {0}]   ;;  %s11646_s21 = inlined_call_operand.vmem [shape: f32[2,8,224], index: 21, kind: output, shape index: {1}]   ;;  %s11647_s22 = inlined_call_operand.vmem [shape: f32[2,4,112], index: 22, kind: output, shape index: {2}]  }
   0x1   :  { %11654 = sst [smem:[#allocation8_spill]] %s11625_s0 }
   0x2   :  { %11655 = sst [smem:[#allocation9_spill]] %s11626_s1 }
   0x3   :  { %11656 = sst [smem:[#allocation10_spill]] %s11627_s2 }
   0x4   :  { %11657 = sst [smem:[#allocation11_spill]] %s11628_s3  ;;  %s7341_s3 = smov 0  }
   0x5   :  { %11658 = sst [smem:[#allocation12_spill]] %s11629_s4 }
   0x6   :  { %11659 = sst [smem:[#allocation13_spill]] %s11630_s5 }
   0x7   :  { %11660 = sst [smem:[#allocation14_spill]] %s11631_s6 }
   0x8 LB: > { %11661 = sst [smem:[#allocation7_spill]] %s7222_s3  ;;  %s6145_s28 = sadd.s32 4294967295, %s7222_s3   ;;  %s7222_s3 = sphi %s7341_s3, %s33_s3  }
   0x9   : > { %p6149_p0 = scmp.ge.s32.totalorder %s7222_s3, 1  ;;  %p617_p1 = scmp.lt.s32.totalorder %s7222_s3, 3 }
   0xb   : > { %p618_p2 = pnand %p6149_p0, %p617_p1 }
   0xc   : > { %s11662_s4 = sld [smem:[#allocation10_spill]] (!%p618_p2)  ;;  %p688_p3 = scmp.lt.s32.totalorder (!%p618_p2), %s6145_s28, 1 }
   0xd   : > { %621 = sbr.rel (%p618_p2) target bundleno = 2569 (0xa09), region = 100  ;;  %s11663_s24 = sld [smem:[#allocation8_spill]] (!%p618_p2) }
   0xe   : > { %s11664_s27 = sld [smem:[#allocation9_spill]] (!%p618_p2) }
   0xf   : > { %s11666_s23 = sld [smem:[#allocation11_spill]] (!%p618_p2) }
  0x10   : > { %s11667_s5 = sld [smem:[#allocation13_spill]] (!%p618_p2) }
  0x12   : > { %v6169_v0 = vld [vmem:[%s11662_s4 + $0xd8] sm:$0x3f]  ;;  %vm793_vm0 = vcmask 1045504   ;;  %v763_v1 = vld [vmem:[%s11662_s4 + $0x68] sm:$0x3f]  ;;  %v6166_v6 = vld [vmem:[%s11662_s4 + $0xc0] sm:$0xff] }
  0x13   : > { %v6167_v2 = vld [vmem:[%s11662_s4 + $0xc8] sm:$0xff]  ;;  %6170 = vmatprep.subr.msk.mxu0 %vm793_vm0, %v6169_v0  ;;  %6174 = vmatprep.subr.msk.mxu1 %vm793_vm0, %v763_v1  ;;  %v6168_v3 = vld [vmem:[%s11662_s4 + $0xd0] sm:$0x3f]  ;;  %v762_v4 = vld [vmem:[%s11662_s4 + $0x60] sm:$0x3f]  ;;  %s11671_s28 = smov (!%p688_p3, %s6145_s28), 1 }
  0x14   : > { %v761_v5 = vld [vmem:[%s11662_s4 + $0x58] sm:$0xff]  ;;  %6171 = vmatpush1.msk.msra.mxu0 %vm793_vm0, %v6168_v3  ;;  %6175 = vmatpush1.msk.msra.mxu1 %vm793_vm0, %v762_v4  ;;  %v760_v7 = vld [vmem:[%s11662_s4 + $0x50] sm:$0xff]  ;;  %v759_v9 = vld [vmem:[%s11662_s4 + $0x48] sm:$0xff]  ;;  %s7192_s0 = smul.u32 24, %s11671_s28  ;;  %vm782_vm1 = vcmask 1046528   ;;  %vm788_vm2 = vcmask 441344  }
  0x15   : > { %v6165_v8 = vld [vmem:[%s11662_s4 + $0xb8] sm:$0xff]  ;;  %820 = vmatprep.subr.mxu0 %v6167_v2  ;;  %907 = vmatprep.subr.mxu1 %v761_v5  ;;  %v6164_v10 = vld [vmem:[%s11662_s4 + $0xb0] sm:$0xff]  ;;  %v758_v11 = vld [vmem:[%s11662_s4 + $0x40] sm:$0xff]  ;;  %v7224_v38 = vmov 0.0   ;;  %vm1113_vm5 = vcmask 130049   ;;  %vm1099_vm6 = vcmask 1040384  }
  0x16   : > { %821 = vmatpush1.msra.mxu0 %v6166_v6  ;;  %908 = vmatpush1.msra.mxu1 %v760_v7  ;;  %v6163_v12 = vld [vmem:[%s11662_s4 + $0xa8] sm:$0xff]  ;;  %v757_v13 = vld [vmem:[%s11662_s4 + $0x38] sm:$0xff]  ;;  %v6162_v14 = vld [vmem:[%s11662_s4 + $0xa0] sm:$0xff]  ;;  %s692_s3 = scalar_lea.vmem %s11663_s24, %s7192_s0  ;;  %s11665_s0 = sld [smem:[#allocation12_spill]]  ;;  %vm1119_vm7 = vcmask 122880   ;;  %vm1116_vm8 = vcmask 130048  }
  0x17   : > { %822 = vmatprep.subr.mxu0 %v6165_v8  ;;  %909 = vmatprep.subr.mxu1 %v759_v9  ;;  %v756_v15 = vld [vmem:[%s11662_s4 + $0x30] sm:$0xff]  ;;  %v6161_v16 = vld [vmem:[%s11662_s4 + $0x98] sm:$0xff]  ;;  %v755_v17 = vld [vmem:[%s11662_s4 + $0x28] sm:$0xff]  ;;  %vm1850_vm9 = vcmask 261121   ;;  %vm1858_vm10 = vcmask 253952   ;;  %vm1854_vm11 = vcmask 261120  }
  0x18   : > { %823 = vmatpush1.msra.mxu0 %v6164_v10  ;;  %910 = vmatpush1.msra.mxu1 %v758_v11  ;;  %v6160_v18 = vld [vmem:[%s11662_s4 + $0x90] sm:$0xff]  ;;  %v754_v19 = vld [vmem:[%s11662_s4 + $0x20] sm:$0xff]  ;;  %v6159_v20 = vld [vmem:[%s11662_s4 + $0x88] sm:$0xff]  ;;  %v707_v11 = vlaneseq  ;;  %vm3338_vm12 = vcmask 1041408   ;;  %vm3334_vm13 = vcmask 146432   ;;  %vm7225_vm14 = vmmov 0  }
  0x19   : > { %824 = vmatprep.subr.mxu0 %v6163_v12  ;;  %911 = vmatprep.subr.mxu1 %v757_v13  ;;  %v753_v21 = vld [vmem:[%s11662_s4 + $0x18] sm:$0xff]  ;;  %v6158_v22 = vld [vmem:[%s11662_s4 + $0x80] sm:$0xff]  ;;  %v752_v23 = vld [vmem:[%s11662_s4 + $0x10] sm:$0xff]  ;;  %s11668_s24 = sld [smem:[#allocation14_spill]]  ;;  %s7031_s6 = sshll.u32 %s11671_s28, 6  ;;  %vm3327_vm15 = vcmask 523264  }
  0x1a   : > { %825 = vmatpush1.msra.mxu0 %v6162_v14  ;;  %912 = vmatpush1.msra.mxu1 %v756_v15  ;;  %v6157_v24 = vld [vmem:[%s11662_s4 + $0x78] sm:$0xff]  ;;  %v751_v25 = vld [vmem:[%s11662_s4 + $0x8] sm:$0xff]  ;;  %v738_v26 = vld [vmem:[%s692_s3] sm:$0xff]  ;;  %vm716_vm3 = vcmp.lt.s32.totalorder %v707_v11, 288  ;;  %vm709_vm4 = vcmp.lt.s32.totalorder %v707_v11, 144  ;;  %s9899_s2 = scalar_lea.vmem %s11645_s20, %s7031_s6 }
  0x1b   : > { %826 = vmatprep.subr.mxu0 %v6161_v16  ;;  %913 = vmatprep.subr.mxu1 %v755_v17  ;;  %v739_v27 = vld [vmem:[%s692_s3 + $0x8] sm:$0xff]  ;;  %v741_v28 = vmul.f32 0.007843138, %v738_v26  ;;  %v744_v30 = vld [vmem:[%s11664_s27] sm:$0xff]  ;;  %v6156_v32 = vld [vmem:[%s11662_s4 + $0x70] sm:$0xff] }
  0x1c   : > { %827 = vmatpush1.msra.mxu0 %v6160_v18  ;;  %914 = vmatpush1.msra.mxu1 %v754_v19  ;;  %v742_v29 = vmul.f32 0.007843138, %v739_v27  ;;  %v745_v31 = vld [vmem:[%s11664_s27 + $0x8] sm:$0xff]  ;;  %v750_v33 = vld [vmem:[%s11662_s4] sm:$0xff]  ;;  %v740_v37 = vld [vmem:[%s692_s3 + $0x10] sm:$0x3] }
  0x1d   : > { %828 = vmatprep.subr.mxu0 %v6159_v20  ;;  %915 = vmatprep.subr.mxu1 %v753_v21  ;;  %v747_v34 = vsub.f32 %v741_v28, %v744_v30  ;;  %v6191_v36 = vld [vmem:[%s11662_s4 + $0x148] sm:$0x3f]  ;;  %v743_v41 = vmul.f32 0.007843138, %v740_v37  ;;  %v746_v42 = vld [vmem:[%s11664_s27 + $0x10] sm:$0x3] }
  0x1e   : > { %829 = vmatpush1.msra.mxu0 %v6158_v22  ;;  %916 = vmatpush1.msra.mxu1 %v752_v23  ;;  %v7449_v35 = vsub.f32 %v742_v29, %v745_v31  ;;  %v6190_v43 = vld [vmem:[%s11662_s4 + $0x140] sm:$0x3f]  ;;  %v6189_v45 = vld [vmem:[%s11662_s4 + $0x138] sm:$0xff]  ;;  %v6188_v47 = vld [vmem:[%s11662_s4 + $0x130] sm:$0xff] }
  0x1f   : > { %830 = vmatprep.subr.mxu0 %v6157_v24  ;;  %917 = vmatprep.subr.mxu1 %v751_v25  ;;  %v783_v39 = vrot.slane %v747_v34, 1  ;;  %v749_v46 = vsub.f32 %v743_v41, %v746_v42  ;;  %v6187_v48 = vld [vmem:[%s11662_s4 + $0x128] sm:$0xff]  ;;  %v6186_v50 = vld [vmem:[%s11662_s4 + $0x120] sm:$0xff]  ;;  %v6185_v51 = vld [vmem:[%s11662_s4 + $0x118] sm:$0xff]  ;;  %v979_v57 = vrot.slane %v747_v34, 2 }
  0x20   : > { %831 = vmatpush1.msra.mxu0 %v6156_v32  ;;  %864 = vmatprep.mubr.f32.mxu0 %v7224_v38  ;;  %v784_v40 = vrot.slane %v7449_v35, 1  ;;  %v6184_v53 = vld [vmem:[%s11662_s4 + $0x110] sm:$0xff]  ;;  %v6183_v54 = vld [vmem:[%s11662_s4 + $0x108] sm:$0xff]  ;;  %v6182_v55 = vld [vmem:[%s11662_s4 + $0x100] sm:$0xff]  ;;  %v980_v58 = vrot.slane %v7449_v35, 2 }
  0x21   : > { %918 = vmatpush1.msra.mxu1 %v750_v33  ;;  %951 = vmatprep.mubr.f32.mxu1 %v7224_v38  ;;  %v786_v49 = vrot.slane %v749_v46, 1  ;;  %v6181_v56 = vld [vmem:[%s11662_s4 + $0xf8] sm:$0xff]  ;;  %v6180_v59 = vld [vmem:[%s11662_s4 + $0xf0] sm:$0xff]  ;;  %v6179_v60 = vld [vmem:[%s11662_s4 + $0xe8] sm:$0xff]  ;;  %v982_v63 = vrot.slane %v749_v46, 2 }
  0x22   : > { %v785_v44 = vsel %vm782_vm1, %v783_v39, %v784_v40  ;;  %6176 = vmatmul.mubr.msk.f32.vlgmr.msra.gmra.mxu1 %vm788_vm2, %v747_v34  ;;  %6192 = vmatprep.subr.msk.mxu0 %vm793_vm0, %v6191_v36  ;;  %v6178_v61 = vld [vmem:[%s11662_s4 + $0xe0] sm:$0xff]  ;;  %v981_v62 = vsel %vm793_vm0, %v979_v57, %v980_v58  ;;  %v6241_v2 = vld [vmem:[%s11665_s0 + $0x318] sm:$0xff]  ;;  %v6243_v3 = vld [vmem:[%s11665_s0 + $0x328] sm:$0xff]  ;;  %718 = vst.msk [vmem:[#allocation3] ss:$8 sm:$0x7] %vm716_vm3, %v7224_v38 }
  0x23   : > { %6172 = vmatmul.mubr.msk.f32.vlgmr.msra.gmra.mxu0 %vm788_vm2, %v785_v44  ;;  %957 = vmatprep.mubr.f32.mxu1 %v7224_v38  ;;  %v787_v52 = vsel %vm782_vm1, %v784_v40, %v786_v49  ;;  %v983_v0 = vsel %vm793_vm0, %v980_v58, %v982_v63  ;;  %v6242_v1 = vld [vmem:[%s11665_s0 + $0x320] sm:$0xff]  ;;  %v6239_v4 = vld [vmem:[%s11665_s0 + $0x308] sm:$0xff]  ;;  %v6240_v6 = vld [vmem:[%s11665_s0 + $0x310] sm:$0xff]  ;;  %721 = vst.msk [vmem:[#allocation3 + $0x31] ss:$8 sm:$0x7] %vm716_vm3, %v7224_v38 }
  0x24   : > { %6193 = vmatpush1.msk.msra.mxu0 %vm793_vm0, %v6190_v43  ;;  %870 = vmatprep.mubr.f32.mxu0 %v7224_v38  ;;  %v6238_v5 = vld [vmem:[%s11665_s0 + $0x300] sm:$0xff]  ;;  %v6236_v7 = vld [vmem:[%s11665_s0 + $0x2f0] sm:$0xff]  ;;  %v6235_v8 = vld [vmem:[%s11665_s0 + $0x2e8] sm:$0xff]  ;;  %711 = vst.msk [vmem:[#allocation2] ss:$8 sm:$0x3] %vm709_vm4, %v7224_v38 }
  0x25   : > { %1014 = vmatprep.subr.mxu0 %v6189_v45  ;;  %1258 = vmatprep.subr.mxu1 %v6242_v1  ;;  %v6237_v9 = vld [vmem:[%s11665_s0 + $0x2f8] sm:$0xff]  ;;  %v6232_v12 = vld [vmem:[%s11665_s0 + $0x2d0] sm:$0xff]  ;;  %v6234_v13 = vld [vmem:[%s11665_s0 + $0x2e0] sm:$0xff]  ;;  %714 = vst.msk [vmem:[#allocation2 + $0x21] ss:$8 sm:$0x3] %vm709_vm4, %v7224_v38 }
  0x26   : > { %1015 = vmatpush1.msra.mxu0 %v6188_v47  ;;  %6177 = vmatmul.mubr.msk.f32.gmra.mxu1 %vm788_vm2, %v7449_v35  ;;  %v6233_v10 = vld [vmem:[%s11665_s0 + $0x2d8] sm:$0xff]  ;;  %v6230_v14 = vld [vmem:[%s11665_s0 + $0x2c0] sm:$0xff]  ;;  %v6231_v16 = vld [vmem:[%s11665_s0 + $0x2c8] sm:$0xff]  ;;  %vm5233_vm3 = vcmask 80896   ;;  %vm5755_vm4 = vcmask 781312  }
  0x27   : > { %1016 = vmatprep.subr.mxu0 %v6187_v48  ;;  %6173 = vmatmul.mubr.msk.f32.gmra.mxu0 %vm788_vm2, %v787_v52  ;;  %v6229_v15 = vld [vmem:[%s11665_s0 + $0x2b8] sm:$0xff]  ;;  %v6227_v17 = vld [vmem:[%s11665_s0 + $0x2a8] sm:$0xff]  ;;  %v6226_v18 = vld [vmem:[%s11665_s0 + $0x2a0] sm:$0xff] }
  0x28   : > { %1017 = vmatpush1.msra.mxu0 %v6186_v50  ;;  %1058 = vmatprep.mubr.f32.mxu0 %v7224_v38  ;;  %v6228_v19 = vld [vmem:[%s11665_s0 + $0x2b0] sm:$0xff]  ;;  %v6223_v21 = vld [vmem:[%s11665_s0 + $0x288] sm:$0xff]  ;;  %v6225_v22 = vld [vmem:[%s11665_s0 + $0x298] sm:$0xff] }
  0x29   : > { %1018 = vmatprep.subr.mxu0 %v6185_v51  ;;  %1259 = vmatpush1.msra.mxu1 %v6241_v2  ;;  %v6224_v20 = vld [vmem:[%s11665_s0 + $0x290] sm:$0xff]  ;;  %v6221_v23 = vld [vmem:[%s11665_s0 + $0x278] sm:$0xff]  ;;  %v6222_v25 = vld [vmem:[%s11665_s0 + $0x280] sm:$0xff] }
  0x2a   : > { %1019 = vmatpush1.msra.mxu0 %v6184_v53  ;;  %1260 = vmatprep.subr.mxu1 %v6239_v4  ;;  %v6220_v24 = vld [vmem:[%s11665_s0 + $0x270] sm:$0xff]  ;;  %v6218_v26 = vld [vmem:[%s11665_s0 + $0x260] sm:$0xff]  ;;  %v6217_v27 = vld [vmem:[%s11665_s0 + $0x258] sm:$0xff] }
  0x2b   : > { %1020 = vmatprep.subr.mxu0 %v6183_v54  ;;  %1261 = vmatpush1.msra.mxu1 %v6238_v5  ;;  %v6219_v28 = vld [vmem:[%s11665_s0 + $0x268] sm:$0xff]  ;;  %v6214_v30 = vld [vmem:[%s11665_s0 + $0x240] sm:$0xff]  ;;  %v6216_v31 = vld [vmem:[%s11665_s0 + $0x250] sm:$0xff] }
  0x2c   : > { %1021 = vmatpush1.msra.mxu0 %v6182_v55  ;;  %1262 = vmatprep.subr.mxu1 %v6236_v7  ;;  %v6215_v29 = vld [vmem:[%s11665_s0 + $0x248] sm:$0xff]  ;;  %v6212_v32 = vld [vmem:[%s11665_s0 + $0x230] sm:$0xff]  ;;  %v6213_v34 = vld [vmem:[%s11665_s0 + $0x238] sm:$0xff] }
  0x2d   : > { %1022 = vmatprep.subr.mxu0 %v6181_v56  ;;  %1263 = vmatpush1.msra.mxu1 %v6235_v8  ;;  %v6211_v33 = vld [vmem:[%s11665_s0 + $0x228] sm:$0xff]  ;;  %v6209_v35 = vld [vmem:[%s11665_s0 + $0x218] sm:$0xff]  ;;  %v6208_v36 = vld [vmem:[%s11665_s0 + $0x210] sm:$0xff] }
  0x2e   : > { %1023 = vmatpush1.msra.mxu0 %v6180_v59  ;;  %1264 = vmatprep.subr.mxu1 %v6233_v10  ;;  %v6210_v37 = vld [vmem:[%s11665_s0 + $0x220] sm:$0xff]  ;;  %v6205_v40 = vld [vmem:[%s11665_s0 + $0x1f8] sm:$0xff]  ;;  %v6207_v41 = vld [vmem:[%s11665_s0 + $0x208] sm:$0xff]  ;;  %v7708_v59 = vshrl.u32 %v707_v11, 7 }
  0x2f   : > { %1024 = vmatprep.subr.mxu0 %v6179_v60  ;;  %1265 = vmatpush1.msra.mxu1 %v6232_v12  ;;  %v6206_v39 = vld [vmem:[%s11665_s0 + $0x200] sm:$0xff]  ;;  %v6203_v42 = vld [vmem:[%s11665_s0 + $0x1e8] sm:$0xff]  ;;  %v6204_v44 = vld [vmem:[%s11665_s0 + $0x1f0] sm:$0xff] }
  0x30   : > { %1025 = vmatpush1.msra.mxu0 %v6178_v61  ;;  %1266 = vmatprep.subr.mxu1 %v6230_v14  ;;  %v6202_v43 = vld [vmem:[%s11665_s0 + $0x1e0] sm:$0xff]  ;;  %v6200_v45 = vld [vmem:[%s11665_s0 + $0x1d0] sm:$0xff]  ;;  %v6199_v46 = vld [vmem:[%s11665_s0 + $0x1c8] sm:$0xff]  ;;  %v7711_v63 = vsub.s32 0, %v7708_v59  ;;  %v7717_v2 = vsub.s32 1, %v7708_v59 }
  0x31   : > { %6194 = vmatmul.mubr.msk.f32.vlgmr.msra.gmra.mxu0 %vm788_vm2, %v981_v62  ;;  %1335 = vmatprep.subr.mxu0 %v7224_v38  ;;  %v6201_v47 = vld [vmem:[%s11665_s0 + $0x1d8] sm:$0xff]  ;;  %v6196_v49 = vld [vmem:[%s11665_s0 + $0x1b0] sm:$0xff]  ;;  %v6198_v50 = vld [vmem:[%s11665_s0 + $0x1c0] sm:$0xff] }
  0x32   : > { %1064 = vmatprep.mubr.f32.mxu0 %v7224_v38  ;;  %1336 = vmatpush1.msra.mxu0 %v6243_v3  ;;  %v6197_v48 = vld [vmem:[%s11665_s0 + $0x1b8] sm:$0xff]  ;;  %v6248_v51 = vld [vmem:[%s11665_s0 + $0x350] sm:$0xff]  ;;  %v6247_v52 = vld [vmem:[%s11665_s0 + $0x348] sm:$0xff] }
  0x33   : > { %1337 = vmatprep.subr.mxu0 %v7224_v38  ;;  %1267 = vmatpush1.msra.mxu1 %v6229_v15  ;;  %v6249_v53 = vld [vmem:[%s11665_s0 + $0x358] sm:$0xff]  ;;  %v6244_v55 = vld [vmem:[%s11665_s0 + $0x330] sm:$0xff]  ;;  %v6246_v56 = vld [vmem:[%s11665_s0 + $0x340] sm:$0xff] }
  0x34   : > { %1338 = vmatpush1.msra.mxu0 %v6240_v6  ;;  %1268 = vmatprep.subr.mxu1 %v6227_v17  ;;  %v6245_v54 = vld [vmem:[%s11665_s0 + $0x338] sm:$0xff]  ;;  %v1173_v57 = vld [vmem:[%s11665_s0 + $0x170] sm:$0xff]  ;;  %v1075_v1 = vld [vmem:[%s11666_s23] sm:$0x3] }
  0x35   : > { %6195 = vmatmul.mubr.msk.f32.gmra.mxu0 %vm788_vm2, %v983_v0  ;;  %1339 = vmatprep.subr.mxu0 %v7224_v38  ;;  %v1080_v6 = vrot.slane %v1075_v1, %v7711_v63  ;;  %v1084_v10 = vrot.slane %v1075_v1, %v7717_v2  ;;  %vm723_vm2 = vcmp.lt.s32.totalorder %v707_v11, 160  ;;  %v6784_v11 = vld [vmem:[%s11633_s8 + $0x160] sm:$0xff] }
  0x36   : > { %1340 = vmatpush1.msra.mxu0 %v6237_v9  ;;  %1269 = vmatpush1.msra.mxu1 %v6226_v18  ;;  %725 = vst.msk [vmem:[#allocation4] ss:$8 sm:$0x3] %vm723_vm2, %v7224_v38  ;;  %728 = vst.msk [vmem:[#allocation4 + $0x11] ss:$8 sm:$0x3] %vm723_vm2, %v7224_v38 }
  0x37   : > { %1341 = vmatprep.subr.mxu0 %v7224_v38  ;;  %1270 = vmatprep.subr.mxu1 %v6224_v20  ;;  %730 = vst.msk [vmem:[#allocation5] ss:$8 sm:$0x3] %vm723_vm2, %v7224_v38  ;;  %733 = vst.msk [vmem:[#allocation5 + $0x11] ss:$8 sm:$0x3] %vm723_vm2, %v7224_v38 }
  0x38   : > { %1342 = vmatpush1.msra.mxu0 %v6234_v13  ;;  %1271 = vmatpush1.msra.mxu1 %v6223_v21 }
  0x39   : > { %1343 = vmatprep.subr.mxu0 %v7224_v38  ;;  %1272 = vmatprep.subr.mxu1 %v6221_v23 }
  0x3a   : > { %1344 = vmatpush1.msra.mxu0 %v6231_v16  ;;  %1273 = vmatpush1.msra.mxu1 %v6220_v24 }
  0x3b   : > { %1345 = vmatprep.subr.mxu0 %v7224_v38  ;;  %1274 = vmatprep.subr.mxu1 %v6218_v26 }
  0x3c   : > { %1346 = vmatpush1.msra.mxu0 %v6228_v19  ;;  %1275 = vmatpush1.msra.mxu1 %v6217_v27 }
  0x3d   : > { %1347 = vmatprep.subr.mxu0 %v7224_v38  ;;  %1276 = vmatprep.subr.mxu1 %v6215_v29 }
  0x3e   : > { %1348 = vmatpush1.msra.mxu0 %v6225_v22  ;;  %1277 = vmatpush1.msra.mxu1 %v6214_v30 }
  0x3f   : > { %1349 = vmatprep.subr.mxu0 %v7224_v38  ;;  %1278 = vmatprep.subr.mxu1 %v6212_v32 }
  0x40   : > { %1350 = vmatpush1.msra.mxu0 %v6222_v25  ;;  %1279 = vmatpush1.msra.mxu1 %v6211_v33 }
  0x41   : > { %1351 = vmatprep.subr.mxu0 %v7224_v38  ;;  %1280 = vmatprep.subr.mxu1 %v6209_v35 }
  0x42   : > { %1352 = vmatpush1.msra.mxu0 %v6219_v28  ;;  %1281 = vmatpush1.msra.mxu1 %v6208_v36 }
  0x43   : > { %1353 = vmatprep.subr.mxu0 %v7224_v38  ;;  %1282 = vmatprep.subr.mxu1 %v6206_v39 }
  0x44   : > { %1354 = vmatpush1.msra.mxu0 %v6216_v31  ;;  %1283 = vmatpush1.msra.mxu1 %v6205_v40 }
  0x45   : > { %1355 = vmatprep.subr.mxu0 %v7224_v38  ;;  %1284 = vmatprep.subr.mxu1 %v6203_v42 }
  0x46   : > { %1356 = vmatpush1.msra.mxu0 %v6213_v34  ;;  %1285 = vmatpush1.msra.mxu1 %v6202_v43 }
  0x47   : > { %1357 = vmatprep.subr.mxu0 %v7224_v38  ;;  %1286 = vmatprep.subr.mxu1 %v6200_v45 }
  0x48   : > { %1358 = vmatpush1.msra.mxu0 %v6210_v37  ;;  %1287 = vmatpush1.msra.mxu1 %v6199_v46 }
  0x49   : > { %1359 = vmatprep.subr.mxu0 %v7224_v38  ;;  %1288 = vmatprep.subr.mxu1 %v6197_v48 }
  0x4a   : > { %1360 = vmatpush1.msra.mxu0 %v6207_v41  ;;  %1289 = vmatpush1.msra.mxu1 %v6196_v49 }
  0x4b   : > { %1361 = vmatprep.subr.mxu0 %v7224_v38  ;;  %1318 = vmatprep.subr.mxu1 %v6248_v51 }
  0x4c   : > { %1362 = vmatpush1.msra.mxu0 %v6204_v44  ;;  %1319 = vmatpush2.msra.mxu1 %v6247_v52  ;;  %v1172_v52 = vld [vmem:[%s11665_s0 + $0x168] sm:$0xff] }
  0x4d   : > { %1363 = vmatprep.subr.mxu0 %v7224_v38  ;;  %1320 = vmatprep.subr.mxu1 %v6245_v54 }
  0x4e   : > { %1364 = vmatpush1.msra.mxu0 %v6201_v47  ;;  %1321 = vmatpush2.msra.mxu1 %v6244_v55  ;;  %v1170_v55 = vld [vmem:[%s11665_s0 + $0x158] sm:$0xff] }
  0x4f   : > { %1365 = vmatprep.subr.mxu0 %v7224_v38  ;;  %1414 = vmatprep.subr.mxu1 %v1173_v57  ;;  %v1169_v57 = vld [vmem:[%s11665_s0 + $0x150] sm:$0xff] }
  0x50   : > { %1366 = vmatpush1.msra.mxu0 %v6198_v50 }
  0x51   : > { %1395 = vmatprep.subr.mxu0 %v7224_v38 }
  0x52   : > { %1396 = vmatpush2.msra.mxu0 %v6249_v53  ;;  %v1174_v53 = vld [vmem:[%s11665_s0 + $0x178] sm:$0xff] }
  0x53   : > { %1397 = vmatprep.subr.mxu0 %v7224_v38 }
  0x54   : > { %1398 = vmatpush2.msra.mxu0 %v6246_v56 }
  0x55   : > { %1491 = vmatprep.subr.mxu0 %v7224_v38 }
  0xe2   : > { %v953_v60 = vpop.f32.mrf.mxu1 }
  0xe3   : > { %v866_v58 = vpop.f32.mrf.mxu0 }
  0xe4   : > { %v955_v0 = vpop.f32.mrf.mxu1  ;;  %v954_v5 = vadd.f32 %v953_v60, %v866_v58  ;;  %v1171_v58 = vld [vmem:[%s11665_s0 + $0x160] sm:$0xff] }
  0xe5   : > { %v868_v61 = vpop.f32.mrf.mxu0 }
  0xe6   : > { %v959_v3 = vpop.f32.mrf.mxu1  ;;  %v956_v8 = vadd.f32 %v955_v0, %v868_v61  ;;  %v1167_v61 = vld [vmem:[%s11665_s0 + $0x140] sm:$0xff]  ;;  %v1168_v0 = vld [vmem:[%s11665_s0 + $0x148] sm:$0xff] }
  0xe7   : > { %v872_v62 = vpop.f32.mrf.mxu0 }
  0xe8   : > { %v961_v12 = vpop.f32.mrf.mxu1  ;;  %v960_v14 = vadd.f32 %v959_v3, %v872_v62  ;;  %v1166_v62 = vld [vmem:[%s11665_s0 + $0x138] sm:$0xff]  ;;  %v1164_v3 = vld [vmem:[%s11665_s0 + $0x128] sm:$0xff] }
  0xe9   : > { %v874_v4 = vpop.f32.mrf.mxu0 }
  0xea   : > { %v962_v18 = vadd.f32 %v961_v12, %v874_v4  ;;  %v1163_v4 = vld [vmem:[%s11665_s0 + $0x120] sm:$0xff] }
  0xeb   : > { %v1159_v12 = vld [vmem:[%s11665_s0 + $0x100] sm:$0xff] }
  0xf1   : > { %v1060_v7 = vpop.f32.mrf.mxu0 }
  0xf2   : > { %v1071_v9 = vadd.f32 %v1060_v7, %v954_v5  ;;  %v1165_v5 = vld [vmem:[%s11665_s0 + $0x130] sm:$0xff]  ;;  %v1160_v7 = vld [vmem:[%s11665_s0 + $0x108] sm:$0xff] }
  0xf3   : > { %v1062_v13 = vpop.f32.mrf.mxu0 }
  0xf4   : > { %v1087_v15 = vadd.f32 %v1080_v6, %v1071_v9  ;;  %v1072_v16 = vadd.f32 %v1062_v13, %v956_v8  ;;  %v1162_v8 = vld [vmem:[%s11665_s0 + $0x118] sm:$0xff]  ;;  %v1155_v13 = vld [vmem:[%s11665_s0 + $0xe0] sm:$0xff] }
  0xf5   : > { %v1066_v17 = vpop.f32.mrf.mxu0  ;;  %v1158_v9 = vld [vmem:[%s11665_s0 + $0xf8] sm:$0xff] }
  0xf6   : > { %v1091_v19 = vmax.f32 %v1087_v15, 0.0  ;;  %v1088_v20 = vadd.f32 %v1084_v10, %v1072_v16  ;;  %v1073_v21 = vadd.f32 %v1066_v17, %v960_v14  ;;  %v1154_v14 = vld [vmem:[%s11665_s0 + $0xd8] sm:$0xff]  ;;  %v1156_v15 = vld [vmem:[%s11665_s0 + $0xe8] sm:$0xff]  ;;  %v1151_v17 = vld [vmem:[%s11665_s0 + $0xc0] sm:$0xff] }
  0xf7   : > { %v1068_v22 = vpop.f32.mrf.mxu0  ;;  %v1152_v16 = vld [vmem:[%s11665_s0 + $0xc8] sm:$0xff] }
  0xf8   : > { %v1100_v23 = vrot.slane %v1091_v19, 7  ;;  %v1092_v24 = vmax.f32 %v1088_v20, 0.0  ;;  %v1089_v25 = vadd.f32 %v1080_v6, %v1073_v21  ;;  %v1074_v26 = vadd.f32 %v1068_v22, %v962_v18  ;;  %v1161_v6 = vld [vmem:[%s11665_s0 + $0x110] sm:$0xff]  ;;  %v1148_v20 = vld [vmem:[%s11665_s0 + $0xa8] sm:$0xff]  ;;  %v1150_v21 = vld [vmem:[%s11665_s0 + $0xb8] sm:$0xff] }
  0xf9   : > { %v1153_v18 = vld [vmem:[%s11665_s0 + $0xd0] sm:$0xff]  ;;  %v1146_v22 = vld [vmem:[%s11665_s0 + $0x98] sm:$0xff] }
  0xfa   : > { %1112 = vst [vmem:[#allocation2] sm:$0xfe] %v1100_v23  ;;  %v1101_v27 = vrot.slane %v1092_v24, 7  ;;  %v1093_v28 = vmax.f32 %v1089_v25, 0.0  ;;  %v1090_v29 = vadd.f32 %v1084_v10, %v1074_v26  ;;  %v1157_v10 = vld [vmem:[%s11665_s0 + $0xf0] sm:$0xff]  ;;  %v1147_v24 = vld [vmem:[%s11665_s0 + $0xa0] sm:$0xff] }
  0xfb   : > { %v1149_v19 = vld [vmem:[%s11665_s0 + $0xb0] sm:$0xff]  ;;  %v1143_v25 = vld [vmem:[%s11665_s0 + $0x80] sm:$0xff]  ;;  %v1142_v26 = vld [vmem:[%s11665_s0 + $0x78] sm:$0xff] }
  0xfc   : > { %1114 = vst.msk [vmem:[#allocation2 + $0x8] sm:$0xfe] %vm1113_vm5, %v1101_v27  ;;  %v1102_v30 = vrot.slane %v1093_v28, 7  ;;  %v1094_v31 = vmax.f32 %v1090_v29, 0.0  ;;  %v1140_v28 = vld [vmem:[%s11665_s0 + $0x68] sm:$0xff]  ;;  %v1139_v29 = vld [vmem:[%s11665_s0 + $0x60] sm:$0xff] }
  0xfd   : > { %vm6024_vm5 = vcmask 912384  }
  0xfe   : > { %v7722_v32 = vsel %vm1099_vm6, %v1100_v23, %v1102_v30  ;;  %1118 = vst [vmem:[#allocation2 + $0x20] sm:$0x1] %v1102_v30  ;;  %v1104_v33 = vrot.slane %v1094_v31, 7  ;;  %v1145_v23 = vld [vmem:[%s11665_s0 + $0x90] sm:$0xff] }
  0xff   : > { %v1622_v37 = vrot.slane %v7722_v32, 2  ;;  %v1243_v49 = vrot.slane %v7722_v32, 1  ;;  %v1141_v30 = vld [vmem:[%s11665_s0 + $0x70] sm:$0xff] }
 0x100   : > { %v1105_v34 = vsel %vm1099_vm6, %v1101_v27, %v1104_v33  ;;  %1120 = vst.msk [vmem:[#allocation2 + $0x28] sm:$0x1] %vm1119_vm7, %v1104_v33  ;;  %v1144_v27 = vld [vmem:[%s11665_s0 + $0x88] sm:$0xff]  ;;  %v1137_v31 = vld [vmem:[%s11665_s0 + $0x50] sm:$0xff] }
 0x101   : > { %1117 = vst.msk [vmem:[#allocation2 + $0x18] sm:$0xff] %vm1116_vm8, %v1105_v34  ;;  %v7726_v35 = vld [vmem:[#allocation2] sm:$0xff]  ;;  %v1136_v33 = vld [vmem:[%s11665_s0 + $0x48] sm:$0xff]  ;;  %v1138_v34 = vld [vmem:[%s11665_s0 + $0x58] sm:$0xff] }
 0x102   : > { %v1621_v36 = vrot.slane %v7726_v35, 2  ;;  %v1242_v45 = vrot.slane %v7726_v35, 1 }
 0x103   : > { %v7733_v41 = vld [vmem:[#allocation2 + $0x8] sm:$0xff] }
 0x104   : > { %v7731_v39 = vsel %vm793_vm0, %v1621_v36, %v1622_v37  ;;  %v1245_v47 = vrot.slane %v7733_v41, 1  ;;  %v1244_v54 = vsel %vm782_vm1, %v1242_v45, %v1243_v49  ;;  %v1134_v36 = vld [vmem:[%s11665_s0 + $0x38] sm:$0xff] }
 0x105   : > { %v1125_v40 = vld [vmem:[#allocation2 + $0x20] sm:$0x3]  ;;  %v1130_v45 = vld [vmem:[%s11665_s0 + $0x18] sm:$0xff] }
 0x106   : > { %v1627_v42 = vrot.slane %v1125_v40, 2  ;;  %v1248_v60 = vrot.slane %v1125_v40, 1  ;;  %v1135_v40 = vld [vmem:[%s11665_s0 + $0x40] sm:$0xff] }
 0x107   : > { %v7735_v43 = vld [vmem:[#allocation2 + $0x28] sm:$0x3] }
 0x108   : > { %v7737_v44 = vld [vmem:[#allocation2 + $0x18] sm:$0xff]  ;;  %v7741_v46 = vsel %vm793_vm0, %v1622_v37, %v1627_v42  ;;  %v1250_v50 = vrot.slane %v7735_v43, 1  ;;  %v1249_v1 = vsel %vm782_vm1, %v1243_v49, %v1248_v60  ;;  %v1133_v37 = vld [vmem:[%s11665_s0 + $0x30] sm:$0xff]  ;;  %v1131_v42 = vld [vmem:[%s11665_s0 + $0x20] sm:$0xff] }
 0x109   : > { %v1246_v48 = vrot.slane %v7737_v44, 1  ;;  %v1127_v49 = vld [vmem:[%s11665_s0] sm:$0xff]  ;;  %v6305_v60 = vld [vmem:[%s11665_s0 + $0x4d8] sm:$0xff] }
 0x10b   : > { %v1247_v51 = vsel %vm782_vm1, %v1245_v47, %v1246_v48  ;;  %v1251_v56 = vsel %vm782_vm1, %v1246_v48, %v1250_v50  ;;  %v1132_v47 = vld [vmem:[%s11665_s0 + $0x28] sm:$0xff]  ;;  %v1129_v50 = vld [vmem:[%s11665_s0 + $0x10] sm:$0xff] }
 0x10c   : > { %6250 = vmatprep.mubr.msk.f32.mxu1 %vm1116_vm8, %v1247_v51  ;;  %6252 = vmatprep.mubr.msk.f32.mxu0 %vm1116_vm8, %v1247_v51  ;;  %v1128_v48 = vld [vmem:[%s11665_s0 + $0x8] sm:$0xff]  ;;  %v1179_v51 = vld [vmem:[%s11665_s0 + $0x1a0] sm:$0xff] }
 0x10d   : > { %1323 = vmatmul.mubr.f32.vlgmr.msra.gmra.mxu1 %v1244_v54  ;;  %1400 = vmatmul.mubr.f32.vlgmr.msra.gmra.mxu0 %v1244_v54  ;;  %v1176_v54 = vld [vmem:[%s11665_s0 + $0x188] sm:$0xff] }
 0x10e   : > { %1415 = vmatpush1.msra.mxu1 %v1172_v52  ;;  %1492 = vmatpush1.msra.mxu0 %v1174_v53  ;;  %v1178_v52 = vld [vmem:[%s11665_s0 + $0x198] sm:$0xff]  ;;  %v1180_v53 = vld [vmem:[%s11665_s0 + $0x1a8] sm:$0xff] }
 0x10f   : > { %6251 = vmatprep.mubr.msk.f32.mxu1 %vm1116_vm8, %v1251_v56  ;;  %6253 = vmatprep.mubr.msk.f32.mxu0 %vm1116_vm8, %v1251_v56  ;;  %v1177_v56 = vld [vmem:[%s11665_s0 + $0x190] sm:$0xff] }
 0x110   : > { %1416 = vmatprep.subr.mxu1 %v1170_v55  ;;  %1493 = vmatprep.subr.mxu0 %v7224_v38  ;;  %v1175_v55 = vld [vmem:[%s11665_s0 + $0x180] sm:$0xff] }
 0x111   : > { %1417 = vmatpush1.msra.mxu1 %v1169_v57  ;;  %1494 = vmatpush1.msra.mxu0 %v1171_v58  ;;  %v6304_v57 = vld [vmem:[%s11665_s0 + $0x4d0] sm:$0xff]  ;;  %v6303_v58 = vld [vmem:[%s11665_s0 + $0x4c8] sm:$0xff] }
 0x112   : > { %1418 = vmatprep.subr.mxu1 %v1167_v61  ;;  %1495 = vmatprep.subr.mxu0 %v7224_v38  ;;  %v6301_v61 = vld [vmem:[%s11665_s0 + $0x4b8] sm:$0xff] }
 0x113   : > { %1329 = vmatmul.mubr.f32.gmra.mxu1 %v1249_v1  ;;  %1405 = vmatmul.mubr.f32.gmra.mxu0 %v1249_v1  ;;  %v6298_v1 = vld [vmem:[%s11665_s0 + $0x4a0] sm:$0xff] }
 0x114   : > { %1419 = vmatpush1.msra.mxu1 %v1166_v62  ;;  %1496 = vmatpush1.msra.mxu0 %v1168_v0  ;;  %v6302_v62 = vld [vmem:[%s11665_s0 + $0x4c0] sm:$0xff]  ;;  %v1625_v0 = vrot.slane %v7737_v44, 2 }
 0x115   : > { %1420 = vmatprep.subr.mxu1 %v1164_v3  ;;  %6254 = vmatprep.mubr.msk.f32.mxu1 %vm1116_vm8, %v7733_v41  ;;  %v6297_v3 = vld [vmem:[%s11665_s0 + $0x498] sm:$0xff] }
 0x116   : > { %1497 = vmatprep.subr.mxu0 %v7224_v38  ;;  %6256 = vmatprep.mubr.msk.f32.mxu0 %vm1116_vm8, %v7733_v41 }
 0x117   : > { %1421 = vmatpush1.msra.mxu1 %v1163_v4  ;;  %1498 = vmatpush1.msra.mxu0 %v1165_v5  ;;  %v1624_v4 = vrot.slane %v7733_v41, 2  ;;  %v6299_v5 = vld [vmem:[%s11665_s0 + $0x4a8] sm:$0xff]  ;;  %v6296_v41 = vld [vmem:[%s11665_s0 + $0x490] sm:$0xff] }
 0x118   : > { %1422 = vmatprep.subr.mxu1 %v1161_v6  ;;  %1499 = vmatprep.subr.mxu0 %v7224_v38 }
 0x119   : > { %1423 = vmatpush1.msra.mxu1 %v1160_v7  ;;  %1500 = vmatpush1.msra.mxu0 %v1162_v8  ;;  %v1626_v6 = vsel %vm793_vm0, %v1624_v4, %v1625_v0  ;;  %v6295_v7 = vld [vmem:[%s11665_s0 + $0x488] sm:$0xff]  ;;  %v6292_v8 = vld [vmem:[%s11665_s0 + $0x470] sm:$0xff]  ;;  %v6360_v4 = vld [vmem:[%s11637_s12 + $0x5e0] sm:$0xff] }
 0x11a   : > { %1424 = vmatprep.subr.mxu1 %v1158_v9  ;;  %1501 = vmatprep.subr.mxu0 %v7224_v38  ;;  %v6291_v9 = vld [vmem:[%s11665_s0 + $0x468] sm:$0xff] }
 0x11b   : > { %1425 = vmatpush1.msra.mxu1 %v1157_v10  ;;  %1502 = vmatpush1.msra.mxu0 %v1159_v12  ;;  %v6293_v10 = vld [vmem:[%s11665_s0 + $0x478] sm:$0xff] }
 0x11c   : > { %1426 = vmatprep.subr.mxu1 %v1155_v13  ;;  %1503 = vmatprep.subr.mxu0 %v7224_v38  ;;  %v6289_v12 = vld [vmem:[%s11665_s0 + $0x458] sm:$0xff]  ;;  %v6288_v13 = vld [vmem:[%s11665_s0 + $0x450] sm:$0xff] }
 0x11d   : > { %1427 = vmatpush1.msra.mxu1 %v1154_v14  ;;  %1504 = vmatpush1.msra.mxu0 %v1156_v15  ;;  %v6290_v14 = vld [vmem:[%s11665_s0 + $0x460] sm:$0xff] }
 0x11e   : > { %1428 = vmatprep.subr.mxu1 %v1152_v16  ;;  %1505 = vmatprep.subr.mxu0 %v7224_v38  ;;  %v6286_v15 = vld [vmem:[%s11665_s0 + $0x440] sm:$0xff]  ;;  %v6285_v16 = vld [vmem:[%s11665_s0 + $0x438] sm:$0xff] }
 0x11f   : > { %1429 = vmatpush1.msra.mxu1 %v1151_v17  ;;  %1506 = vmatpush1.msra.mxu0 %v1153_v18  ;;  %v6287_v17 = vld [vmem:[%s11665_s0 + $0x448] sm:$0xff] }
 0x120   : > { %1430 = vmatprep.subr.mxu1 %v1149_v19  ;;  %1507 = vmatprep.subr.mxu0 %v7224_v38  ;;  %v6283_v18 = vld [vmem:[%s11665_s0 + $0x428] sm:$0xff]  ;;  %v6282_v19 = vld [vmem:[%s11665_s0 + $0x420] sm:$0xff] }
 0x121   : > { %1431 = vmatpush1.msra.mxu1 %v1148_v20  ;;  %1508 = vmatpush1.msra.mxu0 %v1150_v21  ;;  %v6284_v20 = vld [vmem:[%s11665_s0 + $0x430] sm:$0xff] }
 0x122   : > { %1432 = vmatprep.subr.mxu1 %v1146_v22  ;;  %1509 = vmatprep.subr.mxu0 %v7224_v38  ;;  %v6280_v21 = vld [vmem:[%s11665_s0 + $0x410] sm:$0xff]  ;;  %v6279_v22 = vld [vmem:[%s11665_s0 + $0x408] sm:$0xff] }
 0x123   : > { %1433 = vmatpush1.msra.mxu1 %v1145_v23  ;;  %1510 = vmatpush1.msra.mxu0 %v1147_v24  ;;  %v6281_v23 = vld [vmem:[%s11665_s0 + $0x418] sm:$0xff] }
 0x124   : > { %1434 = vmatprep.subr.mxu1 %v1143_v25  ;;  %1511 = vmatprep.subr.mxu0 %v7224_v38  ;;  %v6277_v24 = vld [vmem:[%s11665_s0 + $0x3f8] sm:$0xff]  ;;  %v6276_v25 = vld [vmem:[%s11665_s0 + $0x3f0] sm:$0xff] }
 0x125   : > { %1435 = vmatpush1.msra.mxu1 %v1142_v26  ;;  %1512 = vmatpush1.msra.mxu0 %v1144_v27  ;;  %v6278_v26 = vld [vmem:[%s11665_s0 + $0x400] sm:$0xff] }
 0x126   : > { %1436 = vmatprep.subr.mxu1 %v1140_v28  ;;  %1513 = vmatprep.subr.mxu0 %v7224_v38  ;;  %v6274_v27 = vld [vmem:[%s11665_s0 + $0x3e0] sm:$0xff]  ;;  %v6273_v28 = vld [vmem:[%s11665_s0 + $0x3d8] sm:$0xff] }
 0x127   : > { %1437 = vmatpush1.msra.mxu1 %v1139_v29  ;;  %1514 = vmatpush1.msra.mxu0 %v1141_v30  ;;  %v6275_v29 = vld [vmem:[%s11665_s0 + $0x3e8] sm:$0xff] }
 0x128   : > { %1438 = vmatprep.subr.mxu1 %v1137_v31  ;;  %1515 = vmatprep.subr.mxu0 %v7224_v38  ;;  %v6271_v30 = vld [vmem:[%s11665_s0 + $0x3c8] sm:$0xff]  ;;  %v6270_v31 = vld [vmem:[%s11665_s0 + $0x3c0] sm:$0xff] }
 0x129   : > { %1439 = vmatpush1.msra.mxu1 %v1136_v33  ;;  %1516 = vmatpush1.msra.mxu0 %v1138_v34  ;;  %v6272_v33 = vld [vmem:[%s11665_s0 + $0x3d0] sm:$0xff] }
 0x12a   : > { %1440 = vmatprep.subr.mxu1 %v1134_v36  ;;  %1517 = vmatprep.subr.mxu0 %v7224_v38  ;;  %v6268_v34 = vld [vmem:[%s11665_s0 + $0x3b0] sm:$0xff]  ;;  %v6267_v36 = vld [vmem:[%s11665_s0 + $0x3a8] sm:$0xff] }
 0x12b   : > { %1441 = vmatpush1.msra.mxu1 %v1133_v37  ;;  %1518 = vmatpush1.msra.mxu0 %v1135_v40  ;;  %v6269_v37 = vld [vmem:[%s11665_s0 + $0x3b8] sm:$0xff] }
 0x12c   : > { %1442 = vmatprep.subr.mxu1 %v1131_v42  ;;  %1519 = vmatprep.subr.mxu0 %v7224_v38  ;;  %v6265_v40 = vld [vmem:[%s11665_s0 + $0x398] sm:$0xff]  ;;  %v6264_v42 = vld [vmem:[%s11665_s0 + $0x390] sm:$0xff] }
 0x12d   : > { %1443 = vmatpush1.msra.mxu1 %v1130_v45  ;;  %1520 = vmatpush1.msra.mxu0 %v1132_v47  ;;  %v6266_v45 = vld [vmem:[%s11665_s0 + $0x3a0] sm:$0xff] }
 0x12e   : > { %1444 = vmatprep.subr.mxu1 %v1128_v48  ;;  %1521 = vmatprep.subr.mxu0 %v7224_v38  ;;  %v6262_v47 = vld [vmem:[%s11665_s0 + $0x380] sm:$0xff]  ;;  %v6261_v48 = vld [vmem:[%s11665_s0 + $0x378] sm:$0xff] }
 0x12f   : > { %1445 = vmatpush1.msra.mxu1 %v1127_v49  ;;  %1522 = vmatpush1.msra.mxu0 %v1129_v50  ;;  %v6263_v49 = vld [vmem:[%s11665_s0 + $0x388] sm:$0xff] }
 0x130   : > { %1474 = vmatprep.subr.mxu1 %v1179_v51  ;;  %1551 = vmatprep.subr.mxu0 %v7224_v38  ;;  %v6259_v50 = vld [vmem:[%s11665_s0 + $0x368] sm:$0xff]  ;;  %v6258_v51 = vld [vmem:[%s11665_s0 + $0x360] sm:$0xff] }
 0x131   : > { %1475 = vmatpush2.msra.mxu1 %v1178_v52  ;;  %1552 = vmatpush2.msra.mxu0 %v1180_v53  ;;  %v6260_v52 = vld [vmem:[%s11665_s0 + $0x370] sm:$0xff]  ;;  %v6310_v53 = vld [vmem:[%s11665_s0 + $0x500] sm:$0xff] }
 0x132   : > { %1476 = vmatprep.subr.mxu1 %v1176_v54  ;;  %1553 = vmatprep.subr.mxu0 %v7224_v38  ;;  %v6309_v54 = vld [vmem:[%s11665_s0 + $0x4f8] sm:$0xff] }
 0x133   : > { %1477 = vmatpush2.msra.mxu1 %v1175_v55  ;;  %1554 = vmatpush2.msra.mxu0 %v1177_v56  ;;  %v6311_v55 = vld [vmem:[%s11665_s0 + $0x508] sm:$0xff] }
 0x134   : > { %1479 = vmatmul.mubr.f32.vlgmr.msra.gmra.mxu1 %v7726_v35  ;;  %1556 = vmatmul.mubr.f32.vlgmr.msra.gmra.mxu0 %v7726_v35  ;;  %v6300_v35 = vld [vmem:[%s11665_s0 + $0x4b0] sm:$0xff]  ;;  %v6307_v56 = vld [vmem:[%s11665_s0 + $0x4e8] sm:$0xff] }
 0x135   : > { %1637 = vmatprep.subr.mxu1 %v6304_v57  ;;  %1714 = vmatprep.subr.mxu0 %v7224_v38  ;;  %v6306_v57 = vld [vmem:[%s11665_s0 + $0x4e0] sm:$0xff] }
 0x136   : > { %6255 = vmatprep.mubr.msk.f32.mxu1 %vm1116_vm8, %v7737_v44  ;;  %6257 = vmatprep.mubr.msk.f32.mxu0 %vm1116_vm8, %v7737_v44  ;;  %v6372_v44 = vld [vmem:[%s11637_s12 + $0x640] sm:$0xff] }
 0x137   : > { %1638 = vmatpush1.msra.mxu1 %v6303_v58  ;;  %1715 = vmatpush1.msra.mxu0 %v6305_v60  ;;  %v6308_v58 = vld [vmem:[%s11665_s0 + $0x4f0] sm:$0xff]  ;;  %v1629_v60 = vrot.slane %v7735_v43, 2  ;;  %v6376_v43 = vld [vmem:[%s11637_s12 + $0x660] sm:$0xff] }
 0x138   : > { %1639 = vmatprep.subr.mxu1 %v6301_v61  ;;  %1716 = vmatprep.subr.mxu0 %v7224_v38  ;;  %v6377_v61 = vld [vmem:[%s11637_s12 + $0x668] sm:$0xff] }
 0x139   : > { %1640 = vmatpush1.msra.mxu1 %v6300_v35  ;;  %1717 = vmatpush1.msra.mxu0 %v6302_v62  ;;  %v1630_v35 = vsel %vm793_vm0, %v1625_v0, %v1629_v60  ;;  %v6368_v62 = vld [vmem:[%s11637_s12 + $0x620] sm:$0xff]  ;;  %v6365_v0 = vld [vmem:[%s11637_s12 + $0x608] sm:$0xff] }
 0x13a   : > { %1485 = vmatmul.mubr.f32.gmra.mxu1 %v7722_v32  ;;  %1561 = vmatmul.mubr.f32.gmra.mxu0 %v7722_v32  ;;  %v6294_v32 = vld [vmem:[%s11665_s0 + $0x480] sm:$0xff] }
 0x13b   : > { %1641 = vmatprep.subr.mxu1 %v6298_v1  ;;  %1718 = vmatprep.subr.mxu0 %v7224_v38  ;;  %v6364_v1 = vld [vmem:[%s11637_s12 + $0x600] sm:$0xff] }
 0x13c   : > { %1642 = vmatpush1.msra.mxu1 %v6297_v3  ;;  %6312 = vmatprep.mubr.msk.f32.mxu1 %vm1116_vm8, %v1626_v6  ;;  %v6361_v3 = vld [vmem:[%s11637_s12 + $0x5e8] sm:$0xff]  ;;  %v6392_v60 = vld [vmem:[%s11637_s12 + $0x6e0] sm:$0xff] }
 0x13d   : > { %1719 = vmatpush1.msra.mxu0 %v6299_v5  ;;  %6314 = vmatprep.mubr.msk.f32.mxu0 %vm1116_vm8, %v1626_v6  ;;  %v6357_v5 = vld [vmem:[%s11637_s12 + $0x5c8] sm:$0xff]  ;;  %v6356_v6 = vld [vmem:[%s11637_s12 + $0x5c0] sm:$0xff] }
 0x13e   : > { %1643 = vmatprep.subr.mxu1 %v6295_v7  ;;  %1720 = vmatprep.subr.mxu0 %v7224_v38  ;;  %v6353_v7 = vld [vmem:[%s11637_s12 + $0x5a8] sm:$0xff] }
 0x13f   : > { %1644 = vmatpush1.msra.mxu1 %v6294_v32  ;;  %1721 = vmatpush1.msra.mxu0 %v6296_v41  ;;  %v6352_v32 = vld [vmem:[%s11637_s12 + $0x5a0] sm:$0xff]  ;;  %v6349_v41 = vld [vmem:[%s11637_s12 + $0x588] sm:$0xff] }
 0x140   : > { %1645 = vmatprep.subr.mxu1 %v6292_v8  ;;  %1722 = vmatprep.subr.mxu0 %v7224_v38  ;;  %v6348_v8 = vld [vmem:[%s11637_s12 + $0x580] sm:$0xff] }
 0x141   : > { %1646 = vmatpush1.msra.mxu1 %v6291_v9  ;;  %1723 = vmatpush1.msra.mxu0 %v6293_v10  ;;  %v6345_v9 = vld [vmem:[%s11637_s12 + $0x568] sm:$0xff]  ;;  %v6344_v10 = vld [vmem:[%s11637_s12 + $0x560] sm:$0xff] }
 0x142   : > { %1647 = vmatprep.subr.mxu1 %v6289_v12  ;;  %1724 = vmatprep.subr.mxu0 %v7224_v38  ;;  %v6341_v12 = vld [vmem:[%s11637_s12 + $0x548] sm:$0xff] }
 0x143   : > { %1648 = vmatpush1.msra.mxu1 %v6288_v13  ;;  %1725 = vmatpush1.msra.mxu0 %v6290_v14  ;;  %v6340_v13 = vld [vmem:[%s11637_s12 + $0x540] sm:$0xff]  ;;  %v6337_v14 = vld [vmem:[%s11637_s12 + $0x528] sm:$0xff] }
 0x144   : > { %1649 = vmatprep.subr.mxu1 %v6286_v15  ;;  %1726 = vmatprep.subr.mxu0 %v7224_v38  ;;  %v6336_v15 = vld [vmem:[%s11637_s12 + $0x520] sm:$0xff] }
 0x145   : > { %1650 = vmatpush1.msra.mxu1 %v6285_v16  ;;  %1727 = vmatpush1.msra.mxu0 %v6287_v17  ;;  %v6333_v16 = vld [vmem:[%s11637_s12 + $0x508] sm:$0xff]  ;;  %v6332_v17 = vld [vmem:[%s11637_s12 + $0x500] sm:$0xff] }
 0x146   : > { %1651 = vmatprep.subr.mxu1 %v6283_v18  ;;  %1728 = vmatprep.subr.mxu0 %v7224_v38  ;;  %v6329_v18 = vld [vmem:[%s11637_s12 + $0x4e8] sm:$0xff] }
 0x147   : > { %1652 = vmatpush1.msra.mxu1 %v6282_v19  ;;  %1729 = vmatpush1.msra.mxu0 %v6284_v20  ;;  %v6328_v19 = vld [vmem:[%s11637_s12 + $0x4e0] sm:$0xff]  ;;  %v6325_v20 = vld [vmem:[%s11637_s12 + $0x4c8] sm:$0xff] }
 0x148   : > { %1653 = vmatprep.subr.mxu1 %v6280_v21  ;;  %1730 = vmatprep.subr.mxu0 %v7224_v38  ;;  %v6324_v21 = vld [vmem:[%s11637_s12 + $0x4c0] sm:$0xff] }
 0x149   : > { %1654 = vmatpush1.msra.mxu1 %v6279_v22  ;;  %1731 = vmatpush1.msra.mxu0 %v6281_v23  ;;  %v6321_v22 = vld [vmem:[%s11637_s12 + $0x4a8] sm:$0xff]  ;;  %v6320_v23 = vld [vmem:[%s11637_s12 + $0x4a0] sm:$0xff] }
 0x14a   : > { %1655 = vmatprep.subr.mxu1 %v6277_v24  ;;  %1732 = vmatprep.subr.mxu0 %v7224_v38  ;;  %v6317_v24 = vld [vmem:[%s11637_s12 + $0x488] sm:$0xff] }
 0x14b   : > { %1656 = vmatpush1.msra.mxu1 %v6276_v25  ;;  %1733 = vmatpush1.msra.mxu0 %v6278_v26  ;;  %v6316_v25 = vld [vmem:[%s11637_s12 + $0x480] sm:$0xff]  ;;  %v6441_v26 = vld [vmem:[%s11637_s12 + $0x868] sm:$0xff] }
 0x14c   : > { %1657 = vmatprep.subr.mxu1 %v6274_v27  ;;  %1734 = vmatprep.subr.mxu0 %v7224_v38  ;;  %v6440_v27 = vld [vmem:[%s11637_s12 + $0x860] sm:$0xff] }
 0x14d   : > { %1658 = vmatpush1.msra.mxu1 %v6273_v28  ;;  %1735 = vmatpush1.msra.mxu0 %v6275_v29  ;;  %v6437_v28 = vld [vmem:[%s11637_s12 + $0x848] sm:$0xff]  ;;  %v6436_v29 = vld [vmem:[%s11637_s12 + $0x840] sm:$0xff] }
 0x14e   : > { %1659 = vmatprep.subr.mxu1 %v6271_v30  ;;  %1736 = vmatprep.subr.mxu0 %v7224_v38  ;;  %v6433_v30 = vld [vmem:[%s11637_s12 + $0x828] sm:$0xff] }
 0x14f   : > { %1660 = vmatpush1.msra.mxu1 %v6270_v31  ;;  %1737 = vmatpush1.msra.mxu0 %v6272_v33  ;;  %v6432_v31 = vld [vmem:[%s11637_s12 + $0x820] sm:$0xff]  ;;  %v6429_v33 = vld [vmem:[%s11637_s12 + $0x808] sm:$0xff] }
 0x150   : > { %1661 = vmatprep.subr.mxu1 %v6268_v34  ;;  %1738 = vmatprep.subr.mxu0 %v7224_v38  ;;  %v6428_v34 = vld [vmem:[%s11637_s12 + $0x800] sm:$0xff] }
 0x151   : > { %1662 = vmatpush1.msra.mxu1 %v6267_v36  ;;  %1739 = vmatpush1.msra.mxu0 %v6269_v37  ;;  %v6425_v36 = vld [vmem:[%s11637_s12 + $0x7e8] sm:$0xff]  ;;  %v6424_v37 = vld [vmem:[%s11637_s12 + $0x7e0] sm:$0xff] }
 0x152   : > { %1663 = vmatprep.subr.mxu1 %v6265_v40  ;;  %1740 = vmatprep.subr.mxu0 %v7224_v38  ;;  %v6421_v40 = vld [vmem:[%s11637_s12 + $0x7c8] sm:$0xff] }
 0x153   : > { %1664 = vmatpush1.msra.mxu1 %v6264_v42  ;;  %1741 = vmatpush1.msra.mxu0 %v6266_v45  ;;  %v6420_v42 = vld [vmem:[%s11637_s12 + $0x7c0] sm:$0xff]  ;;  %v6417_v45 = vld [vmem:[%s11637_s12 + $0x7a8] sm:$0xff] }
 0x154   : > { %1665 = vmatprep.subr.mxu1 %v6262_v47  ;;  %1742 = vmatprep.subr.mxu0 %v7224_v38  ;;  %v6416_v47 = vld [vmem:[%s11637_s12 + $0x7a0] sm:$0xff] }
 0x155   : > { %1666 = vmatpush1.msra.mxu1 %v6261_v48  ;;  %1743 = vmatpush1.msra.mxu0 %v6263_v49  ;;  %v6413_v48 = vld [vmem:[%s11637_s12 + $0x788] sm:$0xff]  ;;  %v6412_v49 = vld [vmem:[%s11637_s12 + $0x780] sm:$0xff] }
 0x156   : > { %1667 = vmatprep.subr.mxu1 %v6259_v50  ;;  %1744 = vmatprep.subr.mxu0 %v7224_v38  ;;  %v6409_v50 = vld [vmem:[%s11637_s12 + $0x768] sm:$0xff] }
 0x157   : > { %1668 = vmatpush1.msra.mxu1 %v6258_v51  ;;  %1745 = vmatpush1.msra.mxu0 %v6260_v52  ;;  %v6408_v51 = vld [vmem:[%s11637_s12 + $0x760] sm:$0xff]  ;;  %v6405_v52 = vld [vmem:[%s11637_s12 + $0x748] sm:$0xff] }
 0x158   : > { %1697 = vmatprep.subr.mxu1 %v6310_v53  ;;  %1774 = vmatprep.subr.mxu0 %v7224_v38  ;;  %v6404_v53 = vld [vmem:[%s11637_s12 + $0x740] sm:$0xff] }
 0x159   : > { %1698 = vmatpush2.msra.mxu1 %v6309_v54  ;;  %1775 = vmatpush2.msra.mxu0 %v6311_v55  ;;  %v6401_v54 = vld [vmem:[%s11637_s12 + $0x728] sm:$0xff]  ;;  %v6400_v55 = vld [vmem:[%s11637_s12 + $0x720] sm:$0xff] }
 0x15a   : > { %1699 = vmatprep.subr.mxu1 %v6307_v56  ;;  %1776 = vmatprep.subr.mxu0 %v7224_v38  ;;  %v6397_v56 = vld [vmem:[%s11637_s12 + $0x708] sm:$0xff] }
 0x15b   : > { %1700 = vmatpush2.msra.mxu1 %v6306_v57  ;;  %1777 = vmatpush2.msra.mxu0 %v6308_v58  ;;  %v6396_v57 = vld [vmem:[%s11637_s12 + $0x700] sm:$0xff]  ;;  %v6393_v58 = vld [vmem:[%s11637_s12 + $0x6e8] sm:$0xff] }
 0x15c   : > { %1702 = vmatmul.mubr.f32.vlgmr.msra.gmra.mxu1 %v7731_v39  ;;  %1779 = vmatmul.mubr.f32.vlgmr.msra.gmra.mxu0 %v7731_v39  ;;  %v6373_v39 = vld [vmem:[%s11637_s12 + $0x648] sm:$0xff] }
 0x15d   : > { %6313 = vmatprep.mubr.msk.f32.mxu1 %vm1116_vm8, %v1630_v35  ;;  %6315 = vmatprep.mubr.msk.f32.mxu0 %vm1116_vm8, %v1630_v35  ;;  %v6389_v35 = vld [vmem:[%s11637_s12 + $0x6c8] sm:$0xff] }
 0x15e   : > { %2190 = vmatprep.subr.mxu1 %v6377_v61  ;;  %v6457_v61 = vld [vmem:[%s11637_s12 + $0x8e8] sm:$0xff] }
 0x15f   : > { %2191 = vmatpush1.msra.mxu1 %v6376_v43  ;;  %2291 = vmatprep.subr.mxu0 %v6457_v61  ;;  %v6456_v43 = vld [vmem:[%s11637_s12 + $0x8e0] sm:$0xff] }
 0x160   : > { %1708 = vmatmul.mubr.f32.gmra.mxu1 %v7741_v46  ;;  %1784 = vmatmul.mubr.f32.gmra.mxu0 %v7741_v46  ;;  %v6369_v46 = vld [vmem:[%s11637_s12 + $0x628] sm:$0xff] }
 0x161   : > { %2331 = vmatprep.mubr.f32.mxu0 %v7224_v38  ;;  %2192 = vmatprep.subr.mxu1 %v6373_v39  ;;  %v6453_v39 = vld [vmem:[%s11637_s12 + $0x8c8] sm:$0xff] }
 0x162   : > { %2193 = vmatpush1.msra.mxu1 %v6372_v44  ;;  %v6452_v44 = vld [vmem:[%s11637_s12 + $0x8c0] sm:$0xff]  ;;  %2292 = vmatpush1.msra.mxu0 %v6456_v43 }
 0x163   : > { %2194 = vmatprep.subr.mxu1 %v6369_v46  ;;  %v6449_v46 = vld [vmem:[%s11637_s12 + $0x8a8] sm:$0xff]  ;;  %2293 = vmatprep.subr.mxu0 %v6453_v39 }
 0x164   : > { %2195 = vmatpush1.msra.mxu1 %v6368_v62  ;;  %v6388_v62 = vld [vmem:[%s11637_s12 + $0x6c0] sm:$0xff]  ;;  %2294 = vmatpush1.msra.mxu0 %v6452_v44 }
 0x165   : > { %2196 = vmatprep.subr.mxu1 %v6365_v0  ;;  %v6448_v0 = vld [vmem:[%s11637_s12 + $0x8a0] sm:$0xff]  ;;  %2295 = vmatprep.subr.mxu0 %v6449_v46 }
 0x166   : > { %2197 = vmatpush1.msra.mxu1 %v6364_v1  ;;  %v6385_v1 = vld [vmem:[%s11637_s12 + $0x6a8] sm:$0xff]  ;;  %2296 = vmatpush1.msra.mxu0 %v6448_v0 }
 0x167   : > { %2198 = vmatprep.subr.mxu1 %v6361_v3  ;;  %v6445_v3 = vld [vmem:[%s11637_s12 + $0x888] sm:$0xff] }
 0x168   : > { %2199 = vmatpush1.msra.mxu1 %v6360_v4  ;;  %v6384_v4 = vld [vmem:[%s11637_s12 + $0x6a0] sm:$0xff]  ;;  %2297 = vmatprep.subr.mxu0 %v6445_v3 }
 0x169   : > { %2200 = vmatprep.subr.mxu1 %v6357_v5  ;;  %v6381_v5 = vld [vmem:[%s11637_s12 + $0x688] sm:$0xff] }
 0x16a   : > { %2201 = vmatpush1.msra.mxu1 %v6356_v6  ;;  %v6444_v6 = vld [vmem:[%s11637_s12 + $0x880] sm:$0xff] }
 0x16b   : > { %2202 = vmatprep.subr.mxu1 %v6353_v7  ;;  %v6379_v7 = vld [vmem:[%s11637_s12 + $0x678] sm:$0xff]  ;;  %2298 = vmatpush1.msra.mxu0 %v6444_v6 }
 0x16c   : > { %2203 = vmatpush1.msra.mxu1 %v6352_v32  ;;  %v6380_v32 = vld [vmem:[%s11637_s12 + $0x680] sm:$0xff]  ;;  %2344 = vmatprep.subr.mxu0 %v6379_v7 }
 0x16d   : > { %2204 = vmatprep.subr.mxu1 %v6349_v41  ;;  %v6459_v41 = vld [vmem:[%s11637_s12 + $0x8f8] sm:$0xff] }
 0x16e   : > { %2205 = vmatpush1.msra.mxu1 %v6348_v8 }
 0x16f   : > { %2206 = vmatprep.subr.mxu1 %v6345_v9 }
 0x170   : > { %2207 = vmatpush1.msra.mxu1 %v6344_v10 }
 0x171   : > { %2208 = vmatprep.subr.mxu1 %v6341_v12 }
 0x172   : > { %2209 = vmatpush1.msra.mxu1 %v6340_v13 }
 0x173   : > { %2210 = vmatprep.subr.mxu1 %v6337_v14 }
 0x174   : > { %2211 = vmatpush1.msra.mxu1 %v6336_v15 }
 0x175   : > { %2212 = vmatprep.subr.mxu1 %v6333_v16 }
 0x176   : > { %2213 = vmatpush1.msra.mxu1 %v6332_v17 }
 0x177   : > { %2214 = vmatprep.subr.mxu1 %v6329_v18 }
 0x178   : > { %2215 = vmatpush1.msra.mxu1 %v6328_v19 }
 0x179   : > { %2216 = vmatprep.subr.mxu1 %v6325_v20 }
 0x17a   : > { %2217 = vmatpush1.msra.mxu1 %v6324_v21 }
 0x17b   : > { %2218 = vmatprep.subr.mxu1 %v6321_v22 }
 0x17c   : > { %2219 = vmatpush1.msra.mxu1 %v6320_v23 }
 0x17d   : > { %2220 = vmatprep.subr.mxu1 %v6317_v24  ;;  %v1807_v24 = vsub.s32 2, %v7708_v59 }
 0x17e   : > { %2221 = vmatpush1.msra.mxu1 %v6316_v25  ;;  %v1795_v25 = vld [vmem:[%s11667_s5] sm:$0x7]  ;;  %s7032_s5 = sshll.u32 %s11671_s28, 4 }
 0x17f   : > { %2222 = vmatprep.subr.mxu1 %v6441_v26  ;;  %s702_s0 = scalar_lea.vmem %s11646_s21, %s7032_s5 }
 0x180   : > { %2223 = vmatpush2.msra.mxu1 %v6440_v27 }
 0x181   : > { %2224 = vmatprep.subr.mxu1 %v6437_v28 }
 0x182   : > { %2225 = vmatpush2.msra.mxu1 %v6436_v29  ;;  %v1800_v29 = vrot.slane %v1795_v25, %v7711_v63 }
 0x183   : > { %2226 = vmatprep.subr.mxu1 %v6433_v30  ;;  %v1808_v30 = vrot.slane %v1795_v25, %v1807_v24 }
 0x184   : > { %2227 = vmatpush2.msra.mxu1 %v6432_v31 }
 0x185   : > { %2228 = vmatprep.subr.mxu1 %v6429_v33 }
 0x186   : > { %2229 = vmatpush2.msra.mxu1 %v6428_v34 }
 0x187   : > { %2230 = vmatprep.subr.mxu1 %v6425_v36 }
 0x188   : > { %2231 = vmatpush2.msra.mxu1 %v6424_v37 }
 0x189   : > { %2232 = vmatprep.subr.mxu1 %v6421_v40  ;;  %v1804_v40 = vrot.slane %v1795_v25, %v7717_v2  ;;  %v6455_v25 = vld [vmem:[%s11637_s12 + $0x8d8] sm:$0xff] }
 0x18a   : > { %2233 = vmatpush2.msra.mxu1 %v6420_v42 }
 0x18b   : > { %2234 = vmatprep.subr.mxu1 %v6417_v45 }
 0x18c   : > { %2235 = vmatpush2.msra.mxu1 %v6416_v47 }
 0x18d   : > { %2236 = vmatprep.subr.mxu1 %v6413_v48 }
 0x18e   : > { %2237 = vmatpush2.msra.mxu1 %v6412_v49 }
 0x18f   : > { %2238 = vmatprep.subr.mxu1 %v6409_v50 }
 0x190   : > { %2239 = vmatpush2.msra.mxu1 %v6408_v51 }
 0x191   : > { %2240 = vmatprep.subr.mxu1 %v6405_v52 }
 0x192   : > { %2241 = vmatpush2.msra.mxu1 %v6404_v53 }
 0x193   : > { %2242 = vmatprep.subr.mxu1 %v6401_v54 }
 0x194   : > { %2243 = vmatpush2.msra.mxu1 %v6400_v55 }
 0x195   : > { %2244 = vmatprep.subr.mxu1 %v6397_v56 }
 0x196   : > { %2245 = vmatpush2.msra.mxu1 %v6396_v57 }
 0x197   : > { %2246 = vmatprep.subr.mxu1 %v6393_v58 }
 0x198   : > { %2247 = vmatpush2.msra.mxu1 %v6392_v60 }
 0x199   : > { %2248 = vmatprep.subr.mxu1 %v6389_v35 }
 0x19a   : > { %2249 = vmatpush2.msra.mxu1 %v6388_v62 }
 0x19b   : > { %2250 = vmatprep.subr.mxu1 %v6385_v1 }
 0x19c   : > { %2251 = vmatpush2.msra.mxu1 %v6384_v4 }
 0x19d   : > { %2252 = vmatprep.subr.mxu1 %v6381_v5 }
 0x19e   : > { %2253 = vmatpush2.msra.mxu1 %v6380_v32 }
 0x19f   : > { %2445 = vmatprep.subr.mxu1 %v6459_v41 }
 0x1cd   : > { %v1401_v8 = vpop.f32.mrf.mxu0  ;;  %v1324_v17 = vpop.f32.mrf.mxu1 }
 0x1cf   : > { %v1403_v9 = vpop.f32.mrf.mxu0  ;;  %v1326_v18 = vpop.f32.mrf.mxu1 }
 0x1d3   : > { %v1406_v10 = vpop.f32.mrf.mxu0  ;;  %v1330_v19 = vpop.f32.mrf.mxu1 }
 0x1d5   : > { %v1408_v12 = vpop.f32.mrf.mxu0  ;;  %v1332_v20 = vpop.f32.mrf.mxu1 }
 0x1f4   : > { %v1557_v13 = vpop.f32.mrf.mxu0  ;;  %v1480_v21 = vpop.f32.mrf.mxu1 }
 0x1f5   : > { %v1481_v27 = vadd.f32 %v1480_v21, %v1324_v17  ;;  %v1558_v28 = vadd.f32 %v1557_v13, %v1401_v8 }
 0x1f6   : > { %v1559_v14 = vpop.f32.mrf.mxu0  ;;  %v1482_v22 = vpop.f32.mrf.mxu1 }
 0x1f7   : > { %v1483_v34 = vadd.f32 %v1482_v22, %v1326_v18 }
 0x1fa   : > { %v1562_v15 = vpop.f32.mrf.mxu0  ;;  %v1486_v23 = vpop.f32.mrf.mxu1 }
 0x1fb   : > { %v1487_v47 = vadd.f32 %v1486_v23, %v1330_v19  ;;  %v1563_v51 = vadd.f32 %v1562_v15, %v1406_v10 }
 0x1fc   : > { %v1564_v16 = vpop.f32.mrf.mxu0  ;;  %v1488_v26 = vpop.f32.mrf.mxu1 }
 0x1fd   : > { %v1489_v58 = vadd.f32 %v1488_v26, %v1332_v20  ;;  %v6458_v20 = vld [vmem:[%s11637_s12 + $0x8f0] sm:$0xff] }
 0x21c   : > { %v1703_v31 = vpop.f32.mrf.mxu1  ;;  %v1780_v33 = vpop.f32.mrf.mxu0 }
 0x21d   : > { %v1789_v36 = vadd.f32 %v1703_v31, %v1481_v27  ;;  %v1791_v37 = vadd.f32 %v1780_v33, %v1558_v28 }
 0x21e   : > { %v1705_v42 = vpop.f32.mrf.mxu1  ;;  %v1782_v45 = vpop.f32.mrf.mxu0 }
 0x21f   : > { %v1812_v48 = vadd.f32 %v1800_v29, %v1789_v36  ;;  %v1814_v49 = vadd.f32 %v1808_v30, %v1791_v37  ;;  %v1790_v50 = vadd.f32 %v1705_v42, %v1483_v34  ;;  %v6375_v36 = vld [vmem:[%s11637_s12 + $0x658] sm:$0xff] }
 0x220   : > { %v1709_v52 = vpop.f32.mrf.mxu1  ;;  %v1785_v53 = vpop.f32.mrf.mxu0  ;;  %v6451_v45 = vld [vmem:[%s11637_s12 + $0x8b8] sm:$0xff] }
 0x221   : > { %v1818_v54 = vmax.f32 %v1812_v48, 0.0  ;;  %v1820_v55 = vmax.f32 %v1814_v49, 0.0  ;;  %v1813_v56 = vadd.f32 %v1804_v40, %v1790_v50  ;;  %v1792_v57 = vadd.f32 %v1709_v52, %v1487_v47  ;;  %v6371_v47 = vld [vmem:[%s11637_s12 + $0x638] sm:$0xff]  ;;  %v6370_v49 = vld [vmem:[%s11637_s12 + $0x630] sm:$0xff] }
 0x222   : > { %v1794_v60 = vadd.f32 %v1785_v53, %v1563_v51  ;;  %v1711_v61 = vpop.f32.mrf.mxu1  ;;  %v1787_v35 = vpop.f32.mrf.mxu0  ;;  %v6367_v51 = vld [vmem:[%s11637_s12 + $0x618] sm:$0xff]  ;;  %v6366_v52 = vld [vmem:[%s11637_s12 + $0x610] sm:$0xff] }
 0x223   : > { %v1830_v43 = vrot.slane %v1818_v54, 7  ;;  %v1832_v39 = vrot.slane %v1820_v55, 7  ;;  %v1819_v44 = vmax.f32 %v1813_v56, 0.0  ;;  %v1815_v46 = vadd.f32 %v1800_v29, %v1792_v57  ;;  %v6454_v29 = vld [vmem:[%s11637_s12 + $0x8d0] sm:$0xff]  ;;  %v6363_v55 = vld [vmem:[%s11637_s12 + $0x5f8] sm:$0xff]  ;;  %v1930_v35 = vld [vmem:[%s11637_s12 + $0x1e8] sm:$0xff] }
 0x224   : > { %v1817_v62 = vadd.f32 %v1808_v30, %v1794_v60  ;;  %v1793_v0 = vadd.f32 %v1711_v61, %v1489_v58  ;;  %v6378_v30 = vld [vmem:[%s11637_s12 + $0x670] sm:$0xff]  ;;  %v6447_v56 = vld [vmem:[%s11637_s12 + $0x898] sm:$0xff] }
 0x225   : > { %1848 = vst [vmem:[#allocation3] sm:$0xfe] %v1830_v43  ;;  %1851 = vst.msk [vmem:[#allocation3 + $0x10] sm:$0xfe] %vm1850_vm9, %v1832_v39  ;;  %v1831_v1 = vrot.slane %v1819_v44, 7  ;;  %v1821_v3 = vmax.f32 %v1815_v46, 0.0 }
 0x226   : > { %v1823_v4 = vmax.f32 %v1817_v62, 0.0  ;;  %v1816_v5 = vadd.f32 %v1804_v40, %v1793_v0  ;;  %v6374_v40 = vld [vmem:[%s11637_s12 + $0x650] sm:$0xff]  ;;  %v6359_v60 = vld [vmem:[%s11637_s12 + $0x5d8] sm:$0xff]  ;;  %v1926_v46 = vld [vmem:[%s11637_s12 + $0x1c8] sm:$0xff] }
 0x227   : > { %1849 = vst [vmem:[#allocation3 + $0x8] sm:$0xfe] %v1831_v1  ;;  %v1833_v6 = vrot.slane %v1821_v3, 7  ;;  %v6450_v53 = vld [vmem:[%s11637_s12 + $0x8b0] sm:$0xff]  ;;  %v6351_v62 = vld [vmem:[%s11637_s12 + $0x598] sm:$0xff]  ;;  %v1925_v0 = vld [vmem:[%s11637_s12 + $0x1c0] sm:$0xff] }
 0x228   : > { %v1837_v7 = vrot.slane %v1823_v4, 7  ;;  %v1822_v32 = vmax.f32 %v1816_v5, 0.0  ;;  %v6362_v57 = vld [vmem:[%s11637_s12 + $0x5f0] sm:$0xff]  ;;  %v1922_v3 = vld [vmem:[%s11637_s12 + $0x1a8] sm:$0xff]  ;;  %v6347_v4 = vld [vmem:[%s11637_s12 + $0x578] sm:$0xff] }
 0x229   : > { %v8373_v41 = vsel %vm1099_vm6, %v1830_v43, %v1833_v6  ;;  %1856 = vst [vmem:[#allocation3 + $0x30] sm:$0x1] %v1833_v6  ;;  %v6446_v58 = vld [vmem:[%s11637_s12 + $0x890] sm:$0xff]  ;;  %v6355_v43 = vld [vmem:[%s11637_s12 + $0x5b8] sm:$0xff]  ;;  %v1921_v5 = vld [vmem:[%s11637_s12 + $0x1a0] sm:$0xff] }
 0x22a   : > { %1852 = vst [vmem:[#allocation3 + $0x18] sm:$0xff] %v8373_v41  ;;  %v1838_v8 = vsel %vm1099_vm6, %v1832_v39, %v1837_v7  ;;  %1859 = vst.msk [vmem:[#allocation3 + $0x40] sm:$0x1] %vm1858_vm10, %v1837_v7  ;;  %v1835_v9 = vrot.slane %v1822_v32, 7  ;;  %v2168_v18 = vrot.slane %v8373_v41, 1  ;;  %v6358_v61 = vld [vmem:[%s11637_s12 + $0x5d0] sm:$0xff] }
 0x22b   : > { %1855 = vst.msk [vmem:[#allocation3 + $0x28] sm:$0xff] %vm1854_vm11, %v1838_v8  ;;  %v1929_v39 = vld [vmem:[%s11637_s12 + $0x1e0] sm:$0xff]  ;;  %v6354_v44 = vld [vmem:[%s11637_s12 + $0x5b0] sm:$0xff]  ;;  %v1918_v7 = vld [vmem:[%s11637_s12 + $0x188] sm:$0xff] }
 0x22c   : > { %v8380_v10 = vsel %vm1099_vm6, %v1831_v1, %v1835_v9  ;;  %1857 = vst [vmem:[#allocation3 + $0x38] sm:$0x1] %v1835_v9  ;;  %v8382_v12 = vld [vmem:[#allocation3] sm:$0xff]  ;;  %v8390_v17 = vld [vmem:[#allocation3 + $0x10] sm:$0xff]  ;;  %v6343_v32 = vld [vmem:[%s11637_s12 + $0x558] sm:$0xff] }
 0x22d   : > { %1853 = vst [vmem:[#allocation3 + $0x20] sm:$0xff] %v8380_v10  ;;  %v2167_v14 = vrot.slane %v8382_v12, 1  ;;  %v2171_v16 = vrot.slane %v8380_v10, 1  ;;  %v2173_v26 = vrot.slane %v8390_v17, 1  ;;  %v6350_v1 = vld [vmem:[%s11637_s12 + $0x590] sm:$0xff]  ;;  %v1917_v8 = vld [vmem:[%s11637_s12 + $0x180] sm:$0xff] }
 0x22e   : > { %v8385_v13 = vld [vmem:[#allocation3 + $0x8] sm:$0xff]  ;;  %v6346_v6 = vld [vmem:[%s11637_s12 + $0x570] sm:$0xff] }
 0x22f   : > { %v2170_v15 = vrot.slane %v8385_v13, 1  ;;  %v8400_v22 = vsel %vm782_vm1, %v2167_v14, %v2168_v18  ;;  %v6342_v9 = vld [vmem:[%s11637_s12 + $0x550] sm:$0xff]  ;;  %v1914_v14 = vld [vmem:[%s11637_s12 + $0x168] sm:$0xff] }
 0x230   : > { %v1866_v33 = vld [vmem:[#allocation3 + $0x30] sm:$0x3] }
 0x231   : > { %v2172_v19 = vsel %vm782_vm1, %v2170_v15, %v2171_v16  ;;  %v1868_v23 = vld [vmem:[#allocation3 + $0x40] sm:$0x3]  ;;  %v2176_v48 = vrot.slane %v1866_v33, 1  ;;  %v6339_v15 = vld [vmem:[%s11637_s12 + $0x538] sm:$0xff]  ;;  %v1901_v33 = vld [vmem:[%s11637_s12 + $0x100] sm:$0xff] }
 0x232   : > { %v8397_v21 = vld [vmem:[#allocation3 + $0x28] sm:$0xff]  ;;  %2254 = vmatprep.mubr.f32.mxu1 %v2172_v19  ;;  %v2180_v37 = vrot.slane %v1868_v23, 1  ;;  %v1909_v23 = vld [vmem:[%s11637_s12 + $0x140] sm:$0xff] }
 0x233   : > { %v2174_v27 = vrot.slane %v8397_v21, 1  ;;  %2255 = vmatmul.mubr.f32.vlgmr.msra.gmra.mxu1 %v8400_v22  ;;  %v1867_v28 = vld [vmem:[#allocation3 + $0x38] sm:$0x3]  ;;  %v8448_v54 = vsel %vm782_vm1, %v2168_v18, %v2176_v48  ;;  %v6338_v18 = vld [vmem:[%s11637_s12 + $0x530] sm:$0xff]  ;;  %v6319_v48 = vld [vmem:[%s11637_s12 + $0x498] sm:$0xff] }
 0x234   : > { %2446 = vmatpush1.msra.mxu1 %v6458_v20  ;;  %v2178_v31 = vrot.slane %v1867_v28, 1  ;;  %v6335_v20 = vld [vmem:[%s11637_s12 + $0x518] sm:$0xff]  ;;  %v1905_v28 = vld [vmem:[%s11637_s12 + $0x120] sm:$0xff] }
 0x235   : > { %v2175_v34 = vsel %vm782_vm1, %v2173_v26, %v2174_v27  ;;  %2447 = vmatprep.subr.mxu1 %v6455_v25  ;;  %v2181_v50 = vsel %vm782_vm1, %v2174_v27, %v2180_v37  ;;  %v6334_v25 = vld [vmem:[%s11637_s12 + $0x510] sm:$0xff]  ;;  %v1906_v26 = vld [vmem:[%s11637_s12 + $0x128] sm:$0xff]  ;;  %v6331_v27 = vld [vmem:[%s11637_s12 + $0x4f8] sm:$0xff] }
 0x236   : > { %6460 = vmatmul.mubr.msk.f32.vlgmr.msra.gmra.mxu0 %vm1854_vm11, %v2175_v34  ;;  %v8423_v42 = vsel %vm782_vm1, %v2171_v16, %v2178_v31  ;;  %2448 = vmatpush1.msra.mxu1 %v6454_v29  ;;  %v1913_v16 = vld [vmem:[%s11637_s12 + $0x160] sm:$0xff]  ;;  %v6330_v29 = vld [vmem:[%s11637_s12 + $0x4f0] sm:$0xff]  ;;  %v6327_v31 = vld [vmem:[%s11637_s12 + $0x4d8] sm:$0xff] }
 0x237   : > { %2345 = vmatpush1.msra.mxu0 %v6378_v30  ;;  %2337 = vmatprep.mubr.f32.mxu0 %v7224_v38  ;;  %v1902_v30 = vld [vmem:[%s11637_s12 + $0x108] sm:$0xff]  ;;  %v6323_v37 = vld [vmem:[%s11637_s12 + $0x4b8] sm:$0xff] }
 0x238   : > { %2346 = vmatprep.subr.mxu0 %v6375_v36  ;;  %2260 = vmatprep.mubr.f32.mxu1 %v8423_v42  ;;  %v1898_v36 = vld [vmem:[%s11637_s12 + $0xe8] sm:$0xff] }
 0x239   : > { %2347 = vmatpush1.msra.mxu0 %v6374_v40  ;;  %2449 = vmatprep.subr.mxu1 %v6451_v45  ;;  %v1897_v40 = vld [vmem:[%s11637_s12 + $0xe0] sm:$0xff]  ;;  %v6322_v45 = vld [vmem:[%s11637_s12 + $0x4b0] sm:$0xff] }
 0x23a   : > { %2348 = vmatprep.subr.mxu0 %v6371_v47  ;;  %6461 = vmatmul.mubr.msk.f32.gmra.mxu0 %vm1854_vm11, %v2181_v50  ;;  %v1894_v47 = vld [vmem:[%s11637_s12 + $0xc8] sm:$0xff] }
 0x23b   : > { %2349 = vmatpush1.msra.mxu0 %v6370_v49  ;;  %2408 = vmatprep.mubr.f32.mxu0 %v2172_v19  ;;  %v1910_v19 = vld [vmem:[%s11637_s12 + $0x148] sm:$0xff]  ;;  %v1893_v49 = vld [vmem:[%s11637_s12 + $0xc0] sm:$0xff] }
 0x23c   : > { %2350 = vmatprep.subr.mxu0 %v6367_v51  ;;  %2261 = vmatmul.mubr.f32.gmra.mxu1 %v8448_v54  ;;  %v1890_v51 = vld [vmem:[%s11637_s12 + $0xa8] sm:$0xff] }
 0x23d   : > { %2351 = vmatpush1.msra.mxu0 %v6366_v52  ;;  %2450 = vmatpush1.msra.mxu1 %v6450_v53  ;;  %v6443_v52 = vld [vmem:[%s11637_s12 + $0x878] sm:$0xff]  ;;  %v1889_v53 = vld [vmem:[%s11637_s12 + $0xa0] sm:$0xff] }
 0x23e   : > { %2352 = vmatprep.subr.mxu0 %v6363_v55  ;;  %2451 = vmatprep.subr.mxu1 %v6447_v56  ;;  %v6442_v55 = vld [vmem:[%s11637_s12 + $0x870] sm:$0xff]  ;;  %v1886_v56 = vld [vmem:[%s11637_s12 + $0x88] sm:$0xff] }
 0x23f   : > { %2353 = vmatpush1.msra.mxu0 %v6362_v57  ;;  %2452 = vmatpush1.msra.mxu1 %v6446_v58  ;;  %v6439_v57 = vld [vmem:[%s11637_s12 + $0x858] sm:$0xff]  ;;  %v1885_v58 = vld [vmem:[%s11637_s12 + $0x80] sm:$0xff] }
 0x240   : > { %2354 = vmatprep.subr.mxu0 %v6359_v60  ;;  %2485 = vmatprep.mubr.f32.mxu1 %v7224_v38  ;;  %v6438_v60 = vld [vmem:[%s11637_s12 + $0x850] sm:$0xff] }
 0x241   : > { %2355 = vmatpush1.msra.mxu0 %v6358_v61  ;;  %2502 = vmatprep.subr.mxu1 %v1930_v35  ;;  %v1882_v61 = vld [vmem:[%s11637_s12 + $0x68] sm:$0xff]  ;;  %v6435_v35 = vld [vmem:[%s11637_s12 + $0x838] sm:$0xff] }
 0x242   : > { %2356 = vmatprep.subr.mxu0 %v6355_v43  ;;  %6462 = vmatmul.mubr.msk.f32.vlgmr.msra.gmra.mxu1 %vm1854_vm11, %v2175_v34  ;;  %v6326_v34 = vld [vmem:[%s11637_s12 + $0x4d0] sm:$0xff]  ;;  %v1881_v43 = vld [vmem:[%s11637_s12 + $0x60] sm:$0xff] }
 0x243   : > { %2503 = vmatpush1.msra.mxu1 %v1929_v39  ;;  %2357 = vmatpush1.msra.mxu0 %v6354_v44  ;;  %v6434_v39 = vld [vmem:[%s11637_s12 + $0x830] sm:$0xff]  ;;  %v1878_v44 = vld [vmem:[%s11637_s12 + $0x48] sm:$0xff] }
 0x244   : > { %2504 = vmatprep.subr.mxu1 %v1926_v46  ;;  %2358 = vmatprep.subr.mxu0 %v6351_v62  ;;  %v6431_v46 = vld [vmem:[%s11637_s12 + $0x818] sm:$0xff]  ;;  %v1877_v62 = vld [vmem:[%s11637_s12 + $0x40] sm:$0xff] }
 0x245   : > { %2505 = vmatpush1.msra.mxu1 %v1925_v0  ;;  %2359 = vmatpush1.msra.mxu0 %v6350_v1  ;;  %v6430_v0 = vld [vmem:[%s11637_s12 + $0x810] sm:$0xff]  ;;  %v1874_v1 = vld [vmem:[%s11637_s12 + $0x28] sm:$0xff] }
 0x246   : > { %2491 = vmatprep.mubr.f32.mxu1 %v7224_v38  ;;  %2506 = vmatprep.subr.mxu1 %v1922_v3  ;;  %v6427_v3 = vld [vmem:[%s11637_s12 + $0x7f8] sm:$0xff] }
 0x247   : > { %2360 = vmatprep.subr.mxu0 %v6347_v4  ;;  %6463 = vmatmul.mubr.msk.f32.gmra.mxu1 %vm1854_vm11, %v2181_v50  ;;  %v6318_v50 = vld [vmem:[%s11637_s12 + $0x490] sm:$0xff]  ;;  %v1873_v4 = vld [vmem:[%s11637_s12 + $0x20] sm:$0xff] }
 0x248   : > { %2507 = vmatpush1.msra.mxu1 %v1921_v5  ;;  %2361 = vmatpush1.msra.mxu0 %v6346_v6  ;;  %v6426_v5 = vld [vmem:[%s11637_s12 + $0x7f0] sm:$0xff]  ;;  %v1870_v6 = vld [vmem:[%s11637_s12 + $0x8] sm:$0xff] }
 0x249   : > { %2508 = vmatprep.subr.mxu1 %v1918_v7  ;;  %2566 = vmatprep.mubr.f32.mxu1 %v8385_v13  ;;  %v6423_v7 = vld [vmem:[%s11637_s12 + $0x7d8] sm:$0xff] }
 0x24a   : > { %2362 = vmatprep.subr.mxu0 %v6343_v32  ;;  %2509 = vmatpush1.msra.mxu1 %v1917_v8  ;;  %v1869_v32 = vld [vmem:[%s11637_s12] sm:$0xff]  ;;  %v6422_v8 = vld [vmem:[%s11637_s12 + $0x7d0] sm:$0xff] }
 0x24b   : > { %2363 = vmatpush1.msra.mxu0 %v6342_v9  ;;  %2510 = vmatprep.subr.mxu1 %v1914_v14  ;;  %v1994_v9 = vld [vmem:[%s11637_s12 + $0x3e8] sm:$0xff]  ;;  %v6419_v14 = vld [vmem:[%s11637_s12 + $0x7b8] sm:$0xff] }
 0x24c   : > { %2364 = vmatprep.subr.mxu0 %v6339_v15  ;;  %2511 = vmatpush1.msra.mxu1 %v1913_v16  ;;  %v1993_v15 = vld [vmem:[%s11637_s12 + $0x3e0] sm:$0xff]  ;;  %v6418_v16 = vld [vmem:[%s11637_s12 + $0x7b0] sm:$0xff] }
 0x24d   : > { %2365 = vmatpush1.msra.mxu0 %v6338_v18  ;;  %2512 = vmatprep.subr.mxu1 %v1910_v19  ;;  %v1990_v18 = vld [vmem:[%s11637_s12 + $0x3c8] sm:$0xff]  ;;  %v6415_v19 = vld [vmem:[%s11637_s12 + $0x798] sm:$0xff] }
 0x24e   : > { %2366 = vmatprep.subr.mxu0 %v6335_v20  ;;  %2513 = vmatpush1.msra.mxu1 %v1909_v23  ;;  %v1989_v20 = vld [vmem:[%s11637_s12 + $0x3c0] sm:$0xff]  ;;  %v6414_v23 = vld [vmem:[%s11637_s12 + $0x790] sm:$0xff] }
 0x24f   : > { %2367 = vmatpush1.msra.mxu0 %v6334_v25  ;;  %2514 = vmatprep.subr.mxu1 %v1906_v26  ;;  %v1986_v25 = vld [vmem:[%s11637_s12 + $0x3a8] sm:$0xff]  ;;  %v6411_v26 = vld [vmem:[%s11637_s12 + $0x778] sm:$0xff] }
 0x250   : > { %2368 = vmatprep.subr.mxu0 %v6331_v27  ;;  %2515 = vmatpush1.msra.mxu1 %v1905_v28  ;;  %v1985_v27 = vld [vmem:[%s11637_s12 + $0x3a0] sm:$0xff]  ;;  %v6410_v28 = vld [vmem:[%s11637_s12 + $0x770] sm:$0xff] }
 0x251   : > { %2369 = vmatpush1.msra.mxu0 %v6330_v29  ;;  %2516 = vmatprep.subr.mxu1 %v1902_v30  ;;  %v1982_v29 = vld [vmem:[%s11637_s12 + $0x388] sm:$0xff]  ;;  %v6407_v30 = vld [vmem:[%s11637_s12 + $0x758] sm:$0xff] }
 0x252   : > { %2370 = vmatprep.subr.mxu0 %v6327_v31  ;;  %2517 = vmatpush1.msra.mxu1 %v1901_v33  ;;  %v1981_v31 = vld [vmem:[%s11637_s12 + $0x380] sm:$0xff]  ;;  %v6406_v33 = vld [vmem:[%s11637_s12 + $0x750] sm:$0xff] }
 0x253   : > { %2371 = vmatpush1.msra.mxu0 %v6326_v34  ;;  %2518 = vmatprep.subr.mxu1 %v1898_v36  ;;  %v1978_v34 = vld [vmem:[%s11637_s12 + $0x368] sm:$0xff]  ;;  %v6403_v36 = vld [vmem:[%s11637_s12 + $0x738] sm:$0xff] }
 0x254   : > { %2372 = vmatprep.subr.mxu0 %v6323_v37  ;;  %2519 = vmatpush1.msra.mxu1 %v1897_v40  ;;  %v1977_v37 = vld [vmem:[%s11637_s12 + $0x360] sm:$0xff]  ;;  %v6402_v40 = vld [vmem:[%s11637_s12 + $0x730] sm:$0xff] }
 0x255   : > { %2373 = vmatpush1.msra.mxu0 %v6322_v45  ;;  %2520 = vmatprep.subr.mxu1 %v1894_v47  ;;  %v1974_v45 = vld [vmem:[%s11637_s12 + $0x348] sm:$0xff]  ;;  %v6399_v47 = vld [vmem:[%s11637_s12 + $0x718] sm:$0xff] }
 0x256   : > { %2374 = vmatprep.subr.mxu0 %v6319_v48  ;;  %2521 = vmatpush1.msra.mxu1 %v1893_v49  ;;  %v1973_v48 = vld [vmem:[%s11637_s12 + $0x340] sm:$0xff]  ;;  %v6398_v49 = vld [vmem:[%s11637_s12 + $0x710] sm:$0xff] }
 0x257   : > { %2375 = vmatpush1.msra.mxu0 %v6318_v50  ;;  %2522 = vmatprep.subr.mxu1 %v1890_v51  ;;  %v1970_v50 = vld [vmem:[%s11637_s12 + $0x328] sm:$0xff]  ;;  %v6395_v51 = vld [vmem:[%s11637_s12 + $0x6f8] sm:$0xff] }
 0x258   : > { %2376 = vmatprep.subr.mxu0 %v6443_v52  ;;  %2523 = vmatpush1.msra.mxu1 %v1889_v53  ;;  %v1969_v52 = vld [vmem:[%s11637_s12 + $0x320] sm:$0xff]  ;;  %v6394_v53 = vld [vmem:[%s11637_s12 + $0x6f0] sm:$0xff] }
 0x259   : > { %2377 = vmatpush2.msra.mxu0 %v6442_v55  ;;  %2524 = vmatprep.subr.mxu1 %v1886_v56  ;;  %v1966_v55 = vld [vmem:[%s11637_s12 + $0x308] sm:$0xff]  ;;  %v6391_v56 = vld [vmem:[%s11637_s12 + $0x6d8] sm:$0xff] }
 0x25a   : > { %2378 = vmatprep.subr.mxu0 %v6439_v57  ;;  %2525 = vmatpush1.msra.mxu1 %v1885_v58  ;;  %v1965_v57 = vld [vmem:[%s11637_s12 + $0x300] sm:$0xff]  ;;  %v6390_v58 = vld [vmem:[%s11637_s12 + $0x6d0] sm:$0xff] }
 0x25b   : > { %2379 = vmatpush2.msra.mxu0 %v6438_v60  ;;  %2526 = vmatprep.subr.mxu1 %v1882_v61  ;;  %v1962_v60 = vld [vmem:[%s11637_s12 + $0x2e8] sm:$0xff]  ;;  %v6387_v61 = vld [vmem:[%s11637_s12 + $0x6b8] sm:$0xff] }
 0x25c   : > { %2380 = vmatprep.subr.mxu0 %v6435_v35  ;;  %2527 = vmatpush1.msra.mxu1 %v1881_v43  ;;  %v1961_v35 = vld [vmem:[%s11637_s12 + $0x2e0] sm:$0xff]  ;;  %v6386_v43 = vld [vmem:[%s11637_s12 + $0x6b0] sm:$0xff] }
 0x25d   : > { %2381 = vmatpush2.msra.mxu0 %v6434_v39  ;;  %2528 = vmatprep.subr.mxu1 %v1878_v44  ;;  %v1958_v39 = vld [vmem:[%s11637_s12 + $0x2c8] sm:$0xff]  ;;  %v6383_v44 = vld [vmem:[%s11637_s12 + $0x698] sm:$0xff] }
 0x25e   : > { %2382 = vmatprep.subr.mxu0 %v6431_v46  ;;  %2529 = vmatpush1.msra.mxu1 %v1877_v62  ;;  %v1957_v46 = vld [vmem:[%s11637_s12 + $0x2c0] sm:$0xff]  ;;  %v6382_v62 = vld [vmem:[%s11637_s12 + $0x690] sm:$0xff] }
 0x25f   : > { %2383 = vmatpush2.msra.mxu0 %v6430_v0  ;;  %2530 = vmatprep.subr.mxu1 %v1874_v1  ;;  %v1954_v0 = vld [vmem:[%s11637_s12 + $0x2a8] sm:$0xff]  ;;  %v1953_v1 = vld [vmem:[%s11637_s12 + $0x2a0] sm:$0xff] }
 0x260   : > { %2384 = vmatprep.subr.mxu0 %v6427_v3  ;;  %2531 = vmatpush1.msra.mxu1 %v1873_v4  ;;  %v2010_v3 = vld [vmem:[%s11637_s12 + $0x468] sm:$0xff] }
 0x261   : > { %2385 = vmatpush2.msra.mxu0 %v6426_v5  ;;  %2532 = vmatprep.subr.mxu1 %v1870_v6  ;;  %v1950_v4 = vld [vmem:[%s11637_s12 + $0x288] sm:$0xff]  ;;  %v2009_v5 = vld [vmem:[%s11637_s12 + $0x460] sm:$0xff] }
 0x262   : > { %2386 = vmatprep.subr.mxu0 %v6423_v7  ;;  %2533 = vmatpush1.msra.mxu1 %v1869_v32  ;;  %v1949_v6 = vld [vmem:[%s11637_s12 + $0x280] sm:$0xff]  ;;  %v2006_v7 = vld [vmem:[%s11637_s12 + $0x448] sm:$0xff] }
 0x263   : > { %2387 = vmatpush2.msra.mxu0 %v6422_v8  ;;  %2534 = vmatprep.subr.mxu1 %v1994_v9  ;;  %v1946_v32 = vld [vmem:[%s11637_s12 + $0x268] sm:$0xff]  ;;  %v1945_v8 = vld [vmem:[%s11637_s12 + $0x260] sm:$0xff] }
 0x264   : > { %2388 = vmatprep.subr.mxu0 %v6419_v14  ;;  %2535 = vmatpush2.msra.mxu1 %v1993_v15  ;;  %v1942_v9 = vld [vmem:[%s11637_s12 + $0x248] sm:$0xff]  ;;  %v2001_v14 = vld [vmem:[%s11637_s12 + $0x420] sm:$0xff] }
 0x265   : > { %2389 = vmatpush2.msra.mxu0 %v6418_v16  ;;  %2536 = vmatprep.subr.mxu1 %v1990_v18  ;;  %v1941_v15 = vld [vmem:[%s11637_s12 + $0x240] sm:$0xff]  ;;  %v1998_v16 = vld [vmem:[%s11637_s12 + $0x408] sm:$0xff] }
 0x266   : > { %2390 = vmatprep.subr.mxu0 %v6415_v19  ;;  %2537 = vmatpush2.msra.mxu1 %v1989_v20  ;;  %v1938_v18 = vld [vmem:[%s11637_s12 + $0x228] sm:$0xff]  ;;  %v1997_v19 = vld [vmem:[%s11637_s12 + $0x400] sm:$0xff]  ;;  %v1932_v20 = vld [vmem:[%s11637_s12 + $0x1f8] sm:$0xff] }
 0x267   : > { %2391 = vmatpush2.msra.mxu0 %v6414_v23  ;;  %2538 = vmatprep.subr.mxu1 %v1986_v25  ;;  %v1934_v23 = vld [vmem:[%s11637_s12 + $0x208] sm:$0xff]  ;;  %v1931_v25 = vld [vmem:[%s11637_s12 + $0x1f0] sm:$0xff] }
 0x268   : > { %2392 = vmatprep.subr.mxu0 %v6411_v26  ;;  %2539 = vmatpush2.msra.mxu1 %v1985_v27  ;;  %v1933_v26 = vld [vmem:[%s11637_s12 + $0x200] sm:$0xff]  ;;  %v1928_v27 = vld [vmem:[%s11637_s12 + $0x1d8] sm:$0xff] }
 0x269   : > { %2393 = vmatpush2.msra.mxu0 %v6410_v28  ;;  %2540 = vmatprep.subr.mxu1 %v1982_v29  ;;  %v1927_v28 = vld [vmem:[%s11637_s12 + $0x1d0] sm:$0xff]  ;;  %v2012_v29 = vld [vmem:[%s11637_s12 + $0x478] sm:$0xff] }
 0x26a   : > { %2394 = vmatprep.subr.mxu0 %v6407_v30  ;;  %2541 = vmatpush2.msra.mxu1 %v1981_v31  ;;  %v1924_v30 = vld [vmem:[%s11637_s12 + $0x1b8] sm:$0xff]  ;;  %v2011_v31 = vld [vmem:[%s11637_s12 + $0x470] sm:$0xff] }
 0x26b   : > { %2395 = vmatpush2.msra.mxu0 %v6406_v33  ;;  %2542 = vmatprep.subr.mxu1 %v1978_v34  ;;  %v1923_v33 = vld [vmem:[%s11637_s12 + $0x1b0] sm:$0xff]  ;;  %v1920_v34 = vld [vmem:[%s11637_s12 + $0x198] sm:$0xff] }
 0x26c   : > { %2396 = vmatprep.subr.mxu0 %v6403_v36  ;;  %2543 = vmatpush2.msra.mxu1 %v1977_v37  ;;  %v2007_v36 = vld [vmem:[%s11637_s12 + $0x450] sm:$0xff] }
 0x26d   : > { %2397 = vmatpush2.msra.mxu0 %v6402_v40  ;;  %2544 = vmatprep.subr.mxu1 %v1974_v45  ;;  %v1919_v37 = vld [vmem:[%s11637_s12 + $0x190] sm:$0xff]  ;;  %v2004_v40 = vld [vmem:[%s11637_s12 + $0x438] sm:$0xff] }
 0x26e   : > { %2398 = vmatprep.subr.mxu0 %v6399_v47  ;;  %2545 = vmatpush2.msra.mxu1 %v1973_v48  ;;  %v1916_v45 = vld [vmem:[%s11637_s12 + $0x178] sm:$0xff]  ;;  %v2003_v47 = vld [vmem:[%s11637_s12 + $0x430] sm:$0xff] }
 0x26f   : > { %2399 = vmatpush2.msra.mxu0 %v6398_v49  ;;  %2546 = vmatprep.subr.mxu1 %v1970_v50  ;;  %v1915_v48 = vld [vmem:[%s11637_s12 + $0x170] sm:$0xff]  ;;  %v2000_v49 = vld [vmem:[%s11637_s12 + $0x418] sm:$0xff] }
 0x270   : > { %2400 = vmatprep.subr.mxu0 %v6395_v51  ;;  %2547 = vmatpush2.msra.mxu1 %v1969_v52  ;;  %v1912_v50 = vld [vmem:[%s11637_s12 + $0x158] sm:$0xff]  ;;  %v1999_v51 = vld [vmem:[%s11637_s12 + $0x410] sm:$0xff]  ;;  %v6529_v52 = vld [vmem:[%s11637_s12 + $0xae8] sm:$0xff] }
 0x271   : > { %2401 = vmatpush2.msra.mxu0 %v6394_v53  ;;  %2548 = vmatprep.subr.mxu1 %v1966_v55  ;;  %v1908_v53 = vld [vmem:[%s11637_s12 + $0x138] sm:$0xff]  ;;  %v6528_v55 = vld [vmem:[%s11637_s12 + $0xae0] sm:$0xff] }
 0x272   : > { %2402 = vmatprep.subr.mxu0 %v6391_v56  ;;  %2549 = vmatpush2.msra.mxu1 %v1965_v57  ;;  %v1907_v56 = vld [vmem:[%s11637_s12 + $0x130] sm:$0xff]  ;;  %v6525_v57 = vld [vmem:[%s11637_s12 + $0xac8] sm:$0xff] }
 0x273   : > { %2403 = vmatpush2.msra.mxu0 %v6390_v58  ;;  %2550 = vmatprep.subr.mxu1 %v1962_v60  ;;  %v1904_v58 = vld [vmem:[%s11637_s12 + $0x118] sm:$0xff]  ;;  %v6524_v60 = vld [vmem:[%s11637_s12 + $0xac0] sm:$0xff] }
 0x274   : > { %2404 = vmatprep.subr.mxu0 %v6387_v61  ;;  %2551 = vmatpush2.msra.mxu1 %v1961_v35  ;;  %v2958_v61 = vrot.slane %v8385_v13, 2  ;;  %v6521_v35 = vld [vmem:[%s11637_s12 + $0xaa8] sm:$0xff] }
 0x275   : > { %2405 = vmatpush2.msra.mxu0 %v6386_v43  ;;  %2552 = vmatprep.subr.mxu1 %v1958_v39  ;;  %v1900_v43 = vld [vmem:[%s11637_s12 + $0xf8] sm:$0xff]  ;;  %v6520_v39 = vld [vmem:[%s11637_s12 + $0xaa0] sm:$0xff] }
 0x276   : > { %2406 = vmatprep.subr.mxu0 %v6383_v44  ;;  %2553 = vmatpush2.msra.mxu1 %v1957_v46  ;;  %v2959_v44 = vrot.slane %v8380_v10, 2  ;;  %v6517_v46 = vld [vmem:[%s11637_s12 + $0xa88] sm:$0xff] }
 0x277   : > { %2407 = vmatpush2.msra.mxu0 %v6382_v62  ;;  %2554 = vmatprep.subr.mxu1 %v1954_v0  ;;  %v1896_v0 = vld [vmem:[%s11637_s12 + $0xd8] sm:$0xff] }
 0x278   : > { %2409 = vmatmul.mubr.f32.vlgmr.msra.gmra.mxu0 %v8400_v22  ;;  %2555 = vmatpush2.msra.mxu1 %v1953_v1  ;;  %v2005_v22 = vld [vmem:[%s11637_s12 + $0x440] sm:$0xff]  ;;  %v8969_v62 = vsel %vm793_vm0, %v2958_v61, %v2959_v44  ;;  %v1895_v1 = vld [vmem:[%s11637_s12 + $0xd0] sm:$0xff] }
 0x279   : > { %2603 = vmatprep.subr.mxu0 %v2010_v3  ;;  %2414 = vmatprep.mubr.f32.mxu0 %v8423_v42  ;;  %v2002_v42 = vld [vmem:[%s11637_s12 + $0x428] sm:$0xff]  ;;  %v6468_v61 = vld [vmem:[%s11637_s12 + $0x900] sm:$0xff] }
 0x27a   : > { %2556 = vmatprep.subr.mxu1 %v1950_v4  ;;  %2604 = vmatpush1.msra.mxu0 %v2009_v5  ;;  %v6513_v3 = vld [vmem:[%s11637_s12 + $0xa68] sm:$0xff]  ;;  %v1892_v4 = vld [vmem:[%s11637_s12 + $0xb8] sm:$0xff]  ;;  %v6512_v5 = vld [vmem:[%s11637_s12 + $0xa60] sm:$0xff] }
 0x27b   : > { %2557 = vmatpush2.msra.mxu1 %v1949_v6  ;;  %2605 = vmatprep.subr.mxu0 %v2006_v7  ;;  %v1891_v6 = vld [vmem:[%s11637_s12 + $0xb0] sm:$0xff]  ;;  %v6509_v7 = vld [vmem:[%s11637_s12 + $0xa48] sm:$0xff] }
 0x27c   : > { %2558 = vmatprep.subr.mxu1 %v1946_v32  ;;  %2606 = vmatpush1.msra.mxu0 %v2005_v22  ;;  %v1888_v32 = vld [vmem:[%s11637_s12 + $0x98] sm:$0xff]  ;;  %v6508_v22 = vld [vmem:[%s11637_s12 + $0xa40] sm:$0xff] }
 0x27d   : > { %2415 = vmatmul.mubr.f32.gmra.mxu0 %v8448_v54  ;;  %2559 = vmatpush2.msra.mxu1 %v1945_v8  ;;  %v1937_v54 = vld [vmem:[%s11637_s12 + $0x220] sm:$0xff]  ;;  %v1887_v8 = vld [vmem:[%s11637_s12 + $0x90] sm:$0xff] }
 0x27e   : > { %2607 = vmatprep.subr.mxu0 %v2002_v42  ;;  %2560 = vmatprep.subr.mxu1 %v1942_v9  ;;  %v6505_v42 = vld [vmem:[%s11637_s12 + $0xa28] sm:$0xff]  ;;  %v1884_v9 = vld [vmem:[%s11637_s12 + $0x78] sm:$0xff] }
 0x27f   : > { %2608 = vmatpush1.msra.mxu0 %v2001_v14  ;;  %2561 = vmatpush2.msra.mxu1 %v1941_v15  ;;  %v6504_v14 = vld [vmem:[%s11637_s12 + $0xa20] sm:$0xff]  ;;  %v1883_v15 = vld [vmem:[%s11637_s12 + $0x70] sm:$0xff] }
 0x280   : > { %2609 = vmatprep.subr.mxu0 %v1998_v16  ;;  %2562 = vmatprep.subr.mxu1 %v1938_v18  ;;  %v6501_v16 = vld [vmem:[%s11637_s12 + $0xa08] sm:$0xff]  ;;  %v1880_v18 = vld [vmem:[%s11637_s12 + $0x58] sm:$0xff] }
 0x281   : > { %2610 = vmatpush1.msra.mxu0 %v1997_v19  ;;  %2643 = vmatprep.mubr.f32.mxu0 %v7224_v38  ;;  %v6500_v19 = vld [vmem:[%s11637_s12 + $0xa00] sm:$0xff] }
 0x282   : > { %2563 = vmatpush2.msra.mxu1 %v1937_v54  ;;  %6464 = vmatmul.mubr.msk.f32.vlgmr.msra.gmra.mxu0 %vm1854_vm11, %v8390_v17  ;;  %v1879_v54 = vld [vmem:[%s11637_s12 + $0x50] sm:$0xff] }
 0x283   : > { %2656 = vmatprep.subr.mxu0 %v1932_v20  ;;  %2564 = vmatprep.subr.mxu1 %v1934_v23  ;;  %v6497_v20 = vld [vmem:[%s11637_s12 + $0x9e8] sm:$0xff]  ;;  %v1876_v23 = vld [vmem:[%s11637_s12 + $0x38] sm:$0xff] }
 0x284   : > { %2657 = vmatpush1.msra.mxu0 %v1931_v25  ;;  %2565 = vmatpush2.msra.mxu1 %v1933_v26  ;;  %v6496_v25 = vld [vmem:[%s11637_s12 + $0x9e0] sm:$0xff]  ;;  %v1875_v26 = vld [vmem:[%s11637_s12 + $0x30] sm:$0xff] }
 0x285   : > { %2658 = vmatprep.subr.mxu0 %v1928_v27  ;;  %2567 = vmatmul.mubr.f32.vlgmr.msra.gmra.mxu1 %v8382_v12  ;;  %v2008_v12 = vld [vmem:[%s11637_s12 + $0x458] sm:$0xff]  ;;  %v6493_v27 = vld [vmem:[%s11637_s12 + $0x9c8] sm:$0xff] }
 0x286   : > { %2649 = vmatprep.mubr.f32.mxu0 %v7224_v38  ;;  %2659 = vmatpush1.msra.mxu0 %v1927_v28  ;;  %v1872_v28 = vld [vmem:[%s11637_s12 + $0x18] sm:$0xff] }
 0x287   : > { %2757 = vmatprep.subr.mxu1 %v2012_v29  ;;  %2572 = vmatprep.mubr.f32.mxu1 %v8380_v10  ;;  %v6492_v29 = vld [vmem:[%s11637_s12 + $0x9c0] sm:$0xff]  ;;  %v6607_v10 = vld [vmem:[%s11637_s12 + $0xd58] sm:$0xff] }
 0x288   : > { %6465 = vmatmul.mubr.msk.f32.gmra.mxu0 %vm1854_vm11, %v8397_v21  ;;  %2660 = vmatprep.subr.mxu0 %v1924_v30  ;;  %v1871_v30 = vld [vmem:[%s11637_s12 + $0x10] sm:$0xff] }
 0x289   : > { %2758 = vmatpush1.msra.mxu1 %v2011_v31  ;;  %2661 = vmatpush1.msra.mxu0 %v1923_v33  ;;  %v6489_v31 = vld [vmem:[%s11637_s12 + $0x9a8] sm:$0xff]  ;;  %v1996_v33 = vld [vmem:[%s11637_s12 + $0x3f8] sm:$0xff] }
 0x28a   : > { %2720 = vmatprep.mubr.f32.mxu0 %v8385_v13  ;;  %2759 = vmatprep.subr.mxu1 %v2008_v12  ;;  %v1899_v13 = vld [vmem:[%s11637_s12 + $0xf0] sm:$0xff]  ;;  %v6488_v12 = vld [vmem:[%s11637_s12 + $0x9a0] sm:$0xff] }
 0x28b   : > { %2662 = vmatprep.subr.mxu0 %v1920_v34  ;;  %2760 = vmatpush1.msra.mxu1 %v2007_v36  ;;  %v1995_v34 = vld [vmem:[%s11637_s12 + $0x3f0] sm:$0xff]  ;;  %v6485_v36 = vld [vmem:[%s11637_s12 + $0x988] sm:$0xff] }
 0x28c   : > { %2573 = vmatmul.mubr.f32.gmra.mxu1 %v8373_v41  ;;  %2663 = vmatpush1.msra.mxu0 %v1919_v37  ;;  %v1911_v41 = vld [vmem:[%s11637_s12 + $0x150] sm:$0xff]  ;;  %v1992_v37 = vld [vmem:[%s11637_s12 + $0x3d8] sm:$0xff] }
 0x28d   : > { %2761 = vmatprep.subr.mxu1 %v2004_v40  ;;  %2664 = vmatprep.subr.mxu0 %v1916_v45  ;;  %v6484_v40 = vld [vmem:[%s11637_s12 + $0x980] sm:$0xff]  ;;  %v1991_v45 = vld [vmem:[%s11637_s12 + $0x3d0] sm:$0xff] }
 0x28e   : > { %2762 = vmatpush1.msra.mxu1 %v2003_v47  ;;  %2665 = vmatpush1.msra.mxu0 %v1915_v48  ;;  %v6481_v47 = vld [vmem:[%s11637_s12 + $0x968] sm:$0xff]  ;;  %v1988_v48 = vld [vmem:[%s11637_s12 + $0x3b8] sm:$0xff] }
 0x28f   : > { %2763 = vmatprep.subr.mxu1 %v2000_v49  ;;  %2666 = vmatprep.subr.mxu0 %v1912_v50  ;;  %v6480_v49 = vld [vmem:[%s11637_s12 + $0x960] sm:$0xff]  ;;  %v1987_v50 = vld [vmem:[%s11637_s12 + $0x3b0] sm:$0xff] }
 0x290   : > { %2764 = vmatpush1.msra.mxu1 %v1999_v51  ;;  %2797 = vmatprep.mubr.f32.mxu1 %v7224_v38  ;;  %v6477_v51 = vld [vmem:[%s11637_s12 + $0x948] sm:$0xff] }
 0x291   : > { %2667 = vmatpush1.msra.mxu0 %v1911_v41  ;;  %6466 = vmatmul.mubr.msk.f32.vlgmr.msra.gmra.mxu1 %vm1854_vm11, %v8390_v17  ;;  %v1903_v17 = vld [vmem:[%s11637_s12 + $0x110] sm:$0xff]  ;;  %v1984_v41 = vld [vmem:[%s11637_s12 + $0x398] sm:$0xff] }
 0x292   : > { %2978 = vmatprep.subr.mxu1 %v6529_v52  ;;  %2668 = vmatprep.subr.mxu0 %v1908_v53  ;;  %v6476_v52 = vld [vmem:[%s11637_s12 + $0x940] sm:$0xff]  ;;  %v1983_v53 = vld [vmem:[%s11637_s12 + $0x390] sm:$0xff] }
 0x293   : > { %2979 = vmatpush1.msra.mxu1 %v6528_v55  ;;  %2669 = vmatpush1.msra.mxu0 %v1907_v56  ;;  %v6473_v55 = vld [vmem:[%s11637_s12 + $0x928] sm:$0xff]  ;;  %v1980_v56 = vld [vmem:[%s11637_s12 + $0x378] sm:$0xff] }
 0x294   : > { %2980 = vmatprep.subr.mxu1 %v6525_v57  ;;  %2670 = vmatprep.subr.mxu0 %v1904_v58  ;;  %v6472_v57 = vld [vmem:[%s11637_s12 + $0x920] sm:$0xff]  ;;  %v1979_v58 = vld [vmem:[%s11637_s12 + $0x370] sm:$0xff] }
 0x295   : > { %2803 = vmatprep.mubr.f32.mxu1 %v7224_v38  ;;  %2981 = vmatpush1.msra.mxu1 %v6524_v60  ;;  %v6469_v60 = vld [vmem:[%s11637_s12 + $0x908] sm:$0xff] }
 0x296   : > { %2671 = vmatpush1.msra.mxu0 %v1903_v17  ;;  %6467 = vmatmul.mubr.msk.f32.gmra.mxu1 %vm1854_vm11, %v8397_v21  ;;  %v6516_v21 = vld [vmem:[%s11637_s12 + $0xa80] sm:$0xff]  ;;  %v1976_v17 = vld [vmem:[%s11637_s12 + $0x358] sm:$0xff] }
 0x297   : > { %2982 = vmatprep.subr.mxu1 %v6521_v35  ;;  %2672 = vmatprep.subr.mxu0 %v1900_v43  ;;  %v1975_v35 = vld [vmem:[%s11637_s12 + $0x350] sm:$0xff]  ;;  %v6593_v43 = vld [vmem:[%s11637_s12 + $0xce8] sm:$0xff] }
 0x298   : > { %2983 = vmatpush1.msra.mxu1 %v6520_v39  ;;  %3042 = vmatprep.mubr.f32.mxu1 %v8969_v62  ;;  %v1972_v39 = vld [vmem:[%s11637_s12 + $0x338] sm:$0xff] }
 0x299   : > { %2673 = vmatpush1.msra.mxu0 %v1899_v13  ;;  %2984 = vmatprep.subr.mxu1 %v6517_v46  ;;  %v6592_v13 = vld [vmem:[%s11637_s12 + $0xce0] sm:$0xff]  ;;  %v1971_v46 = vld [vmem:[%s11637_s12 + $0x330] sm:$0xff] }
 0x29a   : > { %2674 = vmatprep.subr.mxu0 %v1896_v0  ;;  %2985 = vmatpush1.msra.mxu1 %v6516_v21  ;;  %v6589_v0 = vld [vmem:[%s11637_s12 + $0xcc8] sm:$0xff]  ;;  %v1968_v21 = vld [vmem:[%s11637_s12 + $0x318] sm:$0xff] }
 0x29b   : > { %2675 = vmatpush1.msra.mxu0 %v1895_v1  ;;  %2986 = vmatprep.subr.mxu1 %v6513_v3  ;;  %v6588_v1 = vld [vmem:[%s11637_s12 + $0xcc0] sm:$0xff]  ;;  %v1967_v3 = vld [vmem:[%s11637_s12 + $0x310] sm:$0xff] }
 0x29c   : > { %2676 = vmatprep.subr.mxu0 %v1892_v4  ;;  %2987 = vmatpush1.msra.mxu1 %v6512_v5  ;;  %v6585_v4 = vld [vmem:[%s11637_s12 + $0xca8] sm:$0xff]  ;;  %v1964_v5 = vld [vmem:[%s11637_s12 + $0x2f8] sm:$0xff] }
 0x29d   : > { %2677 = vmatpush1.msra.mxu0 %v1891_v6  ;;  %2988 = vmatprep.subr.mxu1 %v6509_v7  ;;  %v6584_v6 = vld [vmem:[%s11637_s12 + $0xca0] sm:$0xff]  ;;  %v1963_v7 = vld [vmem:[%s11637_s12 + $0x2f0] sm:$0xff] }
 0x29e   : > { %2678 = vmatprep.subr.mxu0 %v1888_v32  ;;  %2989 = vmatpush1.msra.mxu1 %v6508_v22  ;;  %v6581_v32 = vld [vmem:[%s11637_s12 + $0xc88] sm:$0xff]  ;;  %v1960_v22 = vld [vmem:[%s11637_s12 + $0x2d8] sm:$0xff] }
 0x29f   : > { %2679 = vmatpush1.msra.mxu0 %v1887_v8  ;;  %2990 = vmatprep.subr.mxu1 %v6505_v42  ;;  %v6580_v8 = vld [vmem:[%s11637_s12 + $0xc80] sm:$0xff]  ;;  %v1959_v42 = vld [vmem:[%s11637_s12 + $0x2d0] sm:$0xff] }
 0x2a0   : > { %2680 = vmatprep.subr.mxu0 %v1884_v9  ;;  %2991 = vmatpush1.msra.mxu1 %v6504_v14  ;;  %v6577_v9 = vld [vmem:[%s11637_s12 + $0xc68] sm:$0xff]  ;;  %v1956_v14 = vld [vmem:[%s11637_s12 + $0x2b8] sm:$0xff] }
 0x2a1   : > { %2681 = vmatpush1.msra.mxu0 %v1883_v15  ;;  %2992 = vmatprep.subr.mxu1 %v6501_v16  ;;  %v6576_v15 = vld [vmem:[%s11637_s12 + $0xc60] sm:$0xff]  ;;  %v1955_v16 = vld [vmem:[%s11637_s12 + $0x2b0] sm:$0xff] }
 0x2a2   : > { %2682 = vmatprep.subr.mxu0 %v1880_v18  ;;  %2993 = vmatpush1.msra.mxu1 %v6500_v19  ;;  %v6573_v18 = vld [vmem:[%s11637_s12 + $0xc48] sm:$0xff]  ;;  %v1952_v19 = vld [vmem:[%s11637_s12 + $0x298] sm:$0xff] }
 0x2a3   : > { %2683 = vmatpush1.msra.mxu0 %v1879_v54  ;;  %2994 = vmatprep.subr.mxu1 %v6497_v20  ;;  %v6572_v54 = vld [vmem:[%s11637_s12 + $0xc40] sm:$0xff]  ;;  %v1951_v20 = vld [vmem:[%s11637_s12 + $0x290] sm:$0xff] }
 0x2a4   : > { %2684 = vmatprep.subr.mxu0 %v1876_v23  ;;  %2995 = vmatpush1.msra.mxu1 %v6496_v25  ;;  %v6569_v23 = vld [vmem:[%s11637_s12 + $0xc28] sm:$0xff]  ;;  %v1948_v25 = vld [vmem:[%s11637_s12 + $0x278] sm:$0xff] }
 0x2a5   : > { %2685 = vmatpush1.msra.mxu0 %v1875_v26  ;;  %2996 = vmatprep.subr.mxu1 %v6493_v27  ;;  %v6568_v26 = vld [vmem:[%s11637_s12 + $0xc20] sm:$0xff]  ;;  %v1947_v27 = vld [vmem:[%s11637_s12 + $0x270] sm:$0xff] }
 0x2a6   : > { %2686 = vmatprep.subr.mxu0 %v1872_v28  ;;  %2997 = vmatpush1.msra.mxu1 %v6492_v29  ;;  %v6565_v28 = vld [vmem:[%s11637_s12 + $0xc08] sm:$0xff]  ;;  %v1944_v29 = vld [vmem:[%s11637_s12 + $0x258] sm:$0xff] }
 0x2a7   : > { %2687 = vmatpush1.msra.mxu0 %v1871_v30  ;;  %2998 = vmatprep.subr.mxu1 %v6489_v31  ;;  %v6564_v30 = vld [vmem:[%s11637_s12 + $0xc00] sm:$0xff]  ;;  %v1943_v31 = vld [vmem:[%s11637_s12 + $0x250] sm:$0xff] }
 0x2a8   : > { %2688 = vmatprep.subr.mxu0 %v1996_v33  ;;  %2999 = vmatpush1.msra.mxu1 %v6488_v12  ;;  %v6561_v33 = vld [vmem:[%s11637_s12 + $0xbe8] sm:$0xff]  ;;  %v1940_v12 = vld [vmem:[%s11637_s12 + $0x238] sm:$0xff] }
 0x2a9   : > { %2689 = vmatpush2.msra.mxu0 %v1995_v34  ;;  %3000 = vmatprep.subr.mxu1 %v6485_v36  ;;  %v6560_v34 = vld [vmem:[%s11637_s12 + $0xbe0] sm:$0xff]  ;;  %v1939_v36 = vld [vmem:[%s11637_s12 + $0x230] sm:$0xff] }
 0x2aa   : > { %2690 = vmatprep.subr.mxu0 %v1992_v37  ;;  %3001 = vmatpush1.msra.mxu1 %v6484_v40  ;;  %v6557_v37 = vld [vmem:[%s11637_s12 + $0xbc8] sm:$0xff]  ;;  %v1936_v40 = vld [vmem:[%s11637_s12 + $0x218] sm:$0xff] }
 0x2ab   : > { %2691 = vmatpush2.msra.mxu0 %v1991_v45  ;;  %3002 = vmatprep.subr.mxu1 %v6481_v47  ;;  %v6556_v45 = vld [vmem:[%s11637_s12 + $0xbc0] sm:$0xff]  ;;  %v1935_v47 = vld [vmem:[%s11637_s12 + $0x210] sm:$0xff] }
 0x2ac   : > { %2692 = vmatprep.subr.mxu0 %v1988_v48  ;;  %3003 = vmatpush1.msra.mxu1 %v6480_v49  ;;  %v6553_v48 = vld [vmem:[%s11637_s12 + $0xba8] sm:$0xff]  ;;  %v6552_v49 = vld [vmem:[%s11637_s12 + $0xba0] sm:$0xff] }
 0x2ad   : > { %2693 = vmatpush2.msra.mxu0 %v1987_v50  ;;  %3004 = vmatprep.subr.mxu1 %v6477_v51  ;;  %v6609_v50 = vld [vmem:[%s11637_s12 + $0xd68] sm:$0xff] }
 0x2ae   : > { %2694 = vmatprep.subr.mxu0 %v1984_v41  ;;  %3005 = vmatpush1.msra.mxu1 %v6476_v52  ;;  %v6549_v51 = vld [vmem:[%s11637_s12 + $0xb88] sm:$0xff]  ;;  %v6608_v41 = vld [vmem:[%s11637_s12 + $0xd60] sm:$0xff]  ;;  %v9260_v52 = vld [vmem:[#allocation3] sm:$0xff] }
 0x2af   : > { %2695 = vmatpush2.msra.mxu0 %v1983_v53  ;;  %3006 = vmatprep.subr.mxu1 %v6473_v55  ;;  %v6548_v53 = vld [vmem:[%s11637_s12 + $0xb80] sm:$0xff]  ;;  %v6605_v55 = vld [vmem:[%s11637_s12 + $0xd48] sm:$0xff] }
 0x2b0   : > { %2696 = vmatprep.subr.mxu0 %v1980_v56  ;;  %3007 = vmatpush1.msra.mxu1 %v6472_v57  ;;  %v9269_v56 = vld [vmem:[#allocation3 + $0x20] sm:$0xff]  ;;  %v6545_v57 = vld [vmem:[%s11637_s12 + $0xb68] sm:$0xff] }
 0x2b1   : > { %2697 = vmatpush2.msra.mxu0 %v1979_v58  ;;  %3008 = vmatprep.subr.mxu1 %v6469_v60  ;;  %v6604_v58 = vld [vmem:[%s11637_s12 + $0xd40] sm:$0xff] }
 0x2b2   : > { %2698 = vmatprep.subr.mxu0 %v1976_v17  ;;  %3009 = vmatpush1.msra.mxu1 %v6468_v61  ;;  %v6544_v60 = vld [vmem:[%s11637_s12 + $0xb60] sm:$0xff]  ;;  %v6601_v17 = vld [vmem:[%s11637_s12 + $0xd28] sm:$0xff] }
 0x2b3   : > { %2699 = vmatpush2.msra.mxu0 %v1975_v35  ;;  %3010 = vmatprep.subr.mxu1 %v6593_v43  ;;  %v6541_v61 = vld [vmem:[%s11637_s12 + $0xb48] sm:$0xff]  ;;  %v6600_v35 = vld [vmem:[%s11637_s12 + $0xd20] sm:$0xff] }
 0x2b4   : > { %2700 = vmatprep.subr.mxu0 %v1972_v39  ;;  %3011 = vmatpush2.msra.mxu1 %v6592_v13  ;;  %v6540_v43 = vld [vmem:[%s11637_s12 + $0xb40] sm:$0xff]  ;;  %v9293_v39 = vld [vmem:[#allocation3 + $0x18] sm:$0xff] }
 0x2b5   : > { %2701 = vmatpush2.msra.mxu0 %v1971_v46  ;;  %3012 = vmatprep.subr.mxu1 %v6589_v0  ;;  %v6597_v13 = vld [vmem:[%s11637_s12 + $0xd08] sm:$0xff]  ;;  %v9302_v0 = vld [vmem:[#allocation3 + $0x28] sm:$0xff] }
 0x2b6   : > { %2702 = vmatprep.subr.mxu0 %v1968_v21  ;;  %3013 = vmatpush2.msra.mxu1 %v6588_v1  ;;  %v6537_v46 = vld [vmem:[%s11637_s12 + $0xb28] sm:$0xff]  ;;  %v2962_v21 = vrot.slane %v9302_v0, 2  ;;  %v6596_v1 = vld [vmem:[%s11637_s12 + $0xd00] sm:$0xff] }
 0x2b7   : > { %2703 = vmatpush2.msra.mxu0 %v1967_v3  ;;  %3014 = vmatprep.subr.mxu1 %v6585_v4  ;;  %v6536_v3 = vld [vmem:[%s11637_s12 + $0xb20] sm:$0xff] }
 0x2b8   : > { %2704 = vmatprep.subr.mxu0 %v1964_v5  ;;  %3015 = vmatpush2.msra.mxu1 %v6584_v6  ;;  %v9311_v4 = vld [vmem:[#allocation3 + $0x10] sm:$0xff]  ;;  %v6531_v6 = vld [vmem:[%s11637_s12 + $0xaf8] sm:$0xff] }
 0x2b9   : > { %2705 = vmatpush2.msra.mxu0 %v1963_v7  ;;  %3016 = vmatprep.subr.mxu1 %v6581_v32  ;;  %v2961_v5 = vrot.slane %v9311_v4, 2  ;;  %v6533_v7 = vld [vmem:[%s11637_s12 + $0xb08] sm:$0xff]  ;;  %v2955_v32 = vrot.slane %v9260_v52, 2 }
 0x2ba   : > { %2706 = vmatprep.subr.mxu0 %v1960_v22  ;;  %3017 = vmatpush2.msra.mxu1 %v6580_v8  ;;  %v6530_v8 = vld [vmem:[%s11637_s12 + $0xaf0] sm:$0xff] }
 0x2bb   : > { %2707 = vmatpush2.msra.mxu0 %v1959_v42  ;;  %3018 = vmatprep.subr.mxu1 %v6577_v9  ;;  %v9323_v22 = vsel %vm793_vm0, %v2961_v5, %v2962_v21  ;;  %v6532_v42 = vld [vmem:[%s11637_s12 + $0xb00] sm:$0xff]  ;;  %v6527_v9 = vld [vmem:[%s11637_s12 + $0xad8] sm:$0xff]  ;;  %v6478_v5 = vld [vmem:[%s11637_s12 + $0x950] sm:$0xff] }
 0x2bc   : > { %2708 = vmatprep.subr.mxu0 %v1956_v14  ;;  %3019 = vmatpush2.msra.mxu1 %v6576_v15  ;;  %v2956_v14 = vrot.slane %v9293_v39, 2  ;;  %v9337_v15 = vld [vmem:[#allocation3 + $0x38] sm:$0x3] }
 0x2bd   : > { %2709 = vmatpush2.msra.mxu0 %v1955_v16  ;;  %3020 = vmatprep.subr.mxu1 %v6573_v18  ;;  %v2966_v16 = vrot.slane %v9337_v15, 2  ;;  %v6526_v18 = vld [vmem:[%s11637_s12 + $0xad0] sm:$0xff] }
 0x2be   : > { %2710 = vmatprep.subr.mxu0 %v1952_v19  ;;  %3021 = vmatpush2.msra.mxu1 %v6572_v54  ;;  %v9343_v19 = vld [vmem:[#allocation3 + $0x40] sm:$0x3] }
 0x2bf   : > { %2711 = vmatpush2.msra.mxu0 %v1951_v20  ;;  %3022 = vmatprep.subr.mxu1 %v6569_v23  ;;  %v2968_v54 = vrot.slane %v9343_v19, 2  ;;  %v9347_v20 = vsel %vm793_vm0, %v2955_v32, %v2956_v14  ;;  %v6611_v23 = vld [vmem:[%s11637_s12 + $0xd78] sm:$0xff] }
 0x2c0   : > { %2712 = vmatprep.subr.mxu0 %v1948_v25  ;;  %3023 = vmatpush2.msra.mxu1 %v6568_v26  ;;  %v6523_v25 = vld [vmem:[%s11637_s12 + $0xab8] sm:$0xff]  ;;  %v9360_v26 = vsel %vm793_vm0, %v2959_v44, %v2966_v16  ;;  %v6657_v16 = vld [vmem:[%s11668_s24 + $0x330] sm:$0xff] }
 0x2c1   : > { %2713 = vmatpush2.msra.mxu0 %v1947_v27  ;;  %3024 = vmatprep.subr.mxu1 %v6565_v28  ;;  %v6610_v27 = vld [vmem:[%s11637_s12 + $0xd70] sm:$0xff]  ;;  %v6471_v32 = vld [vmem:[%s11637_s12 + $0x918] sm:$0xff] }
 0x2c2   : > { %2714 = vmatprep.subr.mxu0 %v1944_v29  ;;  %3025 = vmatpush2.msra.mxu1 %v6564_v30  ;;  %v6522_v28 = vld [vmem:[%s11637_s12 + $0xab0] sm:$0xff]  ;;  %v2969_v29 = vsel %vm793_vm0, %v2962_v21, %v2968_v54  ;;  %v9373_v30 = vld [vmem:[#allocation3 + $0x30] sm:$0x3]  ;;  %v6483_v21 = vld [vmem:[%s11637_s12 + $0x978] sm:$0xff] }
 0x2c3   : > { %2715 = vmatpush2.msra.mxu0 %v1943_v31  ;;  %3026 = vmatprep.subr.mxu1 %v6561_v33  ;;  %v2964_v44 = vrot.slane %v9373_v30, 2  ;;  %v6519_v31 = vld [vmem:[%s11637_s12 + $0xa98] sm:$0xff]  ;;  %v6606_v33 = vld [vmem:[%s11637_s12 + $0xd50] sm:$0xff] }
 0x2c4   : > { %2716 = vmatprep.subr.mxu0 %v1940_v12  ;;  %3027 = vmatpush2.msra.mxu1 %v6560_v34  ;;  %v6518_v12 = vld [vmem:[%s11637_s12 + $0xa90] sm:$0xff]  ;;  %v6603_v34 = vld [vmem:[%s11637_s12 + $0xd38] sm:$0xff] }
 0x2c5   : > { %2717 = vmatpush2.msra.mxu0 %v1939_v36  ;;  %3028 = vmatprep.subr.mxu1 %v6557_v37  ;;  %v6515_v36 = vld [vmem:[%s11637_s12 + $0xa78] sm:$0xff]  ;;  %v9394_v37 = vsel %vm793_vm0, %v2956_v14, %v2964_v44  ;;  %v6594_v14 = vld [vmem:[%s11637_s12 + $0xcf0] sm:$0xff]  ;;  %v6652_v44 = vld [vmem:[%s11668_s24 + $0x308] sm:$0xff] }
 0x2c6   : > { %2718 = vmatprep.subr.mxu0 %v1936_v40  ;;  %3029 = vmatpush2.msra.mxu1 %v6556_v45  ;;  %v6602_v40 = vld [vmem:[%s11637_s12 + $0xd30] sm:$0xff]  ;;  %v6599_v45 = vld [vmem:[%s11637_s12 + $0xd18] sm:$0xff] }
 0x2c7   : > { %2719 = vmatpush2.msra.mxu0 %v1935_v47  ;;  %3030 = vmatprep.subr.mxu1 %v6553_v48  ;;  %v6511_v47 = vld [vmem:[%s11637_s12 + $0xa58] sm:$0xff]  ;;  %v6598_v48 = vld [vmem:[%s11637_s12 + $0xd10] sm:$0xff] }
 0x2c8   : > { %2721 = vmatmul.mubr.f32.vlgmr.msra.gmra.mxu0 %v9260_v52  ;;  %3031 = vmatpush2.msra.mxu1 %v6552_v49  ;;  %v6510_v49 = vld [vmem:[%s11637_s12 + $0xa50] sm:$0xff] }
 0x2c9   : > { %3079 = vmatprep.subr.mxu0 %v6609_v50  ;;  %2726 = vmatprep.mubr.f32.mxu0 %v9269_v56  ;;  %v6507_v50 = vld [vmem:[%s11637_s12 + $0xa38] sm:$0xff]  ;;  %v6590_v54 = vld [vmem:[%s11637_s12 + $0xcd0] sm:$0xff] }
 0x2ca   : > { %3032 = vmatprep.subr.mxu1 %v6549_v51  ;;  %3080 = vmatpush1.msra.mxu0 %v6608_v41  ;;  %v6506_v51 = vld [vmem:[%s11637_s12 + $0xa30] sm:$0xff]  ;;  %v6503_v41 = vld [vmem:[%s11637_s12 + $0xa18] sm:$0xff] }
 0x2cb   : > { %3033 = vmatpush2.msra.mxu1 %v6548_v53  ;;  %3081 = vmatprep.subr.mxu0 %v6605_v55  ;;  %v6502_v53 = vld [vmem:[%s11637_s12 + $0xa10] sm:$0xff]  ;;  %v6499_v55 = vld [vmem:[%s11637_s12 + $0x9f8] sm:$0xff] }
 0x2cc   : > { %3034 = vmatprep.subr.mxu1 %v6545_v57  ;;  %3082 = vmatpush1.msra.mxu0 %v6604_v58  ;;  %v6498_v57 = vld [vmem:[%s11637_s12 + $0x9f0] sm:$0xff]  ;;  %v6495_v58 = vld [vmem:[%s11637_s12 + $0x9d8] sm:$0xff] }
 0x2cd   : > { %2727 = vmatmul.mubr.f32.gmra.mxu0 %v9293_v39  ;;  %3035 = vmatpush2.msra.mxu1 %v6544_v60  ;;  %v9447_v60 = vld [vmem:[#allocation3 + $0x8] sm:$0xff] }
 0x2ce   : > { %3083 = vmatprep.subr.mxu0 %v6601_v17  ;;  %3036 = vmatprep.subr.mxu1 %v6541_v61  ;;  %v6494_v17 = vld [vmem:[%s11637_s12 + $0x9d0] sm:$0xff]  ;;  %v3333_v61 = vld [vmem:[%s11643_s18] sm:$0xff] }
 0x2cf   : > { %3084 = vmatpush1.msra.mxu0 %v6600_v35  ;;  %3037 = vmatpush2.msra.mxu1 %v6540_v43  ;;  %v6491_v35 = vld [vmem:[%s11637_s12 + $0x9b8] sm:$0xff]  ;;  %v6490_v43 = vld [vmem:[%s11637_s12 + $0x9b0] sm:$0xff] }
 0x2d0   : > { %3085 = vmatprep.subr.mxu0 %v6597_v13  ;;  %3038 = vmatprep.subr.mxu1 %v6537_v46  ;;  %v6487_v13 = vld [vmem:[%s11637_s12 + $0x998] sm:$0xff]  ;;  %v6486_v46 = vld [vmem:[%s11637_s12 + $0x990] sm:$0xff] }
 0x2d1   : > { %3086 = vmatpush1.msra.mxu0 %v6596_v1  ;;  %3119 = vmatprep.mubr.f32.mxu0 %v7224_v38  ;;  %v6482_v1 = vld [vmem:[%s11637_s12 + $0x970] sm:$0xff] }
 0x2d2   : > { %3039 = vmatpush2.msra.mxu1 %v6536_v3  ;;  %6612 = vmatmul.mubr.msk.f32.vlgmr.msra.gmra.mxu0 %vm1854_vm11, %v9323_v22  ;;  %v6479_v3 = vld [vmem:[%s11637_s12 + $0x958] sm:$0xff] }
 0x2d3   : > { %3132 = vmatprep.subr.mxu0 %v6531_v6  ;;  %3040 = vmatprep.subr.mxu1 %v6533_v7  ;;  %v6475_v6 = vld [vmem:[%s11637_s12 + $0x938] sm:$0xff]  ;;  %v6474_v7 = vld [vmem:[%s11637_s12 + $0x930] sm:$0xff] }
 0x2d4   : > { %3133 = vmatpush1.msra.mxu0 %v6530_v8  ;;  %3041 = vmatpush2.msra.mxu1 %v6532_v42  ;;  %v6470_v8 = vld [vmem:[%s11637_s12 + $0x910] sm:$0xff]  ;;  %v6595_v42 = vld [vmem:[%s11637_s12 + $0xcf8] sm:$0xff] }
 0x2d5   : > { %3134 = vmatprep.subr.mxu0 %v6527_v9  ;;  %3043 = vmatmul.mubr.f32.vlgmr.msra.gmra.mxu1 %v9347_v20  ;;  %v6658_v9 = vld [vmem:[%s11668_s24 + $0x338] sm:$0xff] }
 0x2d6   : > { %3125 = vmatprep.mubr.f32.mxu0 %v7224_v38  ;;  %3135 = vmatpush1.msra.mxu0 %v6526_v18  ;;  %v6591_v18 = vld [vmem:[%s11637_s12 + $0xcd8] sm:$0xff] }
 0x2d7   : > { %3233 = vmatprep.subr.mxu1 %v6611_v23  ;;  %3048 = vmatprep.mubr.f32.mxu1 %v9360_v26  ;;  %v6655_v23 = vld [vmem:[%s11668_s24 + $0x320] sm:$0xff] }
 0x2d8   : > { %6613 = vmatmul.mubr.msk.f32.gmra.mxu0 %vm1854_vm11, %v2969_v29  ;;  %3136 = vmatprep.subr.mxu0 %v6523_v25  ;;  %v6587_v25 = vld [vmem:[%s11637_s12 + $0xcb8] sm:$0xff] }
 0x2d9   : > { %3234 = vmatpush1.msra.mxu1 %v6610_v27  ;;  %3137 = vmatpush1.msra.mxu0 %v6522_v28  ;;  %v6654_v27 = vld [vmem:[%s11668_s24 + $0x318] sm:$0xff]  ;;  %v6586_v28 = vld [vmem:[%s11637_s12 + $0xcb0] sm:$0xff] }
 0x2da   : > { %3196 = vmatprep.mubr.f32.mxu0 %v8969_v62  ;;  %3235 = vmatprep.subr.mxu1 %v6607_v10  ;;  %v6514_v62 = vld [vmem:[%s11637_s12 + $0xa70] sm:$0xff]  ;;  %v6583_v10 = vld [vmem:[%s11637_s12 + $0xc98] sm:$0xff] }
 0x2db   : > { %3138 = vmatprep.subr.mxu0 %v6519_v31  ;;  %3236 = vmatpush1.msra.mxu1 %v6606_v33  ;;  %v6582_v31 = vld [vmem:[%s11637_s12 + $0xc90] sm:$0xff]  ;;  %v6651_v33 = vld [vmem:[%s11668_s24 + $0x300] sm:$0xff] }
 0x2dc   : > { %3049 = vmatmul.mubr.f32.gmra.mxu1 %v9394_v37  ;;  %3139 = vmatpush1.msra.mxu0 %v6518_v12  ;;  %v6579_v12 = vld [vmem:[%s11637_s12 + $0xc78] sm:$0xff] }
 0x2dd   : > { %3237 = vmatprep.subr.mxu1 %v6603_v34  ;;  %3140 = vmatprep.subr.mxu0 %v6515_v36  ;;  %v6650_v34 = vld [vmem:[%s11668_s24 + $0x2f8] sm:$0xff]  ;;  %v6578_v36 = vld [vmem:[%s11637_s12 + $0xc70] sm:$0xff] }
 0x2de   : > { %3238 = vmatpush1.msra.mxu1 %v6602_v40  ;;  %3141 = vmatpush1.msra.mxu0 %v6514_v62  ;;  %v6649_v40 = vld [vmem:[%s11668_s24 + $0x2f0] sm:$0xff]  ;;  %v6575_v62 = vld [vmem:[%s11637_s12 + $0xc58] sm:$0xff] }
 0x2df   : > { %3239 = vmatprep.subr.mxu1 %v6599_v45  ;;  %3142 = vmatprep.subr.mxu0 %v6511_v47  ;;  %v6648_v45 = vld [vmem:[%s11668_s24 + $0x2e8] sm:$0xff]  ;;  %v6574_v47 = vld [vmem:[%s11637_s12 + $0xc50] sm:$0xff] }
 0x2e0   : > { %3240 = vmatpush1.msra.mxu1 %v6598_v48  ;;  %3273 = vmatprep.mubr.f32.mxu1 %v7224_v38  ;;  %v6647_v48 = vld [vmem:[%s11668_s24 + $0x2e0] sm:$0xff] }
 0x2e1   : > { %3143 = vmatpush1.msra.mxu0 %v6510_v49  ;;  %6614 = vmatmul.mubr.msk.f32.vlgmr.msra.gmra.mxu1 %vm1854_vm11, %v9323_v22  ;;  %v9511_v22 = vld [vmem:[%s11643_s18 + $0x8] sm:$0xff]  ;;  %v6571_v49 = vld [vmem:[%s11637_s12 + $0xc38] sm:$0xff] }
 0x2e2   : > { %6616 = vmatprep.subr.msk.mxu1 %vm3338_vm12, %v9337_v15  ;;  %3144 = vmatprep.subr.mxu0 %v6507_v50  ;;  %v6646_v50 = vld [vmem:[%s11668_s24 + $0x2d8] sm:$0xff] }
 0x2e3   : > { %6617 = vmatpush1.msk.msra.mxu1 %vm3338_vm12, %v9373_v30  ;;  %3145 = vmatpush1.msra.mxu0 %v6506_v51  ;;  %v6570_v51 = vld [vmem:[%s11637_s12 + $0xc30] sm:$0xff] }
 0x2e4   : > { %3373 = vmatprep.subr.mxu1 %v9269_v56  ;;  %3146 = vmatprep.subr.mxu0 %v6503_v41  ;;  %v6645_v41 = vld [vmem:[%s11668_s24 + $0x2d0] sm:$0xff] }
 0x2e5   : > { %3279 = vmatprep.mubr.f32.mxu1 %v7224_v38  ;;  %3374 = vmatpush1.msra.mxu1 %v9293_v39 }
 0x2e6   : > { %3147 = vmatpush1.msra.mxu0 %v6502_v53  ;;  %6615 = vmatmul.mubr.msk.f32.gmra.mxu1 %vm1854_vm11, %v2969_v29  ;;  %v6653_v29 = vld [vmem:[%s11668_s24 + $0x310] sm:$0xff]  ;;  %v6567_v53 = vld [vmem:[%s11637_s12 + $0xc18] sm:$0xff] }
 0x2e7   : > { %3375 = vmatprep.subr.mxu1 %v9447_v60  ;;  %3148 = vmatprep.subr.mxu0 %v6499_v55  ;;  %v6644_v55 = vld [vmem:[%s11668_s24 + $0x2c8] sm:$0xff] }
 0x2e8   : > { %3376 = vmatpush1.msra.mxu1 %v9260_v52  ;;  %3149 = vmatpush1.msra.mxu0 %v6498_v57  ;;  %v6566_v57 = vld [vmem:[%s11637_s12 + $0xc10] sm:$0xff] }
 0x2e9   : > { %3150 = vmatprep.subr.mxu0 %v6495_v58  ;;  %3409 = vmatprep.mubr.f32.mxu1 %v7224_v38  ;;  %v6643_v58 = vld [vmem:[%s11668_s24 + $0x2c0] sm:$0xff] }
 0x2ea   : > { %7084 = vmatprep.subr.mxu1 %v7224_v38  ;;  %3151 = vmatpush1.msra.mxu0 %v6494_v17  ;;  %v6563_v17 = vld [vmem:[%s11637_s12 + $0xbf8] sm:$0xff] }
 0x2eb   : > { %6618 = vmatmul.mubr.msk.f32.vlgmr.msra.gmra.mxu1 %vm3334_vm13, %v3333_v61  ;;  %3152 = vmatprep.subr.mxu0 %v6491_v35  ;;  %v6562_v35 = vld [vmem:[%s11637_s12 + $0xbf0] sm:$0xff] }
 0x2ec   : > { %7085 = vmatpush3.msk.msra.mxu1 %vm3338_vm12, %v9343_v19  ;;  %3153 = vmatpush1.msra.mxu0 %v6490_v43  ;;  %v6641_v43 = vld [vmem:[%s11668_s24 + $0x2b0] sm:$0xff] }
 0x2ed   : > { %7086 = vmatprep.subr.mxu1 %v7224_v38  ;;  %3154 = vmatprep.subr.mxu0 %v6487_v13  ;;  %v6559_v13 = vld [vmem:[%s11637_s12 + $0xbd8] sm:$0xff] }
 0x2ee   : > { %7087 = vmatpush3.msra.mxu1 %v9302_v0  ;;  %3155 = vmatpush1.msra.mxu0 %v6486_v46  ;;  %v6640_v46 = vld [vmem:[%s11668_s24 + $0x2a8] sm:$0xff] }
 0x2ef   : > { %7088 = vmatprep.subr.mxu1 %v7224_v38  ;;  %3156 = vmatprep.subr.mxu0 %v6483_v21  ;;  %v6558_v21 = vld [vmem:[%s11637_s12 + $0xbd0] sm:$0xff] }
 0x2f0   : > { %7089 = vmatpush3.msra.mxu1 %v9311_v4  ;;  %7090 = vmatprep.mubr.msk.f32.mxu1 %vm7225_vm14, %v7224_v38 }
 0x2f1   : > { %6622 = vmatprep.subr.msk.mxu1 %vm3338_vm12, %v9337_v15  ;;  %3157 = vmatpush1.msra.mxu0 %v6482_v1  ;;  %v6639_v1 = vld [vmem:[%s11668_s24 + $0x2a0] sm:$0xff] }
 0x2f2   : > { %7091 = vmatmul.mubr.msk.f32.vlgmr.msra.gmra.mxu1 %vm3334_vm13, %v3333_v61  ;;  %3158 = vmatprep.subr.mxu0 %v6479_v3  ;;  %v6642_v61 = vld [vmem:[%s11668_s24 + $0x2b8] sm:$0xff] }
 0x2f3   : > { %6623 = vmatpush1.msk.msra.mxu1 %vm3338_vm12, %v9373_v30  ;;  %3159 = vmatpush1.msra.mxu0 %v6478_v5  ;;  %v6555_v3 = vld [vmem:[%s11637_s12 + $0xbb8] sm:$0xff] }
 0x2f4   : > { %3591 = vmatprep.subr.mxu1 %v9269_v56  ;;  %3160 = vmatprep.subr.mxu0 %v6475_v6  ;;  %v6638_v5 = vld [vmem:[%s11668_s24 + $0x298] sm:$0xff]  ;;  %v6554_v6 = vld [vmem:[%s11637_s12 + $0xbb0] sm:$0xff] }
 0x2f5   : > { %3592 = vmatpush1.msra.mxu1 %v9293_v39  ;;  %3161 = vmatpush1.msra.mxu0 %v6474_v7  ;;  %v6637_v7 = vld [vmem:[%s11668_s24 + $0x290] sm:$0xff] }
 0x2f6   : > { %3593 = vmatprep.subr.mxu1 %v9447_v60  ;;  %3627 = vmatprep.mubr.f32.mxu1 %v7224_v38 }
 0x2f7   : > { %3594 = vmatpush1.msra.mxu1 %v9260_v52  ;;  %3162 = vmatprep.subr.mxu0 %v6471_v32  ;;  %v6656_v52 = vld [vmem:[%s11668_s24 + $0x328] sm:$0xff]  ;;  %v6551_v32 = vld [vmem:[%s11637_s12 + $0xb98] sm:$0xff] }
 0x2f8   : > { %6624 = vmatmul.mubr.msk.f32.vlgmr.msra.gmra.mxu1 %vm3334_vm13, %v9511_v22  ;;  %3163 = vmatpush1.msra.mxu0 %v6470_v8  ;;  %v6636_v8 = vld [vmem:[%s11668_s24 + $0x288] sm:$0xff] }
 0x2f9   : > { %3164 = vmatprep.subr.mxu0 %v6595_v42  ;;  %3780 = vmatprep.subr.mxu1 %v6658_v9  ;;  %v6550_v42 = vld [vmem:[%s11637_s12 + $0xb90] sm:$0xff]  ;;  %v6635_v9 = vld [vmem:[%s11668_s24 + $0x280] sm:$0xff] }
 0x2fa   : > { %3165 = vmatpush2.msra.mxu0 %v6594_v14  ;;  %3781 = vmatpush1.msra.mxu1 %v6657_v16  ;;  %v6547_v14 = vld [vmem:[%s11637_s12 + $0xb78] sm:$0xff] }
 0x2fb   : > { %3166 = vmatprep.subr.mxu0 %v6591_v18  ;;  %3782 = vmatprep.subr.mxu1 %v6656_v52  ;;  %v6634_v16 = vld [vmem:[%s11668_s24 + $0x278] sm:$0xff]  ;;  %v6546_v18 = vld [vmem:[%s11637_s12 + $0xb70] sm:$0xff] }
 0x2fc   : > { %3167 = vmatpush2.msra.mxu0 %v6590_v54  ;;  %3783 = vmatpush1.msra.mxu1 %v6655_v23  ;;  %v6633_v52 = vld [vmem:[%s11668_s24 + $0x270] sm:$0xff]  ;;  %v6543_v54 = vld [vmem:[%s11637_s12 + $0xb58] sm:$0xff]  ;;  %v6632_v23 = vld [vmem:[%s11668_s24 + $0x268] sm:$0xff] }
 0x2fd   : > { %3168 = vmatprep.subr.mxu0 %v6587_v25  ;;  %3784 = vmatprep.subr.mxu1 %v6654_v27  ;;  %v6542_v25 = vld [vmem:[%s11637_s12 + $0xb50] sm:$0xff]  ;;  %v6631_v27 = vld [vmem:[%s11668_s24 + $0x260] sm:$0xff] }
 0x2fe   : > { %3169 = vmatpush2.msra.mxu0 %v6586_v28  ;;  %3785 = vmatpush1.msra.mxu1 %v6653_v29  ;;  %v6539_v28 = vld [vmem:[%s11637_s12 + $0xb38] sm:$0xff] }
 0x2ff   : > { %3170 = vmatprep.subr.mxu0 %v6583_v10  ;;  %3786 = vmatprep.subr.mxu1 %v6652_v44  ;;  %v6630_v29 = vld [vmem:[%s11668_s24 + $0x258] sm:$0xff]  ;;  %v6538_v10 = vld [vmem:[%s11637_s12 + $0xb30] sm:$0xff] }
 0x300   : > { %3171 = vmatpush2.msra.mxu0 %v6582_v31  ;;  %3787 = vmatpush1.msra.mxu1 %v6651_v33  ;;  %v6629_v44 = vld [vmem:[%s11668_s24 + $0x250] sm:$0xff]  ;;  %v6535_v31 = vld [vmem:[%s11637_s12 + $0xb18] sm:$0xff]  ;;  %v6628_v33 = vld [vmem:[%s11668_s24 + $0x248] sm:$0xff] }
 0x301   : > { %3172 = vmatprep.subr.mxu0 %v6579_v12  ;;  %3788 = vmatprep.subr.mxu1 %v6650_v34  ;;  %v6534_v12 = vld [vmem:[%s11637_s12 + $0xb10] sm:$0xff]  ;;  %v6627_v34 = vld [vmem:[%s11668_s24 + $0x240] sm:$0xff] }
 0x302   : > { %3173 = vmatpush2.msra.mxu0 %v6578_v36  ;;  %3789 = vmatpush1.msra.mxu1 %v6649_v40  ;;  %v6690_v36 = vld [vmem:[%s11668_s24 + $0x438] sm:$0xff]  ;;  %v6689_v40 = vld [vmem:[%s11668_s24 + $0x430] sm:$0xff] }
 0x303   : > { %3174 = vmatprep.subr.mxu0 %v6575_v62  ;;  %3790 = vmatprep.subr.mxu1 %v6648_v45  ;;  %v6682_v62 = vld [vmem:[%s11668_s24 + $0x3f8] sm:$0xff]  ;;  %v9755_v45 = vpop.f32.mrf.mxu1 }
 0x304   : > { %3175 = vmatpush2.msra.mxu0 %v6574_v47  ;;  %3791 = vmatpush1.msra.mxu1 %v6647_v48  ;;  %v6681_v47 = vld [vmem:[%s11668_s24 + $0x3f0] sm:$0xff]  ;;  %v6679_v48 = vld [vmem:[%s11668_s24 + $0x3e0] sm:$0xff] }
 0x305   : > { %3176 = vmatprep.subr.mxu0 %v6571_v49  ;;  %3792 = vmatprep.subr.mxu1 %v6646_v50  ;;  %v6678_v49 = vld [vmem:[%s11668_s24 + $0x3d8] sm:$0xff]  ;;  %v9769_v50 = vpop.f32.mrf.mxu1 }
 0x306   : > { %3177 = vmatpush2.msra.mxu0 %v6570_v51  ;;  %3793 = vmatpush1.msra.mxu1 %v6645_v41  ;;  %v6677_v51 = vld [vmem:[%s11668_s24 + $0x3d0] sm:$0xff]  ;;  %v6676_v41 = vld [vmem:[%s11668_s24 + $0x3c8] sm:$0xff] }
 0x307   : > { %3178 = vmatprep.subr.mxu0 %v6567_v53  ;;  %3794 = vmatprep.subr.mxu1 %v6644_v55  ;;  %v6675_v53 = vld [vmem:[%s11668_s24 + $0x3c0] sm:$0xff]  ;;  %v9780_v55 = vpop.f32.mrf.mxu0 }
 0x308   : > { %3179 = vmatpush2.msra.mxu0 %v6566_v57  ;;  %3795 = vmatpush1.msra.mxu1 %v6643_v58  ;;  %v6674_v57 = vld [vmem:[%s11668_s24 + $0x3b8] sm:$0xff]  ;;  %v9785_v58 = vpop.f32.mrf.mxu1 }
 0x309   : > { %3180 = vmatprep.subr.mxu0 %v6563_v17  ;;  %3796 = vmatprep.subr.mxu1 %v6642_v61  ;;  %v6673_v17 = vld [vmem:[%s11668_s24 + $0x3b0] sm:$0xff]  ;;  %v6672_v61 = vld [vmem:[%s11668_s24 + $0x3a8] sm:$0xff] }
 0x30a   : > { %3181 = vmatpush2.msra.mxu0 %v6562_v35  ;;  %3797 = vmatpush1.msra.mxu1 %v6641_v43  ;;  %v6671_v35 = vld [vmem:[%s11668_s24 + $0x3a0] sm:$0xff]  ;;  %v9796_v43 = vpop.f32.mrf.mxu0 }
 0x30b   : > { %3182 = vmatprep.subr.mxu0 %v6559_v13  ;;  %3798 = vmatprep.subr.mxu1 %v6640_v46  ;;  %v6670_v13 = vld [vmem:[%s11668_s24 + $0x398] sm:$0xff]  ;;  %v9801_v46 = vpop.f32.mrf.mxu1 }
 0x30c   : > { %3183 = vmatpush2.msra.mxu0 %v6558_v21  ;;  %3799 = vmatpush1.msra.mxu1 %v6639_v1  ;;  %v6669_v21 = vld [vmem:[%s11668_s24 + $0x390] sm:$0xff]  ;;  %v6668_v1 = vld [vmem:[%s11668_s24 + $0x388] sm:$0xff] }
 0x30d   : > { %3184 = vmatprep.subr.mxu0 %v6555_v3  ;;  %3800 = vmatprep.subr.mxu1 %v6638_v5  ;;  %v6667_v3 = vld [vmem:[%s11668_s24 + $0x380] sm:$0xff]  ;;  %v9812_v5 = vpop.f32.mrf.mxu0 }
 0x30e   : > { %3185 = vmatpush2.msra.mxu0 %v6554_v6  ;;  %3801 = vmatpush1.msra.mxu1 %v6637_v7  ;;  %v6666_v6 = vld [vmem:[%s11668_s24 + $0x378] sm:$0xff]  ;;  %v2487_v7 = vpop.f32.mrf.mxu1 }
 0x30f   : > { %3186 = vmatprep.subr.mxu0 %v6551_v32  ;;  %3802 = vmatprep.subr.mxu1 %v6636_v8  ;;  %v6665_v32 = vld [vmem:[%s11668_s24 + $0x370] sm:$0xff]  ;;  %v6664_v8 = vld [vmem:[%s11668_s24 + $0x368] sm:$0xff] }
 0x310   : > { %3187 = vmatpush2.msra.mxu0 %v6550_v42  ;;  %3803 = vmatpush1.msra.mxu1 %v6635_v9  ;;  %v6663_v42 = vld [vmem:[%s11668_s24 + $0x360] sm:$0xff]  ;;  %v9826_v9 = vpop.f32.mrf.mxu0 }
 0x311   : > { %3188 = vmatprep.subr.mxu0 %v6547_v14  ;;  %3804 = vmatprep.subr.mxu1 %v6634_v16  ;;  %v6662_v14 = vld [vmem:[%s11668_s24 + $0x358] sm:$0xff]  ;;  %v2489_v16 = vpop.f32.mrf.mxu1 }
 0x312   : > { %3189 = vmatpush2.msra.mxu0 %v6546_v18  ;;  %3805 = vmatpush1.msra.mxu1 %v6633_v52  ;;  %v6661_v18 = vld [vmem:[%s11668_s24 + $0x350] sm:$0xff] }
 0x313   : > { %3190 = vmatprep.subr.mxu0 %v6543_v54  ;;  %3806 = vmatprep.subr.mxu1 %v6632_v23  ;;  %v6660_v54 = vld [vmem:[%s11668_s24 + $0x348] sm:$0xff] }
 0x314   : > { %3191 = vmatpush2.msra.mxu0 %v6542_v25  ;;  %3807 = vmatpush1.msra.mxu1 %v6631_v27  ;;  %v6659_v25 = vld [vmem:[%s11668_s24 + $0x340] sm:$0xff] }
 0x315   : > { %3192 = vmatprep.subr.mxu0 %v6539_v28  ;;  %3808 = vmatprep.subr.mxu1 %v6630_v29  ;;  %v3557_v28 = vld [vmem:[%s11668_s24 + $0x238] sm:$0xff]  ;;  %v2493_v29 = vpop.f32.mrf.mxu1 }
 0x316   : > { %3193 = vmatpush2.msra.mxu0 %v6538_v10  ;;  %3809 = vmatpush1.msra.mxu1 %v6629_v44 }
 0x317   : > { %3194 = vmatprep.subr.mxu0 %v6535_v31  ;;  %3810 = vmatprep.subr.mxu1 %v6628_v33  ;;  %v2495_v33 = vpop.f32.mrf.mxu1 }
 0x318   : > { %3195 = vmatpush2.msra.mxu0 %v6534_v12  ;;  %3811 = vmatpush1.msra.mxu1 %v6627_v34 }
 0x319   : > { %3197 = vmatmul.mubr.f32.vlgmr.msra.gmra.mxu0 %v9347_v20  ;;  %7093 = vmatprep.subr.mxu0 %v7224_v38  ;;  %v6688_v20 = vld [vmem:[%s11668_s24 + $0x428] sm:$0xff] }
 0x31a   : > { %3202 = vmatprep.mubr.f32.mxu0 %v9360_v26  ;;  %7094 = vmatpush3.msk.msra.mxu0 %vm3338_vm12, %v9343_v19  ;;  %v6687_v26 = vld [vmem:[%s11668_s24 + $0x420] sm:$0xff]  ;;  %v6685_v19 = vld [vmem:[%s11668_s24 + $0x410] sm:$0xff] }
 0x31b   : > { %7095 = vmatprep.subr.mxu0 %v7224_v38  ;;  %3812 = vmatprep.subr.mxu1 %v6690_v36  ;;  %v6698_v36 = vld [vmem:[%s11668_s24 + $0x478] sm:$0xff] }
 0x31c   : > { %7096 = vmatpush3.msra.mxu0 %v9302_v0  ;;  %3813 = vmatpush2.msra.mxu1 %v6689_v40  ;;  %v6686_v0 = vld [vmem:[%s11668_s24 + $0x418] sm:$0xff]  ;;  %v6697_v40 = vld [vmem:[%s11668_s24 + $0x470] sm:$0xff] }
 0x31d   : > { %3203 = vmatmul.mubr.f32.gmra.mxu0 %v9394_v37  ;;  %7097 = vmatprep.subr.mxu0 %v7224_v38  ;;  %v6684_v37 = vld [vmem:[%s11668_s24 + $0x408] sm:$0xff] }
 0x31e   : > { %7098 = vmatpush3.msra.mxu0 %v9311_v4  ;;  %7099 = vmatprep.mubr.msk.f32.mxu0 %vm7225_vm14, %v7224_v38  ;;  %v6683_v4 = vld [vmem:[%s11668_s24 + $0x400] sm:$0xff] }
 0x31f   : > { %3814 = vmatprep.subr.mxu1 %v6688_v20  ;;  %3875 = vmatprep.subr.mxu0 %v6698_v36  ;;  %v6696_v20 = vld [vmem:[%s11668_s24 + $0x468] sm:$0xff] }
 0x320   : > { %3815 = vmatpush2.msra.mxu1 %v6687_v26  ;;  %v6695_v26 = vld [vmem:[%s11668_s24 + $0x460] sm:$0xff] }
 0x321   : > { %7100 = vmatmul.mubr.msk.f32.vlgmr.msra.gmra.mxu0 %vm3334_vm13, %v9511_v22  ;;  %3816 = vmatprep.subr.mxu1 %v6686_v0  ;;  %v6680_v22 = vld [vmem:[%s11668_s24 + $0x3e8] sm:$0xff]  ;;  %v6694_v0 = vld [vmem:[%s11668_s24 + $0x458] sm:$0xff] }
 0x322   : > { %3817 = vmatpush2.msra.mxu1 %v6685_v19  ;;  %3915 = vmatprep.mubr.f32.mxu0 %v7224_v38  ;;  %v6693_v19 = vld [vmem:[%s11668_s24 + $0x450] sm:$0xff] }
 0x323   : > { %3818 = vmatprep.subr.mxu1 %v6684_v37  ;;  %3876 = vmatpush1.msra.mxu0 %v6697_v40  ;;  %v6692_v37 = vld [vmem:[%s11668_s24 + $0x448] sm:$0xff] }
 0x324   : > { %3819 = vmatpush2.msra.mxu1 %v6683_v4  ;;  %3877 = vmatprep.subr.mxu0 %v6696_v20  ;;  %v6691_v4 = vld [vmem:[%s11668_s24 + $0x440] sm:$0xff]  ;;  %v2342_v20 = vadd.f32 %v9826_v9, %v9801_v46 }
 0x325   : > { %3820 = vmatprep.subr.mxu1 %v6682_v62  ;;  %3878 = vmatpush1.msra.mxu0 %v6695_v26  ;;  %v3517_v62 = vld [vmem:[%s11668_s24 + $0xf8] sm:$0xff] }
 0x326   : > { %3821 = vmatpush2.msra.mxu1 %v6681_v47  ;;  %3879 = vmatprep.subr.mxu0 %v6694_v0 }
 0x327   : > { %3822 = vmatprep.subr.mxu1 %v6680_v22  ;;  %3880 = vmatpush1.msra.mxu0 %v6693_v19 }
 0x328   : > { %3823 = vmatpush2.msra.mxu1 %v6679_v48  ;;  %3881 = vmatprep.subr.mxu0 %v6692_v37 }
 0x329   : > { %3824 = vmatprep.subr.mxu1 %v6678_v49  ;;  %3882 = vmatpush1.msra.mxu0 %v6691_v4 }
 0x32a   : > { %3825 = vmatpush2.msra.mxu1 %v6677_v51  ;;  %3925 = vmatprep.subr.mxu0 %v3517_v62 }
 0x32b   : > { %3826 = vmatprep.subr.mxu1 %v6676_v41 }
 0x32c   : > { %3827 = vmatpush2.msra.mxu1 %v6675_v53 }
 0x32d   : > { %3828 = vmatprep.subr.mxu1 %v6674_v57 }
 0x32e   : > { %3829 = vmatpush2.msra.mxu1 %v6673_v17 }
 0x32f   : > { %3830 = vmatprep.subr.mxu1 %v6672_v61 }
 0x330   : > { %3831 = vmatpush2.msra.mxu1 %v6671_v35 }
 0x331   : > { %3832 = vmatprep.subr.mxu1 %v6670_v13 }
 0x332   : > { %3833 = vmatpush2.msra.mxu1 %v6669_v21 }
 0x333   : > { %3834 = vmatprep.subr.mxu1 %v6668_v1 }
 0x334   : > { %3835 = vmatpush2.msra.mxu1 %v6667_v3 }
 0x335   : > { %3836 = vmatprep.subr.mxu1 %v6666_v6 }
 0x336   : > { %3837 = vmatpush2.msra.mxu1 %v6665_v32 }
 0x337   : > { %3838 = vmatprep.subr.mxu1 %v6664_v8 }
 0x338   : > { %v2410_v52 = vpop.f32.mrf.mxu0  ;;  %3839 = vmatpush2.msra.mxu1 %v6663_v42 }
 0x339   : > { %v2488_v23 = vadd.f32 %v2487_v7, %v2410_v52  ;;  %3840 = vmatprep.subr.mxu1 %v6662_v14  ;;  %v2334_v14 = vadd.f32 %v9780_v55, %v9755_v45 }
 0x33a   : > { %v2412_v27 = vpop.f32.mrf.mxu0  ;;  %3841 = vmatpush2.msra.mxu1 %v6661_v18 }
 0x33b   : > { %v2490_v10 = vadd.f32 %v2489_v16, %v2412_v27  ;;  %3842 = vmatprep.subr.mxu1 %v6660_v54  ;;  %v2336_v54 = vadd.f32 %v9796_v43, %v9769_v50  ;;  %v2340_v50 = vadd.f32 %v9812_v5, %v9785_v58 }
 0x33c   : > { %3843 = vmatpush2.msra.mxu1 %v6659_v25 }
 0x33d   : > { %v2416_v44 = vpop.f32.mrf.mxu0  ;;  %4020 = vmatprep.subr.mxu1 %v3557_v28  ;;  %v9885_v28 = vld [vmem:[%s11638_s13] sm:$0xf] }
 0x33e   : > { %v2494_v31 = vadd.f32 %v2493_v29, %v2416_v44  ;;  %v3303_v40 = vrot.slane %v9885_v28, %v7717_v2 }
 0x33f   : > { %v2418_v12 = vpop.f32.mrf.mxu0 }
 0x340   : > { %v2496_v34 = vadd.f32 %v2495_v33, %v2418_v12 }
 0x342   : > { %v2645_v48 = vpop.f32.mrf.mxu0 }
 0x344   : > { %v2647_v51 = vpop.f32.mrf.mxu0 }
 0x345   : > { %v2568_v47 = vpop.f32.mrf.mxu1 }
 0x347   : > { %v2570_v22 = vpop.f32.mrf.mxu1 }
 0x348   : > { %v2651_v53 = vpop.f32.mrf.mxu0  ;;  %v2571_v29 = vadd.f32 %v2570_v22, %v2336_v54  ;;  %v3551_v54 = vld [vmem:[%s11668_s24 + $0x208] sm:$0xff] }
 0x34a   : > { %v2653_v17 = vpop.f32.mrf.mxu0  ;;  %v2648_v33 = vadd.f32 %v2647_v51, %v2571_v29  ;;  %v7212_v29 = vld [vmem:[#allocation3] sm:$0xff] }
 0x34c   : > { %v2574_v49 = vpop.f32.mrf.mxu1 }
 0x34d   : > { %v2575_v26 = vadd.f32 %v2574_v49, %v2340_v50 }
 0x34e   : > { %v2576_v41 = vpop.f32.mrf.mxu1 }
 0x34f   : > { %v2577_v0 = vadd.f32 %v2576_v41, %v2342_v20  ;;  %v2652_v62 = vadd.f32 %v2651_v53, %v2575_v26  ;;  %v3513_v20 = vld [vmem:[%s11668_s24 + $0xd8] sm:$0xff] }
 0x351   : > { %v2799_v57 = vpop.f32.mrf.mxu1  ;;  %v2654_v9 = vadd.f32 %v2653_v17, %v2577_v0  ;;  %v3556_v17 = vld [vmem:[%s11668_s24 + $0x230] sm:$0xff]  ;;  %v3509_v0 = vld [vmem:[%s11668_s24 + $0xb8] sm:$0xff] }
 0x353   : > { %v2801_v35 = vpop.f32.mrf.mxu1 }
 0x356   : > { %v2805_v6 = vpop.f32.mrf.mxu1 }
 0x358   : > { %v2807_v52 = vpop.f32.mrf.mxu1 }
 0x388   : > { %v2722_v61 = vpop.f32.mrf.mxu0 }
 0x389   : > { %v2723_v13 = vadd.f32 %v2722_v61, %v2488_v23  ;;  %v2569_v23 = vadd.f32 %v2568_v47, %v2334_v14  ;;  %v3554_v14 = vld [vmem:[%s11668_s24 + $0x220] sm:$0xff] }
 0x38a   : > { %v2724_v21 = vpop.f32.mrf.mxu0 }
 0x38b   : > { %v9870_v1 = vadd.f32 %v2799_v57, %v2723_v13  ;;  %v2725_v3 = vadd.f32 %v2724_v21, %v2490_v10  ;;  %v2646_v45 = vadd.f32 %v2645_v48, %v2569_v23  ;;  %v3550_v23 = vld [vmem:[%s11668_s24 + $0x200] sm:$0xff] }
 0x38d   : > { %v9872_v7 = vadd.f32 %v2801_v35, %v2725_v3  ;;  %v2728_v32 = vpop.f32.mrf.mxu0 }
 0x38e   : > { %v2729_v8 = vadd.f32 %v2728_v32, %v2494_v31  ;;  %v3299_v31 = vrot.slane %v9885_v28, %v7711_v63 }
 0x38f   : > { %v2730_v42 = vpop.f32.mrf.mxu0 }
 0x390   : > { %v9876_v16 = vadd.f32 %v2805_v6, %v2729_v8  ;;  %v2731_v18 = vadd.f32 %v2730_v42, %v2496_v34  ;;  %v3555_v42 = vld [vmem:[%s11668_s24 + $0x228] sm:$0xff] }
 0x392   : > { %v9880_v25 = vadd.f32 %v2807_v52, %v2731_v18  ;;  %v3121_v27 = vpop.f32.mrf.mxu0  ;;  %v3553_v18 = vld [vmem:[%s11668_s24 + $0x218] sm:$0xff]  ;;  %v3552_v52 = vld [vmem:[%s11668_s24 + $0x210] sm:$0xff] }
 0x394   : > { %v3123_v10 = vpop.f32.mrf.mxu0 }
 0x395   : > { %v3044_v44 = vpop.f32.mrf.mxu1 }
 0x396   : > { %v3122_v55 = vadd.f32 %v3121_v27, %v3044_v44  ;;  %v9940_v27 = vld [vmem:[%s11643_s18 + $0x10] sm:$0xff] }
 0x397   : > { %v3046_v43 = vpop.f32.mrf.mxu1 }
 0x398   : > { %v3286_v12 = vadd.f32 %v3122_v55, %v2646_v45  ;;  %v3127_v34 = vpop.f32.mrf.mxu0  ;;  %v3124_v36 = vadd.f32 %v3123_v10, %v3046_v43 }
 0x39a   : > { %v3316_v58 = vadd.f32 %v3299_v31, %v3286_v12  ;;  %v3287_v5 = vadd.f32 %v3124_v36, %v2648_v33  ;;  %v3129_v37 = vpop.f32.mrf.mxu0 }
 0x39c   : > { %3324 = vst [vmem:[%s9899_s2] sm:$0xff] %v3316_v58  ;;  %v3317_v19 = vadd.f32 %v3303_v40, %v3287_v5  ;;  %v3050_v4 = vpop.f32.mrf.mxu1  ;;  %v3511_v58 = vld [vmem:[%s11668_s24 + $0xc8] sm:$0xff]  ;;  %v3510_v5 = vld [vmem:[%s11668_s24 + $0xc0] sm:$0xff] }
 0x39d   : > { %v3128_v47 = vadd.f32 %v3127_v34, %v3050_v4  ;;  %v3506_v4 = vld [vmem:[%s11668_s24 + $0xa0] sm:$0xff] }
 0x39e   : > { %3325 = vst [vmem:[%s9899_s2 + $0x8] sm:$0xff] %v3317_v19  ;;  %v3052_v46 = vpop.f32.mrf.mxu1  ;;  %v3508_v19 = vld [vmem:[%s11668_s24 + $0xb0] sm:$0xff] }
 0x39f   : > { %v3290_v22 = vadd.f32 %v3128_v47, %v2652_v62  ;;  %v3130_v48 = vadd.f32 %v3129_v37, %v3052_v46  ;;  %v3507_v37 = vld [vmem:[%s11668_s24 + $0xa8] sm:$0xff]  ;;  %v3505_v62 = vld [vmem:[%s11668_s24 + $0x98] sm:$0xff]  ;;  %v3504_v47 = vld [vmem:[%s11668_s24 + $0x90] sm:$0xff] }
 0x3a0   : > { %v3503_v46 = vld [vmem:[%s11668_s24 + $0x88] sm:$0xff] }
 0x3a1   : > { %v3320_v49 = vadd.f32 %v3299_v31, %v3290_v22  ;;  %v3291_v51 = vadd.f32 %v3130_v48, %v2654_v9  ;;  %v3275_v57 = vpop.f32.mrf.mxu1  ;;  %v3502_v9 = vld [vmem:[%s11668_s24 + $0x80] sm:$0xff]  ;;  %v3501_v22 = vld [vmem:[%s11668_s24 + $0x78] sm:$0xff]  ;;  %v3500_v48 = vld [vmem:[%s11668_s24 + $0x70] sm:$0xff] }
 0x3a3   : > { %3329 = vst [vmem:[%s9899_s2 + $0x20] sm:$0xff] %v3320_v49  ;;  %v3321_v61 = vadd.f32 %v3303_v40, %v3291_v51  ;;  %v3277_v35 = vpop.f32.mrf.mxu1  ;;  %v3499_v49 = vld [vmem:[%s11668_s24 + $0x68] sm:$0xff]  ;;  %v3498_v51 = vld [vmem:[%s11668_s24 + $0x60] sm:$0xff] }
 0x3a5   : > { %3330 = vst [vmem:[%s9899_s2 + $0x28] sm:$0xff] %v3321_v61  ;;  %v3496_v61 = vld [vmem:[%s11668_s24 + $0x50] sm:$0xff] }
 0x3a6   : > { %v3281_v41 = vpop.f32.mrf.mxu1 }
 0x3a8   : > { %v3283_v13 = vpop.f32.mrf.mxu1 }
 0x3ab   : > { %v9905_v21 = vpop.f32.mrf.mxu1 }
 0x3ad   : > { %v3413_v3 = vpop.f32.mrf.mxu1 }
 0x3b2   : > { %v3482_v6 = vpop.f32.mrf.mxu1 }
 0x3b4   : > { %v7092_v53 = vpop.f32.mrf.mxu1 }
 0x3b5   : > { %v3490_v53 = vld [vmem:[%s11668_s24 + $0x20] sm:$0xff] }
 0x3b8   : > { %v3629_v32 = vpop.f32.mrf.mxu1 }
 0x3ba   : > { %v3631_v8 = vpop.f32.mrf.mxu1 }
 0x3bb   : > { %3844 = vmatprep.mubr.f32.mxu1 %v3631_v8  ;;  %v3488_v8 = vld [vmem:[%s11668_s24 + $0x10] sm:$0xff] }
 0x3bc   : > { %3845 = vmatmul.mubr.f32.vlgmr.msra.gmra.mxu1 %v3629_v32  ;;  %v3489_v32 = vld [vmem:[%s11668_s24 + $0x18] sm:$0xff] }
 0x3bd   : > { %4021 = vmatpush1.msra.mxu1 %v3556_v17  ;;  %4060 = vmatprep.mubr.f32.mxu1 %v7224_v38  ;;  %v3487_v17 = vld [vmem:[%s11668_s24 + $0x8] sm:$0xff] }
 0x3be   : > { %4022 = vmatprep.subr.mxu1 %v3555_v42  ;;  %v3486_v42 = vld [vmem:[%s11668_s24] sm:$0xff] }
 0x3bf   : > { %4023 = vmatpush1.msra.mxu1 %v3554_v14  ;;  %v3549_v14 = vld [vmem:[%s11668_s24 + $0x1f8] sm:$0xff] }
 0x3c0   : > { %4024 = vmatprep.subr.mxu1 %v3553_v18  ;;  %v3548_v18 = vld [vmem:[%s11668_s24 + $0x1f0] sm:$0xff] }
 0x3c1   : > { %4025 = vmatpush1.msra.mxu1 %v3552_v52  ;;  %v3547_v52 = vld [vmem:[%s11668_s24 + $0x1e8] sm:$0xff] }
 0x3c2   : > { %4026 = vmatprep.subr.mxu1 %v3551_v54  ;;  %v3546_v54 = vld [vmem:[%s11668_s24 + $0x1e0] sm:$0xff] }
 0x3c3   : > { %4027 = vmatpush1.msra.mxu1 %v3550_v23  ;;  %v3545_v23 = vld [vmem:[%s11668_s24 + $0x1d8] sm:$0xff] }
 0x3c4   : > { %6702 = vmatprep.subr.msk.mxu1 %vm3338_vm12, %v9337_v15  ;;  %6700 = vmatmul.mubr.msk.f32.vlgmr.msra.gmra.mxu1 %vm1854_vm11, %v3482_v6  ;;  %v3310_v15 = vsub.s32 3, %v7708_v59  ;;  %v3491_v6 = vld [vmem:[%s11668_s24 + $0x28] sm:$0xff] }
 0x3c5   : > { %6703 = vmatpush1.msk.msra.mxu1 %vm3338_vm12, %v9373_v30  ;;  %4136 = vmatprep.mubr.f32.mxu1 %v7224_v38 }
 0x3c6   : > { %4100 = vmatprep.subr.mxu1 %v9269_v56  ;;  %v3307_v56 = vrot.slane %v9885_v28, %v1807_v24 }
 0x3c7   : > { %4101 = vmatpush1.msra.mxu1 %v9293_v39 }
 0x3c8   : > { %4102 = vmatprep.subr.mxu1 %v9447_v60  ;;  %v3311_v60 = vrot.slane %v9885_v28, %v3310_v15  ;;  %v3515_v28 = vld [vmem:[%s11668_s24 + $0xe8] sm:$0xff] }
 0x3c9   : > { %4103 = vmatpush1.msra.mxu1 %v7212_v29  ;;  %v3544_v29 = vld [vmem:[%s11668_s24 + $0x1d0] sm:$0xff]  ;;  %v3543_v15 = vld [vmem:[%s11668_s24 + $0x1c8] sm:$0xff] }
 0x3ca   : > { %6704 = vmatmul.mubr.msk.f32.vlgmr.msra.gmra.mxu1 %vm3334_vm13, %v9940_v27 }
 0x3d9   : > { %v3198_v30 = vpop.f32.mrf.mxu0 }
 0x3da   : > { %v3276_v10 = vadd.f32 %v3275_v57, %v3198_v30  ;;  %v3497_v57 = vld [vmem:[%s11668_s24 + $0x58] sm:$0xff]  ;;  %v3542_v30 = vld [vmem:[%s11668_s24 + $0x1c0] sm:$0xff] }
 0x3db   : > { %v3200_v39 = vpop.f32.mrf.mxu0 }
 0x3dc   : > { %v3288_v44 = vadd.f32 %v3276_v10, %v9870_v1  ;;  %v3278_v45 = vadd.f32 %v3277_v35, %v3200_v39  ;;  %v3516_v1 = vld [vmem:[%s11668_s24 + $0xf0] sm:$0xff]  ;;  %v3495_v35 = vld [vmem:[%s11668_s24 + $0x48] sm:$0xff]  ;;  %v3541_v10 = vld [vmem:[%s11668_s24 + $0x1b8] sm:$0xff] }
 0x3dd   : > { %v3204_v55 = vpop.f32.mrf.mxu0  ;;  %v3539_v39 = vld [vmem:[%s11668_s24 + $0x1a8] sm:$0xff] }
 0x3de   : > { %v3318_v31 = vadd.f32 %v3307_v56, %v3288_v44  ;;  %v3289_v50 = vadd.f32 %v3278_v45, %v9872_v7  ;;  %v3282_v43 = vadd.f32 %v3281_v41, %v3204_v55  ;;  %v3494_v41 = vld [vmem:[%s11668_s24 + $0x40] sm:$0xff]  ;;  %v3537_v45 = vld [vmem:[%s11668_s24 + $0x198] sm:$0xff]  ;;  %v3535_v55 = vld [vmem:[%s11668_s24 + $0x188] sm:$0xff] }
 0x3df   : > { %v3206_v33 = vpop.f32.mrf.mxu0  ;;  %v3538_v44 = vld [vmem:[%s11668_s24 + $0x1a0] sm:$0xff] }
 0x3e0   : > { %3326 = vst [vmem:[%s9899_s2 + $0x10] sm:$0xff] %v3318_v31  ;;  %v3319_v12 = vadd.f32 %v3311_v60, %v3289_v50  ;;  %v3292_v59 = vadd.f32 %v3282_v43, %v9876_v16  ;;  %v3284_v24 = vadd.f32 %v3283_v13, %v3206_v33  ;;  %v3514_v16 = vld [vmem:[%s11668_s24 + $0xe0] sm:$0xff]  ;;  %v3493_v13 = vld [vmem:[%s11668_s24 + $0x38] sm:$0xff]  ;;  %v3532_v43 = vld [vmem:[%s11668_s24 + $0x170] sm:$0xff] }
 0x3e1   : > { %v3700_v34 = vpop.f32.mrf.mxu0  ;;  %v3534_v31 = vld [vmem:[%s11668_s24 + $0x180] sm:$0xff]  ;;  %v3533_v50 = vld [vmem:[%s11668_s24 + $0x178] sm:$0xff]  ;;  %v3531_v33 = vld [vmem:[%s11668_s24 + $0x168] sm:$0xff] }
 0x3e2   : > { %3328 = vst.msk [vmem:[%s9899_s2 + $0x18] sm:$0xff] %vm3327_vm15, %v3319_v12  ;;  %v3322_v7 = vadd.f32 %v3307_v56, %v3292_v59  ;;  %v3293_v36 = vadd.f32 %v3284_v24, %v9880_v25  ;;  %6699 = vmatmul.mubr.msk.f32.vlgmr.msra.gmra.mxu0 %vm1854_vm11, %v3700_v34  ;;  %v3512_v25 = vld [vmem:[%s11668_s24 + $0xd0] sm:$0xff]  ;;  %v3530_v12 = vld [vmem:[%s11668_s24 + $0x160] sm:$0xff]  ;;  %v3529_v59 = vld [vmem:[%s11668_s24 + $0x158] sm:$0xff] }
 0x3e3   : > { %3926 = vmatpush1.msra.mxu0 %v3516_v1  ;;  %v7101_v40 = vpop.f32.mrf.mxu0  ;;  %3989 = vmatprep.mubr.f32.mxu0 %v3413_v3  ;;  %v3492_v3 = vld [vmem:[%s11668_s24 + $0x30] sm:$0xff]  ;;  %v3527_v1 = vld [vmem:[%s11668_s24 + $0x148] sm:$0xff]  ;;  %v3526_v34 = vld [vmem:[%s11668_s24 + $0x140] sm:$0xff] }
 0x3e4   : > { %3331 = vst [vmem:[%s9899_s2 + $0x30] sm:$0xff] %v3322_v7  ;;  %v3323_v26 = vadd.f32 %v3311_v60, %v3293_v36  ;;  %3927 = vmatprep.subr.mxu0 %v3515_v28  ;;  %v3540_v56 = vld [vmem:[%s11668_s24 + $0x1b0] sm:$0xff]  ;;  %v3525_v28 = vld [vmem:[%s11668_s24 + $0x138] sm:$0xff]  ;;  %v3523_v36 = vld [vmem:[%s11668_s24 + $0x128] sm:$0xff] }
 0x3e5   : > { %3928 = vmatpush1.msra.mxu0 %v3514_v16  ;;  %v3536_v60 = vld [vmem:[%s11668_s24 + $0x190] sm:$0xff]  ;;  %v3522_v16 = vld [vmem:[%s11668_s24 + $0x120] sm:$0xff]  ;;  %v3521_v40 = vld [vmem:[%s11668_s24 + $0x118] sm:$0xff] }
 0x3e6   : > { %3332 = vst.msk [vmem:[%s9899_s2 + $0x38] sm:$0xff] %vm3327_vm15, %v3323_v26  ;;  %3929 = vmatprep.subr.mxu0 %v3513_v20  ;;  %v3528_v24 = vld [vmem:[%s11668_s24 + $0x150] sm:$0xff]  ;;  %v3519_v26 = vld [vmem:[%s11668_s24 + $0x108] sm:$0xff]  ;;  %s6155_s2 = sshll.u32 %s11671_s28, 2 }
 0x3e7   : > { %3930 = vmatpush1.msra.mxu0 %v3512_v25  ;;  %v3524_v7 = vld [vmem:[%s11668_s24 + $0x130] sm:$0xff]  ;;  %v3518_v25 = vld [vmem:[%s11668_s24 + $0x100] sm:$0xff]  ;;  %s706_s23 = scalar_lea.vmem %s11647_s22, %s6155_s2 }
 0x3e8   : > { %3931 = vmatprep.subr.mxu0 %v3511_v58  ;;  %v3520_v20 = vld [vmem:[%s11668_s24 + $0x110] sm:$0xff] }
 0x3e9   : > { %3932 = vmatpush1.msra.mxu0 %v3510_v5  ;;  %v7213_v58 = vld [vmem:[#allocation3 + $0x40] sm:$0x3]  ;;  %v7214_v5 = vld [vmem:[#allocation3 + $0x28] sm:$0xff] }
 0x3ea   : > { %3933 = vmatprep.subr.mxu0 %v3509_v0  ;;  %v6738_v0 = vld [vmem:[%s11668_s24 + $0x578] sm:$0xff] }
 0x3eb   : > { %3934 = vmatpush1.msra.mxu0 %v3508_v19  ;;  %v6736_v19 = vld [vmem:[%s11668_s24 + $0x568] sm:$0xff]  ;;  %4289 = vmatprep.subr.mxu1 %v6738_v0 }
 0x3ec   : > { %3935 = vmatprep.subr.mxu0 %v3507_v37  ;;  %v6735_v37 = vld [vmem:[%s11668_s24 + $0x560] sm:$0xff]  ;;  %v6744_v0 = vld [vmem:[%s11668_s24 + $0x5a8] sm:$0xff] }
 0x3ed   : > { %3936 = vmatpush1.msra.mxu0 %v3506_v4  ;;  %v7215_v4 = vld [vmem:[#allocation3 + $0x10] sm:$0xff] }
 0x3ee   : > { %3937 = vmatprep.subr.mxu0 %v3505_v62  ;;  %v6734_v62 = vld [vmem:[%s11668_s24 + $0x558] sm:$0xff] }
 0x3ef   : > { %3938 = vmatpush1.msra.mxu0 %v3504_v47  ;;  %v6733_v47 = vld [vmem:[%s11668_s24 + $0x550] sm:$0xff] }
 0x3f0   : > { %3939 = vmatprep.subr.mxu0 %v3503_v46  ;;  %v6732_v46 = vld [vmem:[%s11668_s24 + $0x548] sm:$0xff] }
 0x3f1   : > { %3940 = vmatpush1.msra.mxu0 %v3502_v9  ;;  %v6731_v9 = vld [vmem:[%s11668_s24 + $0x540] sm:$0xff] }
 0x3f2   : > { %3941 = vmatprep.subr.mxu0 %v3501_v22  ;;  %v6729_v22 = vld [vmem:[%s11668_s24 + $0x530] sm:$0xff] }
 0x3f3   : > { %3942 = vmatpush1.msra.mxu0 %v3500_v48  ;;  %v6728_v48 = vld [vmem:[%s11668_s24 + $0x528] sm:$0xff] }
 0x3f4   : > { %3943 = vmatprep.subr.mxu0 %v3499_v49  ;;  %v6727_v49 = vld [vmem:[%s11668_s24 + $0x520] sm:$0xff] }
 0x3f5   : > { %3944 = vmatpush1.msra.mxu0 %v3498_v51  ;;  %v6726_v51 = vld [vmem:[%s11668_s24 + $0x518] sm:$0xff] }
 0x3f6   : > { %3945 = vmatprep.subr.mxu0 %v3497_v57  ;;  %v6725_v57 = vld [vmem:[%s11668_s24 + $0x510] sm:$0xff] }
 0x3f7   : > { %3946 = vmatpush1.msra.mxu0 %v3496_v61  ;;  %v6724_v61 = vld [vmem:[%s11668_s24 + $0x508] sm:$0xff] }
 0x3f8   : > { %3947 = vmatprep.subr.mxu0 %v3495_v35  ;;  %v6723_v35 = vld [vmem:[%s11668_s24 + $0x500] sm:$0xff] }
 0x3f9   : > { %3948 = vmatpush1.msra.mxu0 %v3494_v41  ;;  %v6722_v41 = vld [vmem:[%s11668_s24 + $0x4f8] sm:$0xff] }
 0x3fa   : > { %3949 = vmatprep.subr.mxu0 %v3493_v13  ;;  %v6721_v13 = vld [vmem:[%s11668_s24 + $0x4f0] sm:$0xff] }
 0x3fb   : > { %3950 = vmatpush1.msra.mxu0 %v3492_v3  ;;  %v6720_v3 = vld [vmem:[%s11668_s24 + $0x4e8] sm:$0xff] }
 0x3fc   : > { %3951 = vmatprep.subr.mxu0 %v3491_v6  ;;  %v6719_v6 = vld [vmem:[%s11668_s24 + $0x4e0] sm:$0xff] }
 0x3fd   : > { %3952 = vmatpush1.msra.mxu0 %v3490_v53  ;;  %v6718_v53 = vld [vmem:[%s11668_s24 + $0x4d8] sm:$0xff] }
 0x3fe   : > { %3953 = vmatprep.subr.mxu0 %v3489_v32  ;;  %v6717_v32 = vld [vmem:[%s11668_s24 + $0x4d0] sm:$0xff] }
 0x3ff   : > { %3954 = vmatpush1.msra.mxu0 %v3488_v8  ;;  %v6716_v8 = vld [vmem:[%s11668_s24 + $0x4c8] sm:$0xff] }
 0x400   : > { %3955 = vmatprep.subr.mxu0 %v3487_v17  ;;  %v6778_v17 = vld [vmem:[%s11668_s24 + $0x6b8] sm:$0xff] }
 0x401   : > { %3956 = vmatpush1.msra.mxu0 %v3486_v42  ;;  %v6715_v42 = vld [vmem:[%s11668_s24 + $0x4c0] sm:$0xff] }
 0x402   : > { %3957 = vmatprep.subr.mxu0 %v3549_v14  ;;  %v6714_v14 = vld [vmem:[%s11668_s24 + $0x4b8] sm:$0xff] }
 0x403   : > { %3958 = vmatpush2.msra.mxu0 %v3548_v18  ;;  %v6713_v18 = vld [vmem:[%s11668_s24 + $0x4b0] sm:$0xff] }
 0x404   : > { %3959 = vmatprep.subr.mxu0 %v3547_v52  ;;  %v6712_v52 = vld [vmem:[%s11668_s24 + $0x4a8] sm:$0xff] }
 0x405   : > { %3960 = vmatpush2.msra.mxu0 %v3546_v54  ;;  %v6711_v54 = vld [vmem:[%s11668_s24 + $0x4a0] sm:$0xff] }
 0x406   : > { %3961 = vmatprep.subr.mxu0 %v3545_v23  ;;  %v6710_v23 = vld [vmem:[%s11668_s24 + $0x498] sm:$0xff] }
 0x407   : > { %3962 = vmatpush2.msra.mxu0 %v3544_v29  ;;  %v6709_v29 = vld [vmem:[%s11668_s24 + $0x490] sm:$0xff] }
 0x408   : > { %3963 = vmatprep.subr.mxu0 %v3543_v15  ;;  %v6708_v15 = vld [vmem:[%s11668_s24 + $0x488] sm:$0xff] }
 0x409   : > { %3964 = vmatpush2.msra.mxu0 %v3542_v30  ;;  %v6707_v30 = vld [vmem:[%s11668_s24 + $0x480] sm:$0xff] }
 0x40a   : > { %3965 = vmatprep.subr.mxu0 %v3541_v10  ;;  %v6770_v10 = vld [vmem:[%s11668_s24 + $0x678] sm:$0xff] }
 0x40b   : > { %3966 = vmatpush2.msra.mxu0 %v3540_v56  ;;  %v6769_v56 = vld [vmem:[%s11668_s24 + $0x670] sm:$0xff] }
 0x40c   : > { %3967 = vmatprep.subr.mxu0 %v3539_v39  ;;  %v6768_v39 = vld [vmem:[%s11668_s24 + $0x668] sm:$0xff] }
 0x40d   : > { %3968 = vmatpush2.msra.mxu0 %v3538_v44  ;;  %v6767_v44 = vld [vmem:[%s11668_s24 + $0x660] sm:$0xff] }
 0x40e   : > { %3969 = vmatprep.subr.mxu0 %v3537_v45  ;;  %v6766_v45 = vld [vmem:[%s11668_s24 + $0x658] sm:$0xff] }
 0x40f   : > { %3970 = vmatpush2.msra.mxu0 %v3536_v60  ;;  %v6765_v60 = vld [vmem:[%s11668_s24 + $0x650] sm:$0xff] }
 0x410   : > { %3971 = vmatprep.subr.mxu0 %v3535_v55  ;;  %v6764_v55 = vld [vmem:[%s11668_s24 + $0x648] sm:$0xff] }
 0x411   : > { %3972 = vmatpush2.msra.mxu0 %v3534_v31  ;;  %v6763_v31 = vld [vmem:[%s11668_s24 + $0x640] sm:$0xff] }
 0x412   : > { %3973 = vmatprep.subr.mxu0 %v3533_v50  ;;  %v6762_v50 = vld [vmem:[%s11668_s24 + $0x638] sm:$0xff] }
 0x413   : > { %3974 = vmatpush2.msra.mxu0 %v3532_v43  ;;  %v6761_v43 = vld [vmem:[%s11668_s24 + $0x630] sm:$0xff] }
 0x414   : > { %3975 = vmatprep.subr.mxu0 %v3531_v33  ;;  %v6760_v33 = vld [vmem:[%s11668_s24 + $0x628] sm:$0xff] }
 0x415   : > { %3976 = vmatpush2.msra.mxu0 %v3530_v12  ;;  %v6759_v12 = vld [vmem:[%s11668_s24 + $0x620] sm:$0xff] }
 0x416   : > { %3977 = vmatprep.subr.mxu0 %v3529_v59  ;;  %v6758_v59 = vld [vmem:[%s11668_s24 + $0x618] sm:$0xff] }
 0x417   : > { %3978 = vmatpush2.msra.mxu0 %v3528_v24  ;;  %v6757_v24 = vld [vmem:[%s11668_s24 + $0x610] sm:$0xff] }
 0x418   : > { %3979 = vmatprep.subr.mxu0 %v3527_v1  ;;  %v6756_v1 = vld [vmem:[%s11668_s24 + $0x608] sm:$0xff] }
 0x419   : > { %3980 = vmatpush2.msra.mxu0 %v3526_v34  ;;  %v6755_v34 = vld [vmem:[%s11668_s24 + $0x600] sm:$0xff] }
 0x41a   : > { %3981 = vmatprep.subr.mxu0 %v3525_v28  ;;  %v6754_v28 = vld [vmem:[%s11668_s24 + $0x5f8] sm:$0xff] }
 0x41b   : > { %3982 = vmatpush2.msra.mxu0 %v3524_v7  ;;  %v6753_v7 = vld [vmem:[%s11668_s24 + $0x5f0] sm:$0xff] }
 0x41c   : > { %3983 = vmatprep.subr.mxu0 %v3523_v36  ;;  %v6752_v36 = vld [vmem:[%s11668_s24 + $0x5e8] sm:$0xff] }
 0x41d   : > { %3984 = vmatpush2.msra.mxu0 %v3522_v16  ;;  %v6751_v16 = vld [vmem:[%s11668_s24 + $0x5e0] sm:$0xff] }
 0x41e   : > { %3985 = vmatprep.subr.mxu0 %v3521_v40  ;;  %v6750_v40 = vld [vmem:[%s11668_s24 + $0x5d8] sm:$0xff] }
 0x41f   : > { %3986 = vmatpush2.msra.mxu0 %v3520_v20  ;;  %v6749_v20 = vld [vmem:[%s11668_s24 + $0x5d0] sm:$0xff] }
 0x420   : > { %3987 = vmatprep.subr.mxu0 %v3519_v26  ;;  %v6748_v26 = vld [vmem:[%s11668_s24 + $0x5c8] sm:$0xff] }
 0x421   : > { %3988 = vmatpush2.msra.mxu0 %v3518_v25  ;;  %v6747_v25 = vld [vmem:[%s11668_s24 + $0x5c0] sm:$0xff] }
 0x422   : > { %3990 = vmatmul.mubr.f32.vlgmr.msra.gmra.mxu0 %v9905_v21  ;;  %7102 = vmatprep.subr.mxu0 %v7224_v38  ;;  %v6737_v21 = vld [vmem:[%s11668_s24 + $0x570] sm:$0xff] }
 0x423   : > { %7103 = vmatpush3.msk.msra.mxu0 %vm3338_vm12, %v7213_v58  ;;  %7108 = vmatprep.mubr.msk.f32.mxu0 %vm7225_vm14, %v7224_v38  ;;  %v6746_v58 = vld [vmem:[%s11668_s24 + $0x5b8] sm:$0xff] }
 0x424   : > { %7104 = vmatprep.subr.mxu0 %v7224_v38  ;;  %4290 = vmatpush1.msra.mxu1 %v6737_v21  ;;  %v6743_v21 = vld [vmem:[%s11668_s24 + $0x5a0] sm:$0xff] }
 0x425   : > { %7105 = vmatpush3.msra.mxu0 %v7214_v5  ;;  %4291 = vmatprep.subr.mxu1 %v6736_v19  ;;  %v6745_v5 = vld [vmem:[%s11668_s24 + $0x5b0] sm:$0xff]  ;;  %v6742_v19 = vld [vmem:[%s11668_s24 + $0x598] sm:$0xff] }
 0x426   : > { %7106 = vmatprep.subr.mxu0 %v7224_v38  ;;  %4292 = vmatpush1.msra.mxu1 %v6735_v37  ;;  %v6741_v37 = vld [vmem:[%s11668_s24 + $0x590] sm:$0xff] }
 0x427   : > { %7107 = vmatpush3.msra.mxu0 %v7215_v4  ;;  %4293 = vmatprep.subr.mxu1 %v6734_v62  ;;  %v6777_v4 = vld [vmem:[%s11668_s24 + $0x6b0] sm:$0xff]  ;;  %v6740_v62 = vld [vmem:[%s11668_s24 + $0x588] sm:$0xff] }
 0x428   : > { %7109 = vmatmul.mubr.msk.f32.vlgmr.msra.gmra.mxu0 %vm3334_vm13, %v9940_v27  ;;  %4294 = vmatpush1.msra.mxu1 %v6733_v47  ;;  %v6730_v27 = vld [vmem:[%s11668_s24 + $0x538] sm:$0xff]  ;;  %v6776_v47 = vld [vmem:[%s11668_s24 + $0x6a8] sm:$0xff] }
 0x429   : > { %4424 = vmatprep.mubr.f32.mxu0 %v7224_v38  ;;  %4295 = vmatprep.subr.mxu1 %v6732_v46  ;;  %v6739_v46 = vld [vmem:[%s11668_s24 + $0x580] sm:$0xff] }
 0x42a   : > { %4296 = vmatpush1.msra.mxu1 %v6731_v9  ;;  %4384 = vmatprep.subr.mxu0 %v6778_v17  ;;  %v6775_v9 = vld [vmem:[%s11668_s24 + $0x6a0] sm:$0xff]  ;;  %v6849_v17 = vld [vmem:[%s11633_s8 + $0x358] sm:$0xff] }
 0x42b   : > { %4297 = vmatprep.subr.mxu1 %v6730_v27  ;;  %4385 = vmatpush1.msra.mxu0 %v6777_v4  ;;  %v6774_v27 = vld [vmem:[%s11668_s24 + $0x698] sm:$0xff]  ;;  %v6793_v4 = vld [vmem:[%s11633_s8 + $0x1a8] sm:$0xff] }
 0x42c   : > { %4298 = vmatpush1.msra.mxu1 %v6729_v22  ;;  %4386 = vmatprep.subr.mxu0 %v6776_v47  ;;  %v6773_v22 = vld [vmem:[%s11668_s24 + $0x690] sm:$0xff]  ;;  %v6792_v47 = vld [vmem:[%s11633_s8 + $0x1a0] sm:$0xff] }
 0x42d   : > { %4299 = vmatprep.subr.mxu1 %v6728_v48  ;;  %4387 = vmatpush1.msra.mxu0 %v6775_v9  ;;  %v6772_v48 = vld [vmem:[%s11668_s24 + $0x688] sm:$0xff]  ;;  %v6791_v9 = vld [vmem:[%s11633_s8 + $0x198] sm:$0xff] }
 0x42e   : > { %4300 = vmatpush1.msra.mxu1 %v6727_v49  ;;  %4388 = vmatprep.subr.mxu0 %v6774_v27  ;;  %v6771_v49 = vld [vmem:[%s11668_s24 + $0x680] sm:$0xff] }
 0x42f   : > { %4301 = vmatprep.subr.mxu1 %v6726_v51  ;;  %4389 = vmatpush1.msra.mxu0 %v6773_v22  ;;  %v6811_v51 = vld [vmem:[%s11633_s8 + $0x238] sm:$0xff]  ;;  %v6834_v27 = vld [vmem:[%s11633_s8 + $0x2e0] sm:$0xff]  ;;  %v6790_v22 = vld [vmem:[%s11633_s8 + $0x190] sm:$0xff] }
 0x430   : > { %4302 = vmatpush1.msra.mxu1 %v6725_v57  ;;  %v6853_v57 = vld [vmem:[%s11633_s8 + $0x378] sm:$0xff]  ;;  %4390 = vmatprep.subr.mxu0 %v6772_v48 }
 0x431   : > { %4303 = vmatprep.subr.mxu1 %v6724_v61  ;;  %4391 = vmatpush1.msra.mxu0 %v6771_v49  ;;  %v6833_v48 = vld [vmem:[%s11633_s8 + $0x2d8] sm:$0xff]  ;;  %v6789_v49 = vld [vmem:[%s11633_s8 + $0x188] sm:$0xff] }
 0x432   : > { %4304 = vmatpush1.msra.mxu1 %v6723_v35  ;;  %4557 = vmatprep.subr.mxu0 %v6811_v51  ;;  %v6832_v51 = vld [vmem:[%s11633_s8 + $0x2d0] sm:$0xff] }
 0x433   : > { %4305 = vmatprep.subr.mxu1 %v6722_v41 }
 0x434   : > { %4306 = vmatpush1.msra.mxu1 %v6721_v13 }
 0x435   : > { %4307 = vmatprep.subr.mxu1 %v6720_v3 }
 0x436   : > { %4308 = vmatpush1.msra.mxu1 %v6719_v6 }
 0x437   : > { %4309 = vmatprep.subr.mxu1 %v6718_v53  ;;  %v6852_v53 = vld [vmem:[%s11633_s8 + $0x370] sm:$0xff] }
 0x438   : > { %4310 = vmatpush1.msra.mxu1 %v6717_v32  ;;  %v6851_v32 = vld [vmem:[%s11633_s8 + $0x368] sm:$0xff] }
 0x439   : > { %4311 = vmatprep.subr.mxu1 %v6716_v8  ;;  %v6850_v8 = vld [vmem:[%s11633_s8 + $0x360] sm:$0xff] }
 0x43a   : > { %4312 = vmatpush1.msra.mxu1 %v6715_v42  ;;  %v6848_v42 = vld [vmem:[%s11633_s8 + $0x350] sm:$0xff] }
 0x43b   : > { %4313 = vmatprep.subr.mxu1 %v6714_v14  ;;  %v6847_v14 = vld [vmem:[%s11633_s8 + $0x348] sm:$0xff] }
 0x43c   : > { %4314 = vmatpush1.msra.mxu1 %v6713_v18  ;;  %v6846_v18 = vld [vmem:[%s11633_s8 + $0x340] sm:$0xff] }
 0x43d   : > { %4315 = vmatprep.subr.mxu1 %v6712_v52  ;;  %v6845_v52 = vld [vmem:[%s11633_s8 + $0x338] sm:$0xff] }
 0x43e   : > { %4316 = vmatpush1.msra.mxu1 %v6711_v54  ;;  %v6844_v54 = vld [vmem:[%s11633_s8 + $0x330] sm:$0xff] }
 0x43f   : > { %4317 = vmatprep.subr.mxu1 %v6710_v23  ;;  %v6843_v23 = vld [vmem:[%s11633_s8 + $0x328] sm:$0xff] }
 0x440   : > { %4318 = vmatpush1.msra.mxu1 %v6709_v29 }
 0x441   : > { %4319 = vmatprep.subr.mxu1 %v6708_v15 }
 0x442   : > { %4320 = vmatpush1.msra.mxu1 %v6707_v30 }
 0x443   : > { %4321 = vmatprep.subr.mxu1 %v6770_v10 }
 0x444   : > { %4322 = vmatpush2.msra.mxu1 %v6769_v56  ;;  %v6842_v56 = vld [vmem:[%s11633_s8 + $0x320] sm:$0xff] }
 0x445   : > { %4323 = vmatprep.subr.mxu1 %v6768_v39  ;;  %v6841_v39 = vld [vmem:[%s11633_s8 + $0x318] sm:$0xff] }
 0x446   : > { %4324 = vmatpush2.msra.mxu1 %v6767_v44  ;;  %v6840_v44 = vld [vmem:[%s11633_s8 + $0x310] sm:$0xff] }
 0x447   : > { %4325 = vmatprep.subr.mxu1 %v6766_v45  ;;  %v6839_v45 = vld [vmem:[%s11633_s8 + $0x308] sm:$0xff] }
 0x448   : > { %4326 = vmatpush2.msra.mxu1 %v6765_v60 }
 0x449   : > { %4327 = vmatprep.subr.mxu1 %v6764_v55 }
 0x44a   : > { %4328 = vmatpush2.msra.mxu1 %v6763_v31 }
 0x44b   : > { %4329 = vmatprep.subr.mxu1 %v6762_v50 }
 0x44c   : > { %4330 = vmatpush2.msra.mxu1 %v6761_v43  ;;  %v6810_v43 = vld [vmem:[%s11633_s8 + $0x230] sm:$0xff] }
 0x44d   : > { %4331 = vmatprep.subr.mxu1 %v6760_v33 }
 0x44e   : > { %4332 = vmatpush2.msra.mxu1 %v6759_v12  ;;  %v6809_v12 = vld [vmem:[%s11633_s8 + $0x228] sm:$0xff] }
 0x44f   : > { %4333 = vmatprep.subr.mxu1 %v6758_v59  ;;  %v6808_v59 = vld [vmem:[%s11633_s8 + $0x220] sm:$0xff] }
 0x450   : > { %4334 = vmatpush2.msra.mxu1 %v6757_v24 }
 0x451   : > { %4335 = vmatprep.subr.mxu1 %v6756_v1  ;;  %v6807_v1 = vld [vmem:[%s11633_s8 + $0x218] sm:$0xff] }
 0x452   : > { %4336 = vmatpush2.msra.mxu1 %v6755_v34  ;;  %v6806_v34 = vld [vmem:[%s11633_s8 + $0x210] sm:$0xff] }
 0x453   : > { %4337 = vmatprep.subr.mxu1 %v6754_v28  ;;  %v6805_v28 = vld [vmem:[%s11633_s8 + $0x208] sm:$0xff] }
 0x454   : > { %4338 = vmatpush2.msra.mxu1 %v6753_v7  ;;  %v6804_v7 = vld [vmem:[%s11633_s8 + $0x200] sm:$0xff] }
 0x455   : > { %4339 = vmatprep.subr.mxu1 %v6752_v36  ;;  %v6803_v36 = vld [vmem:[%s11633_s8 + $0x1f8] sm:$0xff] }
 0x456   : > { %4340 = vmatpush2.msra.mxu1 %v6751_v16  ;;  %v6802_v16 = vld [vmem:[%s11633_s8 + $0x1f0] sm:$0xff] }
 0x457   : > { %4341 = vmatprep.subr.mxu1 %v6750_v40  ;;  %v6801_v40 = vld [vmem:[%s11633_s8 + $0x1e8] sm:$0xff] }
 0x458   : > { %4342 = vmatpush2.msra.mxu1 %v6749_v20  ;;  %v6800_v20 = vld [vmem:[%s11633_s8 + $0x1e0] sm:$0xff] }
 0x459   : > { %4343 = vmatprep.subr.mxu1 %v6748_v26  ;;  %v6799_v26 = vld [vmem:[%s11633_s8 + $0x1d8] sm:$0xff] }
 0x45a   : > { %4344 = vmatpush2.msra.mxu1 %v6747_v25  ;;  %v6798_v25 = vld [vmem:[%s11633_s8 + $0x1d0] sm:$0xff] }
 0x45b   : > { %4345 = vmatprep.subr.mxu1 %v6746_v58  ;;  %v6797_v58 = vld [vmem:[%s11633_s8 + $0x1c8] sm:$0xff] }
 0x45c   : > { %4346 = vmatpush2.msra.mxu1 %v6745_v5  ;;  %v6796_v5 = vld [vmem:[%s11633_s8 + $0x1c0] sm:$0xff] }
 0x45d   : > { %4347 = vmatprep.subr.mxu1 %v6744_v0  ;;  %v6795_v0 = vld [vmem:[%s11633_s8 + $0x1b8] sm:$0xff] }
 0x45e   : > { %4348 = vmatpush2.msra.mxu1 %v6743_v21  ;;  %v6838_v21 = vld [vmem:[%s11633_s8 + $0x300] sm:$0xff] }
 0x45f   : > { %4349 = vmatprep.subr.mxu1 %v6742_v19  ;;  %v6794_v19 = vld [vmem:[%s11633_s8 + $0x1b0] sm:$0xff] }
 0x460   : > { %4350 = vmatpush2.msra.mxu1 %v6741_v37  ;;  %v6837_v37 = vld [vmem:[%s11633_s8 + $0x2f8] sm:$0xff] }
 0x461   : > { %4351 = vmatprep.subr.mxu1 %v6740_v62  ;;  %v6836_v62 = vld [vmem:[%s11633_s8 + $0x2f0] sm:$0xff] }
 0x462   : > { %4352 = vmatpush2.msra.mxu1 %v6739_v46  ;;  %v6835_v46 = vld [vmem:[%s11633_s8 + $0x2e8] sm:$0xff] }
 0x463   : > { %4751 = vmatprep.subr.mxu1 %v6853_v57  ;;  %v6788_v57 = vld [vmem:[%s11633_s8 + $0x180] sm:$0xff] }
 0x47c   : > { %v3846_v61 = vpop.f32.mrf.mxu1 }
 0x47e   : > { %v3848_v35 = vpop.f32.mrf.mxu1 }
 0x484   : > { %v10382_v41 = vpop.f32.mrf.mxu1 }
 0x486   : > { %v10384_v13 = vpop.f32.mrf.mxu1 }
 0x48a   : > { %v4138_v3 = vpop.f32.mrf.mxu1 }
 0x48c   : > { %v4140_v6 = vpop.f32.mrf.mxu1 }
 0x48d   : > { %4353 = vmatprep.mubr.f32.mxu1 %v4140_v6  ;;  %v6786_v6 = vld [vmem:[%s11633_s8 + $0x170] sm:$0xff] }
 0x48e   : > { %4354 = vmatmul.mubr.f32.vlgmr.msra.gmra.mxu1 %v4138_v3  ;;  %v6830_v3 = vld [vmem:[%s11633_s8 + $0x2c0] sm:$0xff] }
 0x48f   : > { %4752 = vmatpush1.msra.mxu1 %v6852_v53  ;;  %v6829_v53 = vld [vmem:[%s11633_s8 + $0x2b8] sm:$0xff] }
 0x490   : > { %4753 = vmatprep.subr.mxu1 %v6851_v32  ;;  %v6785_v32 = vld [vmem:[%s11633_s8 + $0x168] sm:$0xff] }
 0x491   : > { %4754 = vmatpush1.msra.mxu1 %v6850_v8  ;;  %v6828_v8 = vld [vmem:[%s11633_s8 + $0x2b0] sm:$0xff] }
 0x492   : > { %4755 = vmatprep.subr.mxu1 %v6849_v17  ;;  %v6827_v17 = vld [vmem:[%s11633_s8 + $0x2a8] sm:$0xff] }
 0x493   : > { %4756 = vmatpush1.msra.mxu1 %v6848_v42  ;;  %v6783_v42 = vld [vmem:[%s11633_s8 + $0x158] sm:$0xff] }
 0x494   : > { %4757 = vmatprep.subr.mxu1 %v6847_v14  ;;  %v6826_v14 = vld [vmem:[%s11633_s8 + $0x2a0] sm:$0xff] }
 0x495   : > { %4758 = vmatpush1.msra.mxu1 %v6846_v18  ;;  %v6782_v18 = vld [vmem:[%s11633_s8 + $0x150] sm:$0xff] }
 0x496   : > { %4759 = vmatprep.subr.mxu1 %v6845_v52  ;;  %v6825_v52 = vld [vmem:[%s11633_s8 + $0x298] sm:$0xff] }
 0x497   : > { %4760 = vmatpush1.msra.mxu1 %v6844_v54  ;;  %v6781_v54 = vld [vmem:[%s11633_s8 + $0x148] sm:$0xff] }
 0x498   : > { %4761 = vmatprep.subr.mxu1 %v6843_v23  ;;  %v6824_v23 = vld [vmem:[%s11633_s8 + $0x290] sm:$0xff] }
 0x499   : > { %4762 = vmatpush1.msra.mxu1 %v6842_v56  ;;  %v6818_v56 = vld [vmem:[%s11633_s8 + $0x270] sm:$0xff] }
 0x49a   : > { %4763 = vmatprep.subr.mxu1 %v6841_v39  ;;  %v6861_v39 = vld [vmem:[%s11633_s8 + $0x3b8] sm:$0xff] }
 0x49b   : > { %4764 = vmatpush1.msra.mxu1 %v6840_v44  ;;  %v6817_v44 = vld [vmem:[%s11633_s8 + $0x268] sm:$0xff] }
 0x49c   : > { %4765 = vmatprep.subr.mxu1 %v6839_v45  ;;  %v6860_v45 = vld [vmem:[%s11633_s8 + $0x3b0] sm:$0xff] }
 0x49d   : > { %4766 = vmatpush1.msra.mxu1 %v6838_v21 }
 0x49e   : > { %4767 = vmatprep.subr.mxu1 %v6837_v37 }
 0x49f   : > { %4768 = vmatpush1.msra.mxu1 %v6836_v62 }
 0x4a0   : > { %4769 = vmatprep.subr.mxu1 %v6835_v46 }
 0x4a1   : > { %4770 = vmatpush1.msra.mxu1 %v6834_v27 }
 0x4a2   : > { %v3917_v29 = vpop.f32.mrf.mxu0  ;;  %4771 = vmatprep.subr.mxu1 %v6833_v48 }
 0x4a3   : > { %v3918_v15 = vadd.f32 %v3917_v29, %v3846_v61  ;;  %4772 = vmatpush1.msra.mxu1 %v6832_v51  ;;  %v6831_v61 = vld [vmem:[%s11633_s8 + $0x2c8] sm:$0xff]  ;;  %v6780_v29 = vld [vmem:[%s11633_s8 + $0x140] sm:$0xff] }
 0x4a4   : > { %v3919_v30 = vpop.f32.mrf.mxu0  ;;  %4773 = vmatprep.subr.mxu1 %v6831_v61 }
 0x4a5   : > { %v3920_v10 = vadd.f32 %v3919_v30, %v3848_v35  ;;  %v6787_v35 = vld [vmem:[%s11633_s8 + $0x178] sm:$0xff]  ;;  %4774 = vmatpush1.msra.mxu1 %v6830_v3 }
 0x4a6   : > { %4775 = vmatprep.subr.mxu1 %v6829_v53  ;;  %v6819_v30 = vld [vmem:[%s11633_s8 + $0x278] sm:$0xff] }
 0x4a7   : > { %4776 = vmatpush1.msra.mxu1 %v6828_v8 }
 0x4a8   : > { %4777 = vmatprep.subr.mxu1 %v6827_v17 }
 0x4a9   : > { %4778 = vmatpush1.msra.mxu1 %v6826_v14  ;;  %v4492_v14 = vld [vmem:[%s11633_s8 + $0xe8] sm:$0xff] }
 0x4aa   : > { %4779 = vmatprep.subr.mxu1 %v6825_v52  ;;  %v4490_v52 = vld [vmem:[%s11633_s8 + $0xd8] sm:$0xff] }
 0x4ab   : > { %4780 = vmatpush1.msra.mxu1 %v6824_v23  ;;  %v4488_v23 = vld [vmem:[%s11633_s8 + $0xc8] sm:$0xff] }
 0x4e2   : > { %v3991_v60 = vpop.f32.mrf.mxu0 }
 0x4e3   : > { %v10428_v55 = vadd.f32 %v3991_v60, %v3918_v15  ;;  %v6823_v15 = vld [vmem:[%s11633_s8 + $0x288] sm:$0xff]  ;;  %v6816_v60 = vld [vmem:[%s11633_s8 + $0x260] sm:$0xff] }
 0x4e4   : > { %v3993_v31 = vpop.f32.mrf.mxu0  ;;  %4781 = vmatprep.subr.mxu1 %v6823_v15  ;;  %v4486_v15 = vld [vmem:[%s11633_s8 + $0xb8] sm:$0xff] }
 0x4e5   : > { %v10430_v50 = vadd.f32 %v3993_v31, %v3920_v10  ;;  %v6822_v10 = vld [vmem:[%s11633_s8 + $0x280] sm:$0xff]  ;;  %v6859_v31 = vld [vmem:[%s11633_s8 + $0x3a8] sm:$0xff] }
 0x4e6   : > { %4782 = vmatpush1.msra.mxu1 %v6822_v10  ;;  %v4484_v10 = vld [vmem:[%s11633_s8 + $0xa8] sm:$0xff] }
 0x4e7   : > { %4807 = vmatprep.subr.mxu1 %v6861_v39  ;;  %v4065_v21 = vadd.f32 %v10384_v13, %v10430_v50  ;;  %v4482_v39 = vld [vmem:[%s11633_s8 + $0x98] sm:$0xff] }
 0x4e8   : > { %v4209_v33 = vpop.f32.mrf.mxu0  ;;  %4808 = vmatpush2.msra.mxu1 %v6860_v45  ;;  %v4480_v45 = vld [vmem:[%s11633_s8 + $0x88] sm:$0xff] }
 0x4e9   : > { %6779 = vmatmul.mubr.msk.f32.vlgmr.msra.gmra.mxu0 %vm1854_vm11, %v4209_v33  ;;  %v6858_v33 = vld [vmem:[%s11633_s8 + $0x3a0] sm:$0xff]  ;;  %4809 = vmatprep.subr.mxu1 %v6859_v31  ;;  %v4478_v31 = vld [vmem:[%s11633_s8 + $0x78] sm:$0xff] }
 0x4ea   : > { %v7110_v24 = vpop.f32.mrf.mxu0  ;;  %4558 = vmatpush1.msra.mxu0 %v6810_v43  ;;  %v6815_v43 = vld [vmem:[%s11633_s8 + $0x258] sm:$0xff]  ;;  %4810 = vmatpush2.msra.mxu1 %v6858_v33  ;;  %v4476_v33 = vld [vmem:[%s11633_s8 + $0x68] sm:$0xff] }
 0x4eb   : > { %4559 = vmatprep.subr.mxu0 %v6809_v12  ;;  %v6814_v12 = vld [vmem:[%s11633_s8 + $0x250] sm:$0xff]  ;;  %v6813_v24 = vld [vmem:[%s11633_s8 + $0x248] sm:$0xff] }
 0x4ec   : > { %4560 = vmatpush1.msra.mxu0 %v6808_v59  ;;  %v6857_v59 = vld [vmem:[%s11633_s8 + $0x398] sm:$0xff] }
 0x4ed   : > { %4561 = vmatprep.subr.mxu0 %v6807_v1  ;;  %v6856_v1 = vld [vmem:[%s11633_s8 + $0x390] sm:$0xff]  ;;  %4811 = vmatprep.subr.mxu1 %v6857_v59  ;;  %v4474_v59 = vld [vmem:[%s11633_s8 + $0x58] sm:$0xff] }
 0x4ee   : > { %4562 = vmatpush1.msra.mxu0 %v6806_v34  ;;  %v6812_v34 = vld [vmem:[%s11633_s8 + $0x240] sm:$0xff]  ;;  %4812 = vmatpush2.msra.mxu1 %v6856_v1  ;;  %v4472_v1 = vld [vmem:[%s11633_s8 + $0x48] sm:$0xff] }
 0x4ef   : > { %4563 = vmatprep.subr.mxu0 %v6805_v28  ;;  %v6855_v28 = vld [vmem:[%s11633_s8 + $0x388] sm:$0xff] }
 0x4f0   : > { %4564 = vmatpush1.msra.mxu0 %v6804_v7  ;;  %v4494_v7 = vld [vmem:[%s11633_s8 + $0xf8] sm:$0xff]  ;;  %4813 = vmatprep.subr.mxu1 %v6855_v28 }
 0x4f1   : > { %4565 = vmatprep.subr.mxu0 %v6803_v36  ;;  %v6854_v36 = vld [vmem:[%s11633_s8 + $0x380] sm:$0xff]  ;;  %v4470_v28 = vld [vmem:[%s11633_s8 + $0x38] sm:$0xff] }
 0x4f2   : > { %4566 = vmatpush1.msra.mxu0 %v6802_v16  ;;  %4814 = vmatpush2.msra.mxu1 %v6854_v36  ;;  %v4468_v36 = vld [vmem:[%s11633_s8 + $0x28] sm:$0xff] }
 0x4f3   : > { %4567 = vmatprep.subr.mxu0 %v6801_v40  ;;  %v4433_v40 = vld [vmem:[%s11632_s7] sm:$0x3] }
 0x4f4   : > { %4568 = vmatpush1.msra.mxu0 %v6800_v20 }
 0x4f5   : > { %4569 = vmatprep.subr.mxu0 %v6799_v26  ;;  %v4063_v26 = vadd.f32 %v10382_v41, %v10428_v55 }
 0x4f6   : > { %4570 = vmatpush1.msra.mxu0 %v6798_v25 }
 0x4f7   : > { %4571 = vmatprep.subr.mxu0 %v6797_v58  ;;  %v4438_v58 = vrot.slane %v4433_v40, %v7711_v63 }
 0x4f8   : > { %4572 = vmatpush1.msra.mxu0 %v6796_v5 }
 0x4f9   : > { %4573 = vmatprep.subr.mxu0 %v6795_v0 }
 0x4fa   : > { %4574 = vmatpush1.msra.mxu0 %v6794_v19 }
 0x4fb   : > { %4575 = vmatprep.subr.mxu0 %v6793_v4  ;;  %v4442_v4 = vrot.slane %v4433_v40, %v7717_v2  ;;  %v4466_v40 = vld [vmem:[%s11633_s8 + $0x18] sm:$0xff] }
 0x4fc   : > { %4576 = vmatpush1.msra.mxu0 %v6792_v47 }
 0x4fd   : > { %4577 = vmatprep.subr.mxu0 %v6791_v9 }
 0x4fe   : > { %4578 = vmatpush1.msra.mxu0 %v6790_v22 }
 0x4ff   : > { %4579 = vmatprep.subr.mxu0 %v6789_v49 }
 0x500   : > { %4580 = vmatpush1.msra.mxu0 %v6788_v57 }
 0x501   : > { %4581 = vmatprep.subr.mxu0 %v6787_v35 }
 0x502   : > { %4582 = vmatpush1.msra.mxu0 %v6786_v6 }
 0x503   : > { %4583 = vmatprep.subr.mxu0 %v6785_v32 }
 0x504   : > { %4584 = vmatpush1.msra.mxu0 %v6784_v11  ;;  %v4493_v11 = vld [vmem:[%s11633_s8 + $0xf0] sm:$0xff] }
 0x505   : > { %4585 = vmatprep.subr.mxu0 %v6783_v42 }
 0x506   : > { %4586 = vmatpush1.msra.mxu0 %v6782_v18  ;;  %v4491_v18 = vld [vmem:[%s11633_s8 + $0xe0] sm:$0xff] }
 0x507   : > { %4587 = vmatprep.subr.mxu0 %v6781_v54  ;;  %v4489_v54 = vld [vmem:[%s11633_s8 + $0xd0] sm:$0xff] }
 0x508   : > { %4588 = vmatpush1.msra.mxu0 %v6780_v29  ;;  %v4487_v29 = vld [vmem:[%s11633_s8 + $0xc0] sm:$0xff] }
 0x509   : > { %4613 = vmatprep.subr.mxu0 %v6819_v30  ;;  %v4485_v30 = vld [vmem:[%s11633_s8 + $0xb0] sm:$0xff] }
 0x50a   : > { %4614 = vmatpush2.msra.mxu0 %v6818_v56  ;;  %v4483_v56 = vld [vmem:[%s11633_s8 + $0xa0] sm:$0xff] }
 0x50b   : > { %4615 = vmatprep.subr.mxu0 %v6817_v44  ;;  %v4481_v44 = vld [vmem:[%s11633_s8 + $0x90] sm:$0xff] }
 0x50c   : > { %4616 = vmatpush2.msra.mxu0 %v6816_v60  ;;  %v4479_v60 = vld [vmem:[%s11633_s8 + $0x80] sm:$0xff] }
 0x50d   : > { %4617 = vmatprep.subr.mxu0 %v6815_v43  ;;  %v4477_v43 = vld [vmem:[%s11633_s8 + $0x70] sm:$0xff] }
 0x50e   : > { %4618 = vmatpush2.msra.mxu0 %v6814_v12  ;;  %v4475_v12 = vld [vmem:[%s11633_s8 + $0x60] sm:$0xff] }
 0x50f   : > { %4619 = vmatprep.subr.mxu0 %v6813_v24  ;;  %v4473_v24 = vld [vmem:[%s11633_s8 + $0x50] sm:$0xff] }
 0x510   : > { %4620 = vmatpush2.msra.mxu0 %v6812_v34  ;;  %v4471_v34 = vld [vmem:[%s11633_s8 + $0x40] sm:$0xff] }
 0x511   : > { %4630 = vmatprep.subr.mxu0 %v4494_v7  ;;  %v4469_v7 = vld [vmem:[%s11633_s8 + $0x30] sm:$0xff] }
 0x54e   : > { %v4355_v16 = vpop.f32.mrf.mxu1 }
 0x550   : > { %v4357_v5 = vpop.f32.mrf.mxu1 }
 0x5a9   : > { %v4426_v20 = vpop.f32.mrf.mxu0 }
 0x5aa   : > { %v4427_v25 = vadd.f32 %v4426_v20, %v4355_v16  ;;  %v4467_v16 = vld [vmem:[%s11633_s8 + $0x20] sm:$0xff]  ;;  %v4465_v20 = vld [vmem:[%s11633_s8 + $0x10] sm:$0xff] }
 0x5ab   : > { %v4428_v0 = vpop.f32.mrf.mxu0 }
 0x5ac   : > { %v4431_v19 = vadd.f32 %v4427_v25, %v4063_v26  ;;  %v4429_v37 = vadd.f32 %v4428_v0, %v4357_v5  ;;  %v4464_v26 = vld [vmem:[%s11633_s8 + $0x8] sm:$0xff]  ;;  %v4463_v25 = vld [vmem:[%s11633_s8] sm:$0xff]  ;;  %v4501_v5 = vld [vmem:[%s11633_s8 + $0x130] sm:$0xff] }
 0x5ad   : > { %v4500_v0 = vld [vmem:[%s11633_s8 + $0x128] sm:$0xff] }
 0x5ae   : > { %v4445_v62 = vadd.f32 %v4438_v58, %v4431_v19  ;;  %v4432_v47 = vadd.f32 %v4429_v37, %v4065_v21  ;;  %v4502_v58 = vld [vmem:[%s11633_s8 + $0x138] sm:$0xff]  ;;  %v4499_v21 = vld [vmem:[%s11633_s8 + $0x120] sm:$0xff]  ;;  %v4497_v37 = vld [vmem:[%s11633_s8 + $0x110] sm:$0xff] }
 0x5af   : > { %v4498_v19 = vld [vmem:[%s11633_s8 + $0x118] sm:$0xff] }
 0x5b0   : > { %v4447_v46 = vmax.f32 %v4445_v62, 0.0  ;;  %v4446_v9 = vadd.f32 %v4442_v4, %v4432_v47  ;;  %v4496_v4 = vld [vmem:[%s11633_s8 + $0x108] sm:$0xff]  ;;  %v4495_v62 = vld [vmem:[%s11633_s8 + $0x100] sm:$0xff]  ;;  %v4885_v47 = vld [vmem:[%s11639_s14 + $0xf8] sm:$0xff] }
 0x5b1   : > { %5021 = vmatprep.subr.mxu1 %v4885_v47  ;;  %v6865_v47 = vld [vmem:[%s11639_s14 + $0x150] sm:$0xff] }
 0x5b2   : > { %v4451_v27 = vrot.slane %v4447_v46, 7  ;;  %v4448_v22 = vmax.f32 %v4446_v9, 0.0  ;;  %v4884_v46 = vld [vmem:[%s11639_s14 + $0xf0] sm:$0xff]  ;;  %v4883_v9 = vld [vmem:[%s11639_s14 + $0xe8] sm:$0xff] }
 0x5b4   : > { %4455 = vst [vmem:[#allocation4] sm:$0xfe] %v4451_v27  ;;  %4457 = vst [vmem:[#allocation4 + $0x10] sm:$0x1] %v4451_v27  ;;  %v4452_v41 = vrot.slane %v4448_v22, 7  ;;  %v6894_v27 = vld [vmem:[%s11639_s14 + $0x238] sm:$0xff] }
 0x5b5   : > { %v4882_v22 = vld [vmem:[%s11639_s14 + $0xe0] sm:$0xff] }
 0x5b6   : > { %4456 = vst.msk [vmem:[#allocation4 + $0x8] sm:$0xfe] %vm1850_vm9, %v4452_v41 }
 0x5b7   : > { %4458 = vst.msk [vmem:[#allocation4 + $0x18] sm:$0x1] %vm1858_vm10, %v4452_v41  ;;  %v6893_v41 = vld [vmem:[%s11639_s14 + $0x230] sm:$0xff] }
 0x5bb   : > { %v10644_v55 = vld [vmem:[#allocation4] sm:$0xff]  ;;  %v4461_v13 = vld [vmem:[#allocation4 + $0x10] sm:$0x3] }
 0x5bc   : > { %v4548_v50 = vrot.slane %v10644_v55, 1  ;;  %v4549_v51 = vrot.slane %v4461_v13, 1  ;;  %v4742_v57 = vrot.slane %v10644_v55, 2  ;;  %v4743_v61 = vrot.slane %v4461_v13, 2  ;;  %v6892_v13 = vld [vmem:[%s11639_s14 + $0x228] sm:$0xff] }
 0x5bd   : > { %v4460_v48 = vld [vmem:[#allocation4 + $0x8] sm:$0xff] }
 0x5be   : > { %v4462_v49 = vld [vmem:[#allocation4 + $0x18] sm:$0x3]  ;;  %v4551_v35 = vrot.slane %v4460_v48, 1  ;;  %v4745_v6 = vrot.slane %v4460_v48, 2  ;;  %v4550_v17 = vsel %vm782_vm1, %v4548_v50, %v4549_v51  ;;  %v4744_v42 = vsel %vm793_vm0, %v4742_v57, %v4743_v61  ;;  %v4879_v51 = vld [vmem:[%s11639_s14 + $0xc8] sm:$0xff]  ;;  %v4878_v61 = vld [vmem:[%s11639_s14 + $0xc0] sm:$0xff] }
 0x5bf   : > { %v4552_v3 = vrot.slane %v4462_v49, 1  ;;  %v4746_v53 = vrot.slane %v4462_v49, 2  ;;  %v4880_v50 = vld [vmem:[%s11639_s14 + $0xd0] sm:$0xff]  ;;  %v6890_v49 = vld [vmem:[%s11639_s14 + $0x218] sm:$0xff] }
 0x5c0   : > { %v6889_v57 = vld [vmem:[%s11639_s14 + $0x210] sm:$0xff] }
 0x5c1   : > { %v4553_v32 = vsel %vm782_vm1, %v4551_v35, %v4552_v3  ;;  %v4747_v8 = vsel %vm793_vm0, %v4745_v6, %v4746_v53  ;;  %v6888_v35 = vld [vmem:[%s11639_s14 + $0x208] sm:$0xff]  ;;  %v4877_v3 = vld [vmem:[%s11639_s14 + $0xb8] sm:$0xff]  ;;  %v6887_v6 = vld [vmem:[%s11639_s14 + $0x200] sm:$0xff] }
 0x5c2   : > { %6820 = vmatprep.mubr.msk.f32.mxu0 %vm1854_vm11, %v4553_v32  ;;  %6862 = vmatprep.mubr.msk.f32.mxu1 %vm1854_vm11, %v4747_v8  ;;  %v4876_v53 = vld [vmem:[%s11639_s14 + $0xb0] sm:$0xff]  ;;  %v6886_v32 = vld [vmem:[%s11639_s14 + $0x1f8] sm:$0xff]  ;;  %v4875_v8 = vld [vmem:[%s11639_s14 + $0xa8] sm:$0xff] }
 0x5c3   : > { %4622 = vmatmul.mubr.f32.vlgmr.msra.gmra.mxu0 %v4550_v17  ;;  %4816 = vmatmul.mubr.f32.vlgmr.msra.gmra.mxu1 %v4744_v42  ;;  %v4874_v17 = vld [vmem:[%s11639_s14 + $0xa0] sm:$0xff]  ;;  %v6884_v42 = vld [vmem:[%s11639_s14 + $0x1e8] sm:$0xff] }
 0x5c4   : > { %4631 = vmatpush1.msra.mxu0 %v4493_v11  ;;  %6821 = vmatprep.mubr.msk.f32.mxu0 %vm1854_vm11, %v4460_v48  ;;  %v6891_v48 = vld [vmem:[%s11639_s14 + $0x220] sm:$0xff]  ;;  %v6885_v11 = vld [vmem:[%s11639_s14 + $0x1f0] sm:$0xff] }
 0x5c5   : > { %4632 = vmatprep.subr.mxu0 %v4492_v14  ;;  %5022 = vmatpush1.msra.mxu1 %v4884_v46  ;;  %v4873_v14 = vld [vmem:[%s11639_s14 + $0x98] sm:$0xff] }
 0x5c6   : > { %4633 = vmatpush1.msra.mxu0 %v4491_v18  ;;  %5023 = vmatprep.subr.mxu1 %v4883_v9  ;;  %v6883_v18 = vld [vmem:[%s11639_s14 + $0x1e0] sm:$0xff]  ;;  %v4893_v46 = vld [vmem:[%s11639_s14 + $0x138] sm:$0xff]  ;;  %v6864_v9 = vld [vmem:[%s11639_s14 + $0x148] sm:$0xff] }
 0x5c7   : > { %4634 = vmatprep.subr.mxu0 %v4490_v52  ;;  %5024 = vmatpush1.msra.mxu1 %v4882_v22  ;;  %v4872_v52 = vld [vmem:[%s11639_s14 + $0x90] sm:$0xff]  ;;  %v6863_v22 = vld [vmem:[%s11639_s14 + $0x140] sm:$0xff] }
 0x5c8   : > { %4635 = vmatpush1.msra.mxu0 %v4489_v54  ;;  %v6882_v54 = vld [vmem:[%s11639_s14 + $0x1d8] sm:$0xff] }
 0x5c9   : > { %4636 = vmatprep.subr.mxu0 %v4488_v23  ;;  %v4871_v23 = vld [vmem:[%s11639_s14 + $0x88] sm:$0xff] }
 0x5ca   : > { %4637 = vmatpush1.msra.mxu0 %v4487_v29  ;;  %v6881_v29 = vld [vmem:[%s11639_s14 + $0x1d0] sm:$0xff] }
 0x5cb   : > { %4638 = vmatprep.subr.mxu0 %v4486_v15  ;;  %v4870_v15 = vld [vmem:[%s11639_s14 + $0x80] sm:$0xff] }
 0x5cc   : > { %4639 = vmatpush1.msra.mxu0 %v4485_v30  ;;  %v6880_v30 = vld [vmem:[%s11639_s14 + $0x1c8] sm:$0xff] }
 0x5cd   : > { %4640 = vmatprep.subr.mxu0 %v4484_v10  ;;  %v4869_v10 = vld [vmem:[%s11639_s14 + $0x78] sm:$0xff] }
 0x5ce   : > { %4641 = vmatpush1.msra.mxu0 %v4483_v56  ;;  %v6879_v56 = vld [vmem:[%s11639_s14 + $0x1c0] sm:$0xff] }
 0x5cf   : > { %4642 = vmatprep.subr.mxu0 %v4482_v39  ;;  %v4868_v39 = vld [vmem:[%s11639_s14 + $0x70] sm:$0xff] }
 0x5d0   : > { %4643 = vmatpush1.msra.mxu0 %v4481_v44  ;;  %v4867_v44 = vld [vmem:[%s11639_s14 + $0x68] sm:$0xff] }
 0x5d1   : > { %4644 = vmatprep.subr.mxu0 %v4480_v45  ;;  %v6878_v45 = vld [vmem:[%s11639_s14 + $0x1b8] sm:$0xff] }
 0x5d2   : > { %4645 = vmatpush1.msra.mxu0 %v4479_v60  ;;  %v4866_v60 = vld [vmem:[%s11639_s14 + $0x60] sm:$0xff] }
 0x5d3   : > { %4646 = vmatprep.subr.mxu0 %v4478_v31  ;;  %v6877_v31 = vld [vmem:[%s11639_s14 + $0x1b0] sm:$0xff] }
 0x5d4   : > { %4647 = vmatpush1.msra.mxu0 %v4477_v43  ;;  %v4865_v43 = vld [vmem:[%s11639_s14 + $0x58] sm:$0xff] }
 0x5d5   : > { %4648 = vmatprep.subr.mxu0 %v4476_v33  ;;  %v6876_v33 = vld [vmem:[%s11639_s14 + $0x1a8] sm:$0xff] }
 0x5d6   : > { %4649 = vmatpush1.msra.mxu0 %v4475_v12  ;;  %v4864_v12 = vld [vmem:[%s11639_s14 + $0x50] sm:$0xff] }
 0x5d7   : > { %4650 = vmatprep.subr.mxu0 %v4474_v59  ;;  %v6875_v59 = vld [vmem:[%s11639_s14 + $0x1a0] sm:$0xff] }
 0x5d8   : > { %4651 = vmatpush1.msra.mxu0 %v4473_v24  ;;  %v4863_v24 = vld [vmem:[%s11639_s14 + $0x48] sm:$0xff] }
 0x5d9   : > { %4652 = vmatprep.subr.mxu0 %v4472_v1  ;;  %v6874_v1 = vld [vmem:[%s11639_s14 + $0x198] sm:$0xff] }
 0x5da   : > { %4653 = vmatpush1.msra.mxu0 %v4471_v34  ;;  %v4862_v34 = vld [vmem:[%s11639_s14 + $0x40] sm:$0xff] }
 0x5db   : > { %4654 = vmatprep.subr.mxu0 %v4470_v28  ;;  %v6873_v28 = vld [vmem:[%s11639_s14 + $0x190] sm:$0xff] }
 0x5dc   : > { %4655 = vmatpush1.msra.mxu0 %v4469_v7  ;;  %v4861_v7 = vld [vmem:[%s11639_s14 + $0x38] sm:$0xff] }
 0x5dd   : > { %4656 = vmatprep.subr.mxu0 %v4468_v36  ;;  %v6872_v36 = vld [vmem:[%s11639_s14 + $0x188] sm:$0xff] }
 0x5de   : > { %4657 = vmatpush1.msra.mxu0 %v4467_v16  ;;  %v4860_v16 = vld [vmem:[%s11639_s14 + $0x30] sm:$0xff] }
 0x5df   : > { %4658 = vmatprep.subr.mxu0 %v4466_v40  ;;  %v6871_v40 = vld [vmem:[%s11639_s14 + $0x180] sm:$0xff] }
 0x5e0   : > { %4659 = vmatpush1.msra.mxu0 %v4465_v20  ;;  %v4859_v20 = vld [vmem:[%s11639_s14 + $0x28] sm:$0xff] }
 0x5e1   : > { %4660 = vmatprep.subr.mxu0 %v4464_v26  ;;  %v6870_v26 = vld [vmem:[%s11639_s14 + $0x178] sm:$0xff] }
 0x5e2   : > { %4661 = vmatpush1.msra.mxu0 %v4463_v25  ;;  %v4858_v25 = vld [vmem:[%s11639_s14 + $0x20] sm:$0xff] }
 0x5e3   : > { %4686 = vmatprep.subr.mxu0 %v4502_v58  ;;  %v6869_v58 = vld [vmem:[%s11639_s14 + $0x170] sm:$0xff] }
 0x5e4   : > { %4687 = vmatpush2.msra.mxu0 %v4501_v5  ;;  %v4857_v5 = vld [vmem:[%s11639_s14 + $0x18] sm:$0xff] }
 0x5e5   : > { %4688 = vmatprep.subr.mxu0 %v4500_v0  ;;  %v6868_v0 = vld [vmem:[%s11639_s14 + $0x168] sm:$0xff] }
 0x5e6   : > { %4689 = vmatpush2.msra.mxu0 %v4499_v21  ;;  %v4856_v21 = vld [vmem:[%s11639_s14 + $0x10] sm:$0xff] }
 0x5e7   : > { %4690 = vmatprep.subr.mxu0 %v4498_v19  ;;  %v6867_v19 = vld [vmem:[%s11639_s14 + $0x160] sm:$0xff] }
 0x5e8   : > { %4691 = vmatpush2.msra.mxu0 %v4497_v37  ;;  %v4855_v37 = vld [vmem:[%s11639_s14 + $0x8] sm:$0xff] }
 0x5e9   : > { %4692 = vmatprep.subr.mxu0 %v4496_v4  ;;  %v6866_v4 = vld [vmem:[%s11639_s14 + $0x158] sm:$0xff] }
 0x5ea   : > { %4693 = vmatpush2.msra.mxu0 %v4495_v62  ;;  %v4854_v62 = vld [vmem:[%s11639_s14] sm:$0xff] }
 0x5eb   : > { %4695 = vmatmul.mubr.f32.vlgmr.msra.gmra.mxu0 %v10644_v55  ;;  %4948 = vmatprep.subr.mxu0 %v6894_v27  ;;  %v4881_v55 = vld [vmem:[%s11639_s14 + $0xd8] sm:$0xff]  ;;  %v4892_v27 = vld [vmem:[%s11639_s14 + $0x130] sm:$0xff] }
 0x5ec   : > { %4949 = vmatpush1.msra.mxu0 %v6893_v41  ;;  %5025 = vmatprep.subr.mxu1 %v4881_v55  ;;  %v4891_v41 = vld [vmem:[%s11639_s14 + $0x128] sm:$0xff]  ;;  %v6902_v55 = vld [vmem:[%s11639_s14 + $0x278] sm:$0xff] }
 0x5ed   : > { %4950 = vmatprep.subr.mxu0 %v6892_v13  ;;  %5026 = vmatpush1.msra.mxu1 %v4880_v50  ;;  %v4890_v13 = vld [vmem:[%s11639_s14 + $0x120] sm:$0xff]  ;;  %v6901_v50 = vld [vmem:[%s11639_s14 + $0x270] sm:$0xff] }
 0x5ee   : > { %4951 = vmatpush1.msra.mxu0 %v6891_v48  ;;  %5027 = vmatprep.subr.mxu1 %v4879_v51  ;;  %v4889_v48 = vld [vmem:[%s11639_s14 + $0x118] sm:$0xff]  ;;  %v4888_v51 = vld [vmem:[%s11639_s14 + $0x110] sm:$0xff] }
 0x5ef   : > { %4952 = vmatprep.subr.mxu0 %v6890_v49  ;;  %5028 = vmatpush1.msra.mxu1 %v4878_v61  ;;  %v6900_v49 = vld [vmem:[%s11639_s14 + $0x268] sm:$0xff] }
 0x5f0   : > { %4953 = vmatpush1.msra.mxu0 %v6889_v57  ;;  %5029 = vmatprep.subr.mxu1 %v4877_v3  ;;  %v6899_v57 = vld [vmem:[%s11639_s14 + $0x260] sm:$0xff]  ;;  %v4887_v61 = vld [vmem:[%s11639_s14 + $0x108] sm:$0xff] }
 0x5f1   : > { %4954 = vmatprep.subr.mxu0 %v6888_v35  ;;  %5030 = vmatpush1.msra.mxu1 %v4876_v53  ;;  %v6898_v35 = vld [vmem:[%s11639_s14 + $0x258] sm:$0xff]  ;;  %v4886_v3 = vld [vmem:[%s11639_s14 + $0x100] sm:$0xff]  ;;  %v6896_v53 = vld [vmem:[%s11639_s14 + $0x248] sm:$0xff] }
 0x5f2   : > { %4955 = vmatpush1.msra.mxu0 %v6887_v6  ;;  %5031 = vmatprep.subr.mxu1 %v4875_v8  ;;  %v6897_v6 = vld [vmem:[%s11639_s14 + $0x250] sm:$0xff]  ;;  %v6936_v8 = vld [vmem:[%s11639_s14 + $0x378] sm:$0xff] }
 0x5f3   : > { %4956 = vmatprep.subr.mxu0 %v6886_v32  ;;  %5032 = vmatpush1.msra.mxu1 %v4874_v17  ;;  %v6895_v32 = vld [vmem:[%s11639_s14 + $0x240] sm:$0xff] }
 0x5f4   : > { %4957 = vmatpush1.msra.mxu0 %v6885_v11  ;;  %5033 = vmatprep.subr.mxu1 %v4873_v14 }
 0x5f5   : > { %4958 = vmatprep.subr.mxu0 %v6884_v42  ;;  %5034 = vmatpush1.msra.mxu1 %v4872_v52  ;;  %v4824_v42 = vld [vmem:[%s11634_s9] sm:$0x3] }
 0x5f6   : > { %4959 = vmatpush1.msra.mxu0 %v6883_v18  ;;  %5035 = vmatprep.subr.mxu1 %v4871_v23 }
 0x5f7   : > { %4960 = vmatprep.subr.mxu0 %v6882_v54  ;;  %5036 = vmatpush1.msra.mxu1 %v4870_v15  ;;  %v4829_v54 = vrot.slane %v4824_v42, %v7711_v63 }
 0x5f8   : > { %4961 = vmatpush1.msra.mxu0 %v6881_v29  ;;  %5037 = vmatprep.subr.mxu1 %v4869_v10 }
 0x5f9   : > { %4962 = vmatprep.subr.mxu0 %v6880_v30  ;;  %5038 = vmatpush1.msra.mxu1 %v4868_v39  ;;  %v4833_v30 = vrot.slane %v4824_v42, %v7717_v2  ;;  %v6914_v42 = vld [vmem:[%s11639_s14 + $0x2c8] sm:$0xff] }
 0x5fa   : > { %4963 = vmatpush1.msra.mxu0 %v6879_v56  ;;  %5039 = vmatprep.subr.mxu1 %v4867_v44 }
 0x5fb   : > { %4964 = vmatprep.subr.mxu0 %v6878_v45  ;;  %5040 = vmatpush1.msra.mxu1 %v4866_v60 }
 0x5fc   : > { %4965 = vmatpush1.msra.mxu0 %v6877_v31  ;;  %5041 = vmatprep.subr.mxu1 %v4865_v43 }
 0x5fd   : > { %4966 = vmatprep.subr.mxu0 %v6876_v33  ;;  %5042 = vmatpush1.msra.mxu1 %v4864_v12 }
 0x5fe   : > { %4967 = vmatpush1.msra.mxu0 %v6875_v59  ;;  %5043 = vmatprep.subr.mxu1 %v4863_v24 }
 0x5ff   : > { %4968 = vmatprep.subr.mxu0 %v6874_v1  ;;  %5044 = vmatpush1.msra.mxu1 %v4862_v34 }
 0x600   : > { %4969 = vmatpush1.msra.mxu0 %v6873_v28  ;;  %5045 = vmatprep.subr.mxu1 %v4861_v7 }
 0x601   : > { %4970 = vmatprep.subr.mxu0 %v6872_v36  ;;  %5046 = vmatpush1.msra.mxu1 %v4860_v16 }
 0x602   : > { %4971 = vmatpush1.msra.mxu0 %v6871_v40  ;;  %5047 = vmatprep.subr.mxu1 %v4859_v20  ;;  %v6935_v20 = vld [vmem:[%s11639_s14 + $0x370] sm:$0xff] }
 0x603   : > { %4972 = vmatprep.subr.mxu0 %v6870_v26  ;;  %5048 = vmatpush1.msra.mxu1 %v4858_v25  ;;  %v6934_v25 = vld [vmem:[%s11639_s14 + $0x368] sm:$0xff] }
 0x604   : > { %4973 = vmatpush1.msra.mxu0 %v6869_v58  ;;  %5049 = vmatprep.subr.mxu1 %v4857_v5  ;;  %v5232_v58 = vld [vmem:[%s11644_s19] sm:$0xf] }
 0x605   : > { %4974 = vmatprep.subr.mxu0 %v6868_v0  ;;  %5050 = vmatpush1.msra.mxu1 %v4856_v21  ;;  %v6933_v5 = vld [vmem:[%s11639_s14 + $0x360] sm:$0xff]  ;;  %v6932_v21 = vld [vmem:[%s11639_s14 + $0x358] sm:$0xff] }
 0x606   : > { %4975 = vmatpush1.msra.mxu0 %v6867_v19  ;;  %5051 = vmatprep.subr.mxu1 %v4855_v37  ;;  %v6931_v19 = vld [vmem:[%s11639_s14 + $0x350] sm:$0xff]  ;;  %v6930_v37 = vld [vmem:[%s11639_s14 + $0x348] sm:$0xff] }
 0x607   : > { %4976 = vmatprep.subr.mxu0 %v6866_v4  ;;  %5052 = vmatpush1.msra.mxu1 %v4854_v62  ;;  %v6949_v4 = vld [vmem:[%s11644_s19 + $0x4] sm:$0xf] }
 0x608   : > { %4977 = vmatpush1.msra.mxu0 %v6865_v47  ;;  %5077 = vmatprep.subr.mxu1 %v4893_v46  ;;  %v6929_v62 = vld [vmem:[%s11639_s14 + $0x340] sm:$0xff]  ;;  %v6968_v47 = vld [vmem:[%s11635_s10 + $0x118] sm:$0xff] }
 0x609   : > { %4978 = vmatprep.subr.mxu0 %v6864_v9  ;;  %5078 = vmatpush2.msra.mxu1 %v4892_v27  ;;  %v6928_v46 = vld [vmem:[%s11639_s14 + $0x338] sm:$0xff]  ;;  %v6927_v9 = vld [vmem:[%s11639_s14 + $0x330] sm:$0xff] }
 0x60a   : > { %4979 = vmatpush1.msra.mxu0 %v6863_v22  ;;  %5079 = vmatprep.subr.mxu1 %v4891_v41  ;;  %v6967_v27 = vld [vmem:[%s11635_s10 + $0x110] sm:$0xff]  ;;  %v6926_v22 = vld [vmem:[%s11639_s14 + $0x328] sm:$0xff]  ;;  %v6925_v41 = vld [vmem:[%s11639_s14 + $0x320] sm:$0xff] }
 0x60b   : > { %5004 = vmatprep.subr.mxu0 %v6902_v55  ;;  %5080 = vmatpush2.msra.mxu1 %v4890_v13  ;;  %v6966_v55 = vld [vmem:[%s11635_s10 + $0x108] sm:$0xff]  ;;  %v6924_v13 = vld [vmem:[%s11639_s14 + $0x318] sm:$0xff] }
 0x60c   : > { %5005 = vmatpush2.msra.mxu0 %v6901_v50  ;;  %5081 = vmatprep.subr.mxu1 %v4889_v48  ;;  %v6923_v50 = vld [vmem:[%s11639_s14 + $0x310] sm:$0xff]  ;;  %v6965_v48 = vld [vmem:[%s11635_s10 + $0x100] sm:$0xff] }
 0x60d   : > { %5006 = vmatprep.subr.mxu0 %v6900_v49  ;;  %5082 = vmatpush2.msra.mxu1 %v4888_v51  ;;  %v6922_v49 = vld [vmem:[%s11639_s14 + $0x308] sm:$0xff]  ;;  %v6921_v51 = vld [vmem:[%s11639_s14 + $0x300] sm:$0xff] }
 0x60e   : > { %5007 = vmatpush2.msra.mxu0 %v6899_v57  ;;  %5083 = vmatprep.subr.mxu1 %v4887_v61  ;;  %v6964_v57 = vld [vmem:[%s11635_s10 + $0xf8] sm:$0xff] }
 0x60f   : > { %5008 = vmatprep.subr.mxu0 %v6898_v35  ;;  %5084 = vmatpush2.msra.mxu1 %v4886_v3  ;;  %v6920_v61 = vld [vmem:[%s11639_s14 + $0x2f8] sm:$0xff]  ;;  %v6919_v35 = vld [vmem:[%s11639_s14 + $0x2f0] sm:$0xff] }
 0x610   : > { %5009 = vmatpush2.msra.mxu0 %v6897_v6  ;;  %v6963_v3 = vld [vmem:[%s11635_s10 + $0xf0] sm:$0xff]  ;;  %v6918_v6 = vld [vmem:[%s11639_s14 + $0x2e8] sm:$0xff] }
 0x611   : > { %5010 = vmatprep.subr.mxu0 %v6896_v53  ;;  %v6917_v53 = vld [vmem:[%s11639_s14 + $0x2e0] sm:$0xff] }
 0x612   : > { %5011 = vmatpush2.msra.mxu0 %v6895_v32  ;;  %v6962_v32 = vld [vmem:[%s11635_s10 + $0xe8] sm:$0xff] }
 0x613   : > { %5142 = vmatprep.subr.mxu0 %v6936_v8  ;;  %v6916_v8 = vld [vmem:[%s11639_s14 + $0x2d8] sm:$0xff] }
 0x683   : > { %v4623_v11 = vpop.f32.mrf.mxu0  ;;  %v4817_v14 = vpop.f32.mrf.mxu1 }
 0x685   : > { %v4625_v17 = vpop.f32.mrf.mxu0  ;;  %v4819_v10 = vpop.f32.mrf.mxu1 }
 0x6ab   : > { %v4696_v18 = vpop.f32.mrf.mxu0 }
 0x6ac   : > { %v4697_v52 = vadd.f32 %v4696_v18, %v4623_v11  ;;  %v6915_v11 = vld [vmem:[%s11639_s14 + $0x2d0] sm:$0xff]  ;;  %v6960_v18 = vld [vmem:[%s11635_s10 + $0xd8] sm:$0xff] }
 0x6ad   : > { %v4698_v23 = vpop.f32.mrf.mxu0 }
 0x6ae   : > { %v4822_v29 = vadd.f32 %v4817_v14, %v4697_v52  ;;  %v4699_v15 = vadd.f32 %v4698_v23, %v4625_v17  ;;  %v6961_v17 = vld [vmem:[%s11635_s10 + $0xe0] sm:$0xff]  ;;  %v6912_v52 = vld [vmem:[%s11639_s14 + $0x2b8] sm:$0xff]  ;;  %v6959_v23 = vld [vmem:[%s11635_s10 + $0xd0] sm:$0xff] }
 0x6af   : > { %v6913_v14 = vld [vmem:[%s11639_s14 + $0x2c0] sm:$0xff] }
 0x6b0   : > { %v4836_v56 = vadd.f32 %v4829_v54, %v4822_v29  ;;  %v4823_v39 = vadd.f32 %v4819_v10, %v4699_v15  ;;  %v6911_v54 = vld [vmem:[%s11639_s14 + $0x2b0] sm:$0xff]  ;;  %v6910_v29 = vld [vmem:[%s11639_s14 + $0x2a8] sm:$0xff]  ;;  %v6909_v15 = vld [vmem:[%s11639_s14 + $0x2a0] sm:$0xff] }
 0x6b1   : > { %v6908_v10 = vld [vmem:[%s11639_s14 + $0x298] sm:$0xff] }
 0x6b2   : > { %v4838_v44 = vmax.f32 %v4836_v56, 0.0  ;;  %v4837_v45 = vadd.f32 %v4833_v30, %v4823_v39  ;;  %v6958_v30 = vld [vmem:[%s11635_s10 + $0xc8] sm:$0xff]  ;;  %v6907_v56 = vld [vmem:[%s11639_s14 + $0x290] sm:$0xff]  ;;  %v6957_v39 = vld [vmem:[%s11635_s10 + $0xc0] sm:$0xff] }
 0x6b4   : > { %v4842_v60 = vrot.slane %v4838_v44, 7  ;;  %v4839_v31 = vmax.f32 %v4837_v45, 0.0  ;;  %v6906_v44 = vld [vmem:[%s11639_s14 + $0x288] sm:$0xff]  ;;  %v6905_v45 = vld [vmem:[%s11639_s14 + $0x280] sm:$0xff] }
 0x6b6   : > { %4846 = vst [vmem:[#allocation5] sm:$0xfe] %v4842_v60  ;;  %4848 = vst [vmem:[#allocation5 + $0x10] sm:$0x1] %v4842_v60  ;;  %v4843_v43 = vrot.slane %v4839_v31, 7  ;;  %v6956_v60 = vld [vmem:[%s11635_s10 + $0xb8] sm:$0xff] }
 0x6b7   : > { %v6944_v31 = vld [vmem:[%s11639_s14 + $0x3b8] sm:$0xff] }
 0x6b8   : > { %4847 = vst.msk [vmem:[#allocation5 + $0x8] sm:$0xfe] %vm1850_vm9, %v4843_v43 }
 0x6b9   : > { %4849 = vst.msk [vmem:[#allocation5 + $0x18] sm:$0x1] %vm1858_vm10, %v4843_v43  ;;  %v6943_v43 = vld [vmem:[%s11639_s14 + $0x3b0] sm:$0xff] }
 0x6bd   : > { %v11023_v33 = vld [vmem:[#allocation5] sm:$0xff]  ;;  %v11025_v12 = vld [vmem:[#allocation5 + $0x10] sm:$0x3] }
 0x6be   : > { %v4939_v1 = vrot.slane %v11023_v33, 1  ;;  %v4940_v34 = vrot.slane %v11025_v12, 1 }
 0x6bf   : > { %v11027_v59 = vld [vmem:[#allocation5 + $0x8] sm:$0xff] }
 0x6c0   : > { %v11029_v24 = vld [vmem:[#allocation5 + $0x18] sm:$0x3]  ;;  %6904 = vmatprep.mubr.msk.f32.mxu1 %vm1854_vm11, %v11027_v59  ;;  %v4942_v28 = vrot.slane %v11027_v59, 1  ;;  %v5136_v36 = vrot.slane %v11027_v59, 2  ;;  %v4941_v26 = vsel %vm782_vm1, %v4939_v1, %v4940_v34  ;;  %v6942_v34 = vld [vmem:[%s11639_s14 + $0x3a8] sm:$0xff] }
 0x6c1   : > { %6946 = vmatprep.subr.msk.mxu1 %vm3338_vm12, %v11029_v24  ;;  %v4943_v7 = vrot.slane %v11029_v24, 1  ;;  %5086 = vmatmul.mubr.f32.vlgmr.msra.gmra.mxu1 %v11023_v33  ;;  %v5137_v16 = vrot.slane %v11029_v24, 2  ;;  %v6955_v1 = vld [vmem:[%s11635_s10 + $0xb0] sm:$0xff] }
 0x6c2   : > { %6947 = vmatpush1.msk.msra.mxu1 %vm3338_vm12, %v11025_v12  ;;  %5305 = vmatprep.mubr.f32.mxu1 %v7224_v38 }
 0x6c3   : > { %v4944_v40 = vsel %vm782_vm1, %v4942_v28, %v4943_v7  ;;  %5271 = vmatprep.subr.mxu1 %v11027_v59  ;;  %v5138_v0 = vsel %vm793_vm0, %v5136_v36, %v5137_v16  ;;  %v6941_v28 = vld [vmem:[%s11639_s14 + $0x3a0] sm:$0xff]  ;;  %v6954_v7 = vld [vmem:[%s11635_s10 + $0xa8] sm:$0xff]  ;;  %v6940_v36 = vld [vmem:[%s11639_s14 + $0x398] sm:$0xff]  ;;  %vm735_vm1 = vcmask 778240  }
 0x6c4   : > { %6903 = vmatprep.mubr.msk.f32.mxu0 %vm1854_vm11, %v4944_v40  ;;  %5272 = vmatpush1.msra.mxu1 %v11023_v33  ;;  %v6939_v16 = vld [vmem:[%s11639_s14 + $0x390] sm:$0xff]  ;;  %v6953_v40 = vld [vmem:[%s11635_s10 + $0xa0] sm:$0xff]  ;;  %736 = vst.msk [vmem:[#allocation6] sm:$0x1] %vm735_vm1, %v7224_v38  ;;  %737 = vst.msk [vmem:[#allocation6 + $0x5] sm:$0x1] %vm735_vm1, %v7224_v38 }
 0x6c5   : > { %5013 = vmatmul.mubr.f32.vlgmr.msra.gmra.mxu0 %v4941_v26  ;;  %6950 = vmatprep.subr.msk.mxu1 %vm3338_vm12, %v11029_v24  ;;  %v5133_v26 = vrot.slane %v11023_v33, 2 }
 0x6c6   : > { %5143 = vmatpush1.msra.mxu0 %v6935_v20  ;;  %6945 = vmatprep.mubr.msk.f32.mxu0 %vm1854_vm11, %v5138_v0  ;;  %v6938_v20 = vld [vmem:[%s11639_s14 + $0x388] sm:$0xff] }
 0x6c7   : > { %5144 = vmatprep.subr.mxu0 %v6934_v25  ;;  %6948 = vmatmul.mubr.msk.f32.vlgmr.msra.gmra.mxu1 %vm5233_vm3, %v5232_v58  ;;  %v5134_v25 = vrot.slane %v11025_v12, 2  ;;  %v6937_v58 = vld [vmem:[%s11639_s14 + $0x380] sm:$0xff] }
 0x6c8   : > { %5145 = vmatpush1.msra.mxu0 %v6933_v5  ;;  %6951 = vmatpush1.msk.msra.mxu1 %vm3338_vm12, %v11025_v12  ;;  %v6972_v5 = vld [vmem:[%s11635_s10 + $0x138] sm:$0xff] }
 0x6c9   : > { %5146 = vmatprep.subr.mxu0 %v6932_v21  ;;  %5367 = vmatprep.subr.mxu1 %v11027_v59  ;;  %v5135_v0 = vsel %vm793_vm0, %v5133_v26, %v5134_v25  ;;  %v6971_v21 = vld [vmem:[%s11635_s10 + $0x130] sm:$0xff]  ;;  %vm5230_vm0 = vcmask 785408   ;;  %v6979_v26 = vld [vmem:[%s11635_s10 + $0x140] sm:$0xff]  ;;  %v6998_v25 = vld [vmem:[%s11635_s10 + $0x1d8] sm:$0xff] }
 0x6ca   : > { %5147 = vmatpush1.msra.mxu0 %v6931_v19  ;;  %5368 = vmatpush1.msra.mxu1 %v11023_v33  ;;  %v5327_v19 = vld [vmem:[%s11635_s10 + $0x78] sm:$0xff] }
 0x6cb   : > { %5401 = vmatprep.mubr.f32.mxu1 %v7224_v38  ;;  %5432 = vmatprep.subr.mxu1 %v7224_v38 }
 0x6cc   : > { %5148 = vmatprep.subr.mxu0 %v6930_v37  ;;  %6952 = vmatmul.mubr.msk.f32.vlgmr.msra.gmra.mxu1 %vm5233_vm3, %v6949_v4  ;;  %v6970_v37 = vld [vmem:[%s11635_s10 + $0x128] sm:$0xff]  ;;  %v5326_v4 = vld [vmem:[%s11635_s10 + $0x70] sm:$0xff] }
 0x6cd   : > { %5149 = vmatpush1.msra.mxu0 %v6929_v62  ;;  %5433 = vmatpush1.msra.mxu1 %v6968_v47  ;;  %v6969_v62 = vld [vmem:[%s11635_s10 + $0x120] sm:$0xff]  ;;  %v5325_v47 = vld [vmem:[%s11635_s10 + $0x68] sm:$0xff] }
 0x6ce   : > { %5150 = vmatprep.subr.mxu0 %v6928_v46  ;;  %5434 = vmatprep.subr.mxu1 %v7224_v38  ;;  %v5324_v46 = vld [vmem:[%s11635_s10 + $0x60] sm:$0xff] }
 0x6cf   : > { %5151 = vmatpush1.msra.mxu0 %v6927_v9  ;;  %5435 = vmatpush1.msra.mxu1 %v6967_v27  ;;  %v5323_v9 = vld [vmem:[%s11635_s10 + $0x58] sm:$0xff]  ;;  %v5322_v27 = vld [vmem:[%s11635_s10 + $0x50] sm:$0xff] }
 0x6d0   : > { %5152 = vmatprep.subr.mxu0 %v6926_v22  ;;  %5436 = vmatprep.subr.mxu1 %v7224_v38  ;;  %v5320_v22 = vld [vmem:[%s11635_s10 + $0x40] sm:$0xff] }
 0x6d1   : > { %5153 = vmatpush1.msra.mxu0 %v6925_v41  ;;  %5437 = vmatpush1.msra.mxu1 %v6966_v55  ;;  %v5319_v41 = vld [vmem:[%s11635_s10 + $0x38] sm:$0xff]  ;;  %v5318_v55 = vld [vmem:[%s11635_s10 + $0x30] sm:$0xff] }
 0x6d2   : > { %5154 = vmatprep.subr.mxu0 %v6924_v13  ;;  %5438 = vmatprep.subr.mxu1 %v7224_v38  ;;  %v5317_v13 = vld [vmem:[%s11635_s10 + $0x28] sm:$0xff] }
 0x6d3   : > { %5155 = vmatpush1.msra.mxu0 %v6923_v50  ;;  %5439 = vmatpush1.msra.mxu1 %v6965_v48  ;;  %v5316_v50 = vld [vmem:[%s11635_s10 + $0x20] sm:$0xff]  ;;  %v5315_v48 = vld [vmem:[%s11635_s10 + $0x18] sm:$0xff] }
 0x6d4   : > { %5156 = vmatprep.subr.mxu0 %v6922_v49  ;;  %5440 = vmatprep.subr.mxu1 %v7224_v38  ;;  %v5314_v49 = vld [vmem:[%s11635_s10 + $0x10] sm:$0xff] }
 0x6d5   : > { %5157 = vmatpush1.msra.mxu0 %v6921_v51  ;;  %5441 = vmatpush1.msra.mxu1 %v6964_v57  ;;  %v5313_v51 = vld [vmem:[%s11635_s10 + $0x8] sm:$0xff]  ;;  %v5312_v57 = vld [vmem:[%s11635_s10] sm:$0xff] }
 0x6d6   : > { %5158 = vmatprep.subr.mxu0 %v6920_v61  ;;  %5442 = vmatprep.subr.mxu1 %v7224_v38  ;;  %v5331_v61 = vld [vmem:[%s11635_s10 + $0x98] sm:$0xff] }
 0x6d7   : > { %5159 = vmatpush1.msra.mxu0 %v6919_v35  ;;  %5443 = vmatpush1.msra.mxu1 %v6963_v3  ;;  %v5330_v35 = vld [vmem:[%s11635_s10 + $0x90] sm:$0xff]  ;;  %v5329_v3 = vld [vmem:[%s11635_s10 + $0x88] sm:$0xff] }
 0x6d8   : > { %5160 = vmatprep.subr.mxu0 %v6918_v6  ;;  %5444 = vmatprep.subr.mxu1 %v7224_v38  ;;  %v5328_v6 = vld [vmem:[%s11635_s10 + $0x80] sm:$0xff] }
 0x6d9   : > { %5161 = vmatpush1.msra.mxu0 %v6917_v53  ;;  %5445 = vmatpush1.msra.mxu1 %v6962_v32 }
 0x6da   : > { %5162 = vmatprep.subr.mxu0 %v6916_v8  ;;  %5446 = vmatprep.subr.mxu1 %v7224_v38 }
 0x6db   : > { %5163 = vmatpush1.msra.mxu0 %v6915_v11  ;;  %5447 = vmatpush1.msra.mxu1 %v6961_v17 }
 0x6dc   : > { %5164 = vmatprep.subr.mxu0 %v6914_v42  ;;  %5448 = vmatprep.subr.mxu1 %v7224_v38 }
 0x6dd   : > { %5165 = vmatpush1.msra.mxu0 %v6913_v14  ;;  %5449 = vmatpush1.msra.mxu1 %v6960_v18  ;;  %v6975_v14 = vld [vmem:[%s11644_s19 + $0x8] sm:$0xf]  ;;  %v6994_v18 = vld [vmem:[%s11635_s10 + $0x1b8] sm:$0xff] }
 0x6de   : > { %5166 = vmatprep.subr.mxu0 %v6912_v52  ;;  %5450 = vmatprep.subr.mxu1 %v7224_v38  ;;  %v6990_v52 = vld [vmem:[%s11635_s10 + $0x198] sm:$0xff] }
 0x6df   : > { %5167 = vmatpush1.msra.mxu0 %v6911_v54  ;;  %5451 = vmatpush1.msra.mxu1 %v6959_v23  ;;  %v6989_v54 = vld [vmem:[%s11635_s10 + $0x190] sm:$0xff]  ;;  %v6988_v23 = vld [vmem:[%s11635_s10 + $0x188] sm:$0xff] }
 0x6e0   : > { %5168 = vmatprep.subr.mxu0 %v6910_v29  ;;  %5452 = vmatprep.subr.mxu1 %v7224_v38  ;;  %v6987_v29 = vld [vmem:[%s11635_s10 + $0x180] sm:$0xff] }
 0x6e1   : > { %5169 = vmatpush1.msra.mxu0 %v6909_v15  ;;  %5453 = vmatpush1.msra.mxu1 %v6958_v30  ;;  %v6986_v15 = vld [vmem:[%s11635_s10 + $0x178] sm:$0xff]  ;;  %v6985_v30 = vld [vmem:[%s11635_s10 + $0x170] sm:$0xff] }
 0x6e2   : > { %5170 = vmatprep.subr.mxu0 %v6908_v10  ;;  %5454 = vmatprep.subr.mxu1 %v7224_v38  ;;  %v6984_v10 = vld [vmem:[%s11635_s10 + $0x168] sm:$0xff] }
 0x6e3   : > { %5171 = vmatpush1.msra.mxu0 %v6907_v56  ;;  %5455 = vmatpush1.msra.mxu1 %v6957_v39  ;;  %v6983_v39 = vld [vmem:[%s11635_s10 + $0x160] sm:$0xff] }
 0x6e4   : > { %5172 = vmatprep.subr.mxu0 %v6906_v44  ;;  %5456 = vmatprep.subr.mxu1 %v7224_v38  ;;  %v5215_v44 = vld [vmem:[%s11640_s15] sm:$0x3] }
 0x6e5   : > { %5173 = vmatpush1.msra.mxu0 %v6905_v45  ;;  %5457 = vmatpush1.msra.mxu1 %v6956_v60  ;;  %v6982_v45 = vld [vmem:[%s11635_s10 + $0x158] sm:$0xff] }
 0x6e6   : > { %5198 = vmatprep.subr.mxu0 %v6944_v31  ;;  %5458 = vmatprep.subr.mxu1 %v7224_v38 }
 0x6e7   : > { %5199 = vmatpush2.msra.mxu0 %v6943_v43  ;;  %5459 = vmatpush1.msra.mxu1 %v6955_v1  ;;  %v5220_v43 = vrot.slane %v5215_v44, %v7711_v63  ;;  %v6981_v1 = vld [vmem:[%s11635_s10 + $0x150] sm:$0xff] }
 0x6e8   : > { %5200 = vmatprep.subr.mxu0 %v6942_v34  ;;  %5460 = vmatprep.subr.mxu1 %v7224_v38 }
 0x6e9   : > { %5201 = vmatpush2.msra.mxu0 %v6941_v28  ;;  %5461 = vmatpush1.msra.mxu1 %v6954_v7 }
 0x6ea   : > { %5202 = vmatprep.subr.mxu0 %v6940_v36  ;;  %5462 = vmatprep.subr.mxu1 %v7224_v38  ;;  %v5224_v36 = vrot.slane %v5215_v44, %v7717_v2  ;;  %v6980_v2 = vld [vmem:[%s11635_s10 + $0x148] sm:$0xff]  ;;  %v5766_v44 = vld [vmem:[%s11641_s16 + $0x40] sm:$0xff] }
 0x6eb   : > { %5203 = vmatpush2.msra.mxu0 %v6939_v16  ;;  %5463 = vmatpush1.msra.mxu1 %v6953_v40 }
 0x6ec   : > { %5204 = vmatprep.subr.mxu0 %v6938_v20  ;;  %5488 = vmatprep.subr.mxu1 %v7224_v38 }
 0x6ed   : > { %5205 = vmatpush2.msra.mxu0 %v6937_v58  ;;  %5489 = vmatpush2.msra.mxu1 %v6972_v5  ;;  %v6997_v58 = vld [vmem:[%s11635_s10 + $0x1d0] sm:$0xff]  ;;  %v6996_v5 = vld [vmem:[%s11635_s10 + $0x1c8] sm:$0xff] }
 0x6ee   : > { %5207 = vmatmul.mubr.f32.vlgmr.msra.gmra.mxu0 %v5135_v0  ;;  %5490 = vmatprep.subr.mxu1 %v7224_v38  ;;  %v6995_v0 = vld [vmem:[%s11635_s10 + $0x1c0] sm:$0xff] }
 0x6ef   : > { %5505 = vmatprep.subr.mxu0 %v7224_v38  ;;  %5491 = vmatpush2.msra.mxu1 %v6971_v21  ;;  %v7012_v21 = vld [vmem:[%s11641_s16 + $0xb8] sm:$0xff] }
 0x6f0   : > { %5506 = vmatpush1.msra.mxu0 %v5327_v19  ;;  %5492 = vmatprep.subr.mxu1 %v7224_v38  ;;  %v7011_v19 = vld [vmem:[%s11641_s16 + $0xb0] sm:$0xff] }
 0x6f1   : > { %5507 = vmatprep.subr.mxu0 %v7224_v38  ;;  %5493 = vmatpush2.msra.mxu1 %v6970_v37  ;;  %v7010_v37 = vld [vmem:[%s11641_s16 + $0xa8] sm:$0xff] }
 0x6f2   : > { %5508 = vmatpush1.msra.mxu0 %v5326_v4  ;;  %5494 = vmatprep.subr.mxu1 %v7224_v38  ;;  %v7009_v4 = vld [vmem:[%s11641_s16 + $0xa0] sm:$0xff] }
 0x6f3   : > { %5509 = vmatprep.subr.mxu0 %v7224_v38  ;;  %5495 = vmatpush2.msra.mxu1 %v6969_v62 }
 0x6f4   : > { %5510 = vmatpush1.msra.mxu0 %v5325_v47  ;;  %6976 = vmatprep.subr.msk.mxu1 %vm3338_vm12, %v11029_v24  ;;  %v5321_v24 = vld [vmem:[%s11635_s10 + $0x48] sm:$0xff] }
 0x6f5   : > { %5511 = vmatprep.subr.mxu0 %v7224_v38 }
 0x6f6   : > { %5512 = vmatpush1.msra.mxu0 %v5324_v46 }
 0x6f7   : > { %5513 = vmatprep.subr.mxu0 %v7224_v38 }
 0x6f8   : > { %5514 = vmatpush1.msra.mxu0 %v5323_v9 }
 0x6f9   : > { %5515 = vmatprep.subr.mxu0 %v7224_v38 }
 0x6fa   : > { %5516 = vmatpush1.msra.mxu0 %v5322_v27 }
 0x6fb   : > { %5517 = vmatprep.subr.mxu0 %v7224_v38 }
 0x6fc   : > { %5518 = vmatpush1.msra.mxu0 %v5321_v24 }
 0x6fd   : > { %5519 = vmatprep.subr.mxu0 %v7224_v38 }
 0x6fe   : > { %5520 = vmatpush1.msra.mxu0 %v5320_v22 }
 0x6ff   : > { %5521 = vmatprep.subr.mxu0 %v7224_v38 }
 0x700   : > { %5522 = vmatpush1.msra.mxu0 %v5319_v41  ;;  %v7026_v41 = vld [vmem:[%s11641_s16 + $0x118] sm:$0xff] }
 0x701   : > { %5523 = vmatprep.subr.mxu0 %v7224_v38 }
 0x702   : > { %5524 = vmatpush1.msra.mxu0 %v5318_v55  ;;  %v7025_v55 = vld [vmem:[%s11641_s16 + $0x110] sm:$0xff] }
 0x703   : > { %5525 = vmatprep.subr.mxu0 %v7224_v38 }
 0x704   : > { %5526 = vmatpush1.msra.mxu0 %v5317_v13  ;;  %v7024_v13 = vld [vmem:[%s11641_s16 + $0x108] sm:$0xff] }
 0x705   : > { %5527 = vmatprep.subr.mxu0 %v7224_v38 }
 0x706   : > { %5528 = vmatpush1.msra.mxu0 %v5316_v50  ;;  %v7023_v50 = vld [vmem:[%s11641_s16 + $0x100] sm:$0xff] }
 0x707   : > { %5529 = vmatprep.subr.mxu0 %v7224_v38 }
 0x708   : > { %5530 = vmatpush1.msra.mxu0 %v5315_v48  ;;  %v7008_v48 = vld [vmem:[%s11641_s16 + $0x98] sm:$0xff] }
 0x709   : > { %5531 = vmatprep.subr.mxu0 %v7224_v38 }
 0x70a   : > { %5532 = vmatpush1.msra.mxu0 %v5314_v49  ;;  %v7022_v49 = vld [vmem:[%s11641_s16 + $0xf8] sm:$0xff] }
 0x70b   : > { %5533 = vmatprep.subr.mxu0 %v7224_v38 }
 0x70c   : > { %5534 = vmatpush1.msra.mxu0 %v5313_v51  ;;  %v7007_v51 = vld [vmem:[%s11641_s16 + $0x90] sm:$0xff] }
 0x70d   : > { %5535 = vmatprep.subr.mxu0 %v7224_v38 }
 0x70e   : > { %5536 = vmatpush1.msra.mxu0 %v5312_v57  ;;  %v7021_v57 = vld [vmem:[%s11641_s16 + $0xf0] sm:$0xff] }
 0x70f   : > { %5561 = vmatprep.subr.mxu0 %v7224_v38 }
 0x710   : > { %5562 = vmatpush2.msra.mxu0 %v5331_v61  ;;  %v7006_v61 = vld [vmem:[%s11641_s16 + $0x88] sm:$0xff] }
 0x711   : > { %5563 = vmatprep.subr.mxu0 %v7224_v38 }
 0x712   : > { %5564 = vmatpush2.msra.mxu0 %v5330_v35  ;;  %v7020_v35 = vld [vmem:[%s11641_s16 + $0xe8] sm:$0xff] }
 0x713   : > { %5565 = vmatprep.subr.mxu0 %v7224_v38 }
 0x714   : > { %5566 = vmatpush2.msra.mxu0 %v5329_v3  ;;  %v7005_v3 = vld [vmem:[%s11641_s16 + $0x80] sm:$0xff] }
 0x715   : > { %5567 = vmatprep.subr.mxu0 %v7224_v38 }
 0x716   : > { %5568 = vmatpush2.msra.mxu0 %v5328_v6  ;;  %v7019_v6 = vld [vmem:[%s11641_s16 + $0xe0] sm:$0xff] }
 0x717   : > { %7111 = vmatprep.subr.mxu0 %v7224_v38 }
 0x781   : > { %v5087_v53 = vpop.f32.mrf.mxu1 }
 0x783   : > { %v11350_v32 = vpop.f32.mrf.mxu1 }
 0x785   : > { %v5014_v56 = vpop.f32.mrf.mxu0 }
 0x786   : > { %v5088_v31 = vadd.f32 %v5087_v53, %v5014_v56  ;;  %v7004_v53 = vld [vmem:[%s11641_s16 + $0x78] sm:$0xff]  ;;  %v5768_v56 = vld [vmem:[%s11641_s16 + $0x50] sm:$0xff] }
 0x787   : > { %v5307_v8 = vpop.f32.mrf.mxu1  ;;  %v5016_v60 = vpop.f32.mrf.mxu0 }
 0x788   : > { %v5090_v28 = vadd.f32 %v11350_v32, %v5016_v60  ;;  %v7018_v32 = vld [vmem:[%s11641_s16 + $0xd8] sm:$0xff]  ;;  %v5764_v60 = vld [vmem:[%s11641_s16 + $0x30] sm:$0xff] }
 0x789   : > { %v5309_v11 = vpop.f32.mrf.mxu1 }
 0x78a   : > { %6974 = vmatprep.mubr.msk.f32.mxu0 %vm1854_vm11, %v5309_v11  ;;  %v7017_v11 = vld [vmem:[%s11641_s16 + $0xd0] sm:$0xff] }
 0x78b   : > { %5570 = vmatmul.mubr.f32.vlgmr.msra.gmra.mxu0 %v5307_v8  ;;  %v7003_v8 = vld [vmem:[%s11641_s16 + $0x70] sm:$0xff] }
 0x78c   : > { %v5403_v17 = vpop.f32.mrf.mxu1  ;;  %7135 = vmatprep.mubr.msk.f32.mxu0 %vm7225_vm14, %v7224_v38  ;;  %7112 = vmatpush3.msra.mxu0 %v7012_v21 }
 0x78d   : > { %7113 = vmatprep.subr.mxu0 %v7224_v38 }
 0x78e   : > { %v5405_v42 = vpop.f32.mrf.mxu1  ;;  %7114 = vmatpush3.msra.mxu0 %v7011_v19 }
 0x78f   : > { %6973 = vmatprep.mubr.msk.f32.mxu1 %vm1854_vm11, %v5405_v42  ;;  %7115 = vmatprep.subr.mxu0 %v7224_v38  ;;  %v7016_v42 = vld [vmem:[%s11641_s16 + $0xc8] sm:$0xff] }
 0x790   : > { %5497 = vmatmul.mubr.f32.vlgmr.msra.gmra.mxu1 %v5403_v17  ;;  %7116 = vmatpush3.msra.mxu0 %v7010_v37  ;;  %v7002_v17 = vld [vmem:[%s11641_s16 + $0x68] sm:$0xff] }
 0x791   : > { %6977 = vmatpush1.msk.msra.mxu1 %vm3338_vm12, %v11025_v12  ;;  %5644 = vmatprep.mubr.f32.mxu1 %v7224_v38  ;;  %v6993_v12 = vld [vmem:[%s11635_s10 + $0x1b0] sm:$0xff] }
 0x792   : > { %5610 = vmatprep.subr.mxu1 %v11027_v59  ;;  %v6992_v59 = vld [vmem:[%s11635_s10 + $0x1a8] sm:$0xff]  ;;  %7117 = vmatprep.subr.mxu0 %v7224_v38 }
 0x793   : > { %5611 = vmatpush1.msra.mxu1 %v11023_v33  ;;  %v6991_v33 = vld [vmem:[%s11635_s10 + $0x1a0] sm:$0xff]  ;;  %7118 = vmatpush3.msra.mxu0 %v7009_v4 }
 0x794   : > { %6978 = vmatmul.mubr.msk.f32.vlgmr.msra.gmra.mxu1 %vm5233_vm3, %v6975_v14  ;;  %5675 = vmatprep.subr.mxu1 %v7224_v38  ;;  %v7001_v14 = vld [vmem:[%s11641_s16 + $0x60] sm:$0xff] }
 0x795   : > { %5676 = vmatpush1.msra.mxu1 %v6994_v18  ;;  %7119 = vmatprep.subr.mxu0 %v7224_v38  ;;  %v7015_v18 = vld [vmem:[%s11641_s16 + $0xc0] sm:$0xff] }
 0x796   : > { %5677 = vmatprep.subr.mxu1 %v7224_v38  ;;  %7120 = vmatpush3.msra.mxu0 %v7008_v48 }
 0x797   : > { %5678 = vmatpush1.msra.mxu1 %v6993_v12  ;;  %7121 = vmatprep.subr.mxu0 %v7224_v38 }
 0x798   : > { %5679 = vmatprep.subr.mxu1 %v7224_v38  ;;  %7122 = vmatpush3.msra.mxu0 %v7007_v51 }
 0x799   : > { %5680 = vmatpush1.msra.mxu1 %v6992_v59  ;;  %7123 = vmatprep.subr.mxu0 %v7224_v38  ;;  %v7000_v59 = vld [vmem:[%s11636_s11] ss:$0 sm:$0xff] }
 0x79a   : > { %5681 = vmatprep.subr.mxu1 %v7224_v38  ;;  %7124 = vmatpush3.msra.mxu0 %v7006_v61 }
 0x79b   : > { %5682 = vmatpush1.msra.mxu1 %v6991_v33  ;;  %7125 = vmatprep.subr.mxu0 %v7224_v38 }
 0x79c   : > { %5683 = vmatprep.subr.mxu1 %v7224_v38  ;;  %7126 = vmatpush3.msra.mxu0 %v7005_v3 }
 0x79d   : > { %5684 = vmatpush1.msra.mxu1 %v6990_v52  ;;  %7127 = vmatprep.subr.mxu0 %v7224_v38 }
 0x79e   : > { %5685 = vmatprep.subr.mxu1 %v7224_v38  ;;  %7128 = vmatpush3.msra.mxu0 %v7004_v53 }
 0x79f   : > { %5686 = vmatpush1.msra.mxu1 %v6989_v54  ;;  %7129 = vmatprep.subr.mxu0 %v7224_v38 }
 0x7a0   : > { %5687 = vmatprep.subr.mxu1 %v7224_v38  ;;  %7130 = vmatpush3.msra.mxu0 %v7003_v8 }
 0x7a1   : > { %5688 = vmatpush1.msra.mxu1 %v6988_v23  ;;  %7131 = vmatprep.subr.mxu0 %v7224_v38 }
 0x7a2   : > { %5689 = vmatprep.subr.mxu1 %v7224_v38  ;;  %7132 = vmatpush3.msra.mxu0 %v7002_v17 }
 0x7a3   : > { %5690 = vmatpush1.msra.mxu1 %v6987_v29  ;;  %7133 = vmatprep.subr.mxu0 %v7224_v38 }
 0x7a4   : > { %5691 = vmatprep.subr.mxu1 %v7224_v38  ;;  %7134 = vmatpush3.msra.mxu0 %v7001_v14 }
 0x7a5   : > { %5692 = vmatpush1.msra.mxu1 %v6986_v15  ;;  %7138 = vmatprep.subr.mxu0 %v7224_v38 }
 0x7a6   : > { %5693 = vmatprep.subr.mxu1 %v7224_v38 }
 0x7a7   : > { %5694 = vmatpush1.msra.mxu1 %v6985_v30  ;;  %v5769_v30 = vld [vmem:[%s11641_s16 + $0x58] sm:$0xff] }
 0x7a8   : > { %5695 = vmatprep.subr.mxu1 %v7224_v38 }
 0x7a9   : > { %5696 = vmatpush1.msra.mxu1 %v6984_v10 }
 0x7aa   : > { %5697 = vmatprep.subr.mxu1 %v7224_v38 }
 0x7ab   : > { %5698 = vmatpush1.msra.mxu1 %v6983_v39  ;;  %v5767_v39 = vld [vmem:[%s11641_s16 + $0x48] sm:$0xff] }
 0x7ac   : > { %5699 = vmatprep.subr.mxu1 %v7224_v38 }
 0x7ad   : > { %5700 = vmatpush1.msra.mxu1 %v6982_v45  ;;  %v5765_v45 = vld [vmem:[%s11641_s16 + $0x38] sm:$0xff] }
 0x7ae   : > { %v5208_v34 = vpop.f32.mrf.mxu0  ;;  %5701 = vmatprep.subr.mxu1 %v7224_v38 }
 0x7af   : > { %v5213_v7 = vadd.f32 %v5208_v34, %v5088_v31  ;;  %5702 = vmatpush1.msra.mxu1 %v6981_v1  ;;  %v5763_v31 = vld [vmem:[%s11641_s16 + $0x28] sm:$0xff]  ;;  %v5761_v1 = vld [vmem:[%s11641_s16 + $0x18] sm:$0xff]  ;;  %v5760_v34 = vld [vmem:[%s11641_s16 + $0x10] sm:$0xff] }
 0x7b0   : > { %v5210_v63 = vpop.f32.mrf.mxu0  ;;  %5703 = vmatprep.subr.mxu1 %v7224_v38 }
 0x7b1   : > { %v5227_v16 = vadd.f32 %v5220_v43, %v5213_v7  ;;  %v5214_v40 = vadd.f32 %v5210_v63, %v5090_v28  ;;  %5704 = vmatpush1.msra.mxu1 %v6980_v2  ;;  %v5762_v43 = vld [vmem:[%s11641_s16 + $0x20] sm:$0xff]  ;;  %v5759_v28 = vld [vmem:[%s11641_s16 + $0x8] sm:$0xff] }
 0x7b2   : > { %5705 = vmatprep.subr.mxu1 %v7224_v38  ;;  %v5758_v7 = vld [vmem:[%s11641_s16] sm:$0xff] }
 0x7b3   : > { %5229 = vst [vmem:[%s702_s0] sm:$0xff] %v5227_v16  ;;  %v5228_v20 = vadd.f32 %v5224_v36, %v5214_v40  ;;  %5706 = vmatpush1.msra.mxu1 %v6979_v26  ;;  %v7028_v26 = vld [vmem:[%s11642_s17] ss:$0 sm:$0xff] }
 0x7b4   : > { %5731 = vmatprep.subr.mxu1 %v7224_v38 }
 0x7b5   : > { %5231 = vst.msk [vmem:[%s702_s0 + $0x8] sm:$0xff] %vm5230_vm0, %v5228_v20  ;;  %5732 = vmatpush2.msra.mxu1 %v6998_v25 }
 0x7b6   : > { %5733 = vmatprep.subr.mxu1 %v7224_v38 }
 0x7b7   : > { %5734 = vmatpush2.msra.mxu1 %v6997_v58 }
 0x7b8   : > { %5735 = vmatprep.subr.mxu1 %v7224_v38 }
 0x7b9   : > { %5736 = vmatpush2.msra.mxu1 %v6996_v5 }
 0x7ba   : > { %5737 = vmatprep.subr.mxu1 %v7224_v38 }
 0x7bb   : > { %5738 = vmatpush2.msra.mxu1 %v6995_v0 }
 0x7bc   : > { %7165 = vmatprep.subr.mxu1 %v7224_v38 }
 0x84b   : > { %v5571_v62 = vpop.f32.mrf.mxu0 }
 0x84d   : > { %v5573_v47 = vpop.f32.mrf.mxu0 }
 0x850   : > { %v5498_v46 = vpop.f32.mrf.mxu1 }
 0x851   : > { %v11473_v9 = vadd.f32 %v5571_v62, %v5498_v46 }
 0x852   : > { %v5500_v27 = vpop.f32.mrf.mxu1 }
 0x854   : > { %v5646_v24 = vpop.f32.mrf.mxu1 }
 0x856   : > { %v5648_v22 = vpop.f32.mrf.mxu1 }
 0x857   : > { %6999 = vmatprep.mubr.msk.f32.mxu1 %vm1854_vm11, %v5648_v22 }
 0x858   : > { %5740 = vmatmul.mubr.f32.vlgmr.msra.gmra.mxu1 %v5646_v24 }
 0x859   : > { %7166 = vmatpush3.msra.mxu1 %v7026_v41  ;;  %7189 = vmatprep.mubr.msk.f32.mxu1 %vm7225_vm14, %v7224_v38 }
 0x85a   : > { %7167 = vmatprep.subr.mxu1 %v7224_v38 }
 0x85b   : > { %7168 = vmatpush3.msra.mxu1 %v7025_v55 }
 0x85c   : > { %7169 = vmatprep.subr.mxu1 %v7224_v38 }
 0x85d   : > { %7170 = vmatpush3.msra.mxu1 %v7024_v13 }
 0x85e   : > { %7171 = vmatprep.subr.mxu1 %v7224_v38 }
 0x85f   : > { %7172 = vmatpush3.msra.mxu1 %v7023_v50 }
 0x860   : > { %7173 = vmatprep.subr.mxu1 %v7224_v38 }
 0x861   : > { %7174 = vmatpush3.msra.mxu1 %v7022_v49 }
 0x862   : > { %7175 = vmatprep.subr.mxu1 %v7224_v38 }
 0x863   : > { %7176 = vmatpush3.msra.mxu1 %v7021_v57 }
 0x864   : > { %7177 = vmatprep.subr.mxu1 %v7224_v38 }
 0x865   : > { %7178 = vmatpush3.msra.mxu1 %v7020_v35 }
 0x866   : > { %7179 = vmatprep.subr.mxu1 %v7224_v38 }
 0x867   : > { %7180 = vmatpush3.msra.mxu1 %v7019_v6 }
 0x868   : > { %7181 = vmatprep.subr.mxu1 %v7224_v38 }
 0x869   : > { %7182 = vmatpush3.msra.mxu1 %v7018_v32 }
 0x86a   : > { %7183 = vmatprep.subr.mxu1 %v7224_v38 }
 0x86b   : > { %7184 = vmatpush3.msra.mxu1 %v7017_v11 }
 0x86c   : > { %7185 = vmatprep.subr.mxu1 %v7224_v38 }
 0x86d   : > { %7186 = vmatpush3.msra.mxu1 %v7016_v42 }
 0x86e   : > { %7187 = vmatprep.subr.mxu1 %v7224_v38 }
 0x86f   : > { %7188 = vmatpush3.msra.mxu1 %v7015_v18 }
 0x918   : > { %v5741_v12 = vpop.f32.mrf.mxu1 }
 0x919   : > { %v5745_v33 = vadd.f32 %v5741_v12, %v11473_v9 }
 0x91a   : > { %v5743_v52 = vpop.f32.mrf.mxu1 }
 0x91b   : > { %v5753_v54 = vadd.f32 %v7000_v59, %v5745_v33 }
 0x91d   : > { %v5754_v23 = vmax.f32 %v5753_v54, 0.0 }
 0x91f   : > { %5756 = vst.msk [vmem:[#allocation6 + $0x1] sm:$0xf] %vm5755_vm4, %v5754_v23 }
 0x926   : > { %v5757_v29 = vld [vmem:[#allocation6] sm:$0x3f] }
 0x927   : > { %v5784_v15 = vrot.slane %v5757_v29, 1  ;;  %v5942_v10 = vrot.slane %v5757_v29, 2 }
 0x929   : > { %7136 = vmatmul.mubr.msk.f32.vlgmr.msra.gmra.mxu0 %vm5230_vm0, %v5784_v15  ;;  %7190 = vmatmul.mubr.msk.f32.vlgmr.msra.gmra.mxu1 %vm5230_vm0, %v5942_v10 }
 0x92a   : > { %7139 = vmatpush3.msra.mxu0 %v5769_v30  ;;  %7162 = vmatprep.mubr.msk.f32.mxu0 %vm7225_vm14, %v7224_v38 }
 0x92b   : > { %7140 = vmatprep.subr.mxu0 %v7224_v38 }
 0x92c   : > { %7141 = vmatpush3.msra.mxu0 %v5768_v56 }
 0x92d   : > { %7142 = vmatprep.subr.mxu0 %v7224_v38 }
 0x92e   : > { %7143 = vmatpush3.msra.mxu0 %v5767_v39 }
 0x92f   : > { %7144 = vmatprep.subr.mxu0 %v7224_v38 }
 0x930   : > { %7145 = vmatpush3.msra.mxu0 %v5766_v44 }
 0x931   : > { %7146 = vmatprep.subr.mxu0 %v7224_v38 }
 0x932   : > { %7147 = vmatpush3.msra.mxu0 %v5765_v45 }
 0x933   : > { %7148 = vmatprep.subr.mxu0 %v7224_v38 }
 0x934   : > { %7149 = vmatpush3.msra.mxu0 %v5764_v60 }
 0x935   : > { %7150 = vmatprep.subr.mxu0 %v7224_v38 }
 0x936   : > { %7151 = vmatpush3.msra.mxu0 %v5763_v31 }
 0x937   : > { %7152 = vmatprep.subr.mxu0 %v7224_v38 }
 0x938   : > { %7153 = vmatpush3.msra.mxu0 %v5762_v43 }
 0x939   : > { %7154 = vmatprep.subr.mxu0 %v7224_v38 }
 0x93a   : > { %7155 = vmatpush3.msra.mxu0 %v5761_v1 }
 0x93b   : > { %7156 = vmatprep.subr.mxu0 %v7224_v38 }
 0x93c   : > { %7157 = vmatpush3.msra.mxu0 %v5760_v34 }
 0x93d   : > { %7158 = vmatprep.subr.mxu0 %v7224_v38 }
 0x93e   : > { %7159 = vmatpush3.msra.mxu0 %v5759_v28 }
 0x93f   : > { %7160 = vmatprep.subr.mxu0 %v7224_v38 }
 0x940   : > { %7161 = vmatpush3.msra.mxu0 %v5758_v7 }
 0x941   : > { %7163 = vmatmul.mubr.msk.f32.vlgmr.msra.gmra.mxu0 %vm5230_vm0, %v5757_v29 }
 0x9e9   : > { %v5853_v36 = vpop.f32.mrf.mxu0  ;;  %v6011_v63 = vpop.f32.mrf.mxu1 }
 0x9eb   : > { %v7137_v16 = vpop.f32.mrf.mxu0  ;;  %v7191_v40 = vpop.f32.mrf.mxu1 }
 0xa01   : > { %v5925_v20 = vpop.f32.mrf.mxu0 }
 0xa02   : > { %v5926_v2 = vadd.f32 %v5925_v20, %v5853_v36 }
 0xa03   : > { %v7164_v25 = vpop.f32.mrf.mxu0 }
 0xa04   : > { %v6015_v58 = vadd.f32 %v6011_v63, %v5926_v2 }
 0xa06   : > { %v6023_v38 = vadd.f32 %v7028_v26, %v6015_v58 }
 0xa08   : > { %6025 = vst.msk [vmem:[%s706_s23] sm:$0xf] %vm6024_vm5, %v6023_v38 }
 0xa09 PF: > { %s11669_s1 = sld [smem:[#allocation7_spill]] }
 0xa0f   : > { %s33_s3 = sadd.s32 1, %s11669_s1  }
 0xa10   : > { %p30_p4 = scmp.ge.s32.totalorder %s33_s3, 4  }
 0xa12   :  { %32 = sbr.rel (!%p30_p4) target bundleno = 8 (0x8), region = 178 }

</bundles_post_ra>
